<compile_context>
chip_gen: v5e
topology: v5e:2x2
jax: 0.10.0
libtpu: 0.0.40
codegen_flags: <defaults>
</compile_context>

<pallas_src>
import functools

import jax
import jax.numpy as jnp
from jax import lax
from jax.experimental import pallas as pl
from jax.experimental.pallas import tpu as pltpu


# -----------------------------------------------------------------------------
# ConvTranspose2d phase-decomposition geometry (static Python ints)
# -----------------------------------------------------------------------------
def _phase_geometry(kk, s, p):
    """Per-output-phase taps of ConvTranspose2d(kernel=kk, stride=s, pad=p).

    Returns (pad2, a0, ka, delta, pad_lo, win) where, for output phase ph,
    output row q reads input rows  q + delta[ph] + m  (m = 0..ka[ph]-1) with
    flipped-kernel taps  a0[ph] + s*m,  and all phases fit in a single `win`
    wide window over the input padded by `pad_lo` at the low edge.
    """
    pad2 = kk - 1 - p                         # pad of the equivalent dilated conv
    assert pad2 >= 0, "padding > kernel_size - 1 is not supported"
    a0 = [(pad2 - ph) % s for ph in range(s)]
    ka = [-(-(kk - a0[ph]) // s) for ph in range(s)]          # ceil((kk-a0)/s)
    delta = [(ph + a0[ph] - pad2) // s for ph in range(s)]    # exact division
    pad_lo = max(0, -min(delta))
    win = max(delta[ph] + ka[ph] for ph in range(s)) - min(delta)
    return pad2, a0, ka, delta, pad_lo, win


def _pack_transpose_conv_weight(w2_iohw, s, p):
    """Combined phase weight (win*win*Cmid, s*s*Cout) for a single matmul.

    Column (ph*s+pw)*Cout + co holds the sub-kernel of output phase (ph, pw);
    rows follow the (wh, ww, ci) im2col ordering over a `win` x `win` window of
    the (pad_lo-padded) un-dilated input.
    """
    cmid, cout, kk, _ = w2_iohw.shape
    _, a0, ka, delta, pad_lo, win = _phase_geometry(kk, s, p)
    # flipped forward-conv kernel, HWIO
    wf = jnp.transpose(w2_iohw, (2, 3, 0, 1))[::-1, ::-1, :, :].astype(jnp.float32)
    wc = jnp.zeros((win, win, cmid, s, s, cout), jnp.float32)
    for ph in range(s):
        for pw in range(s):
            for mh in range(ka[ph]):
                for mw in range(ka[pw]):
                    wc = wc.at[delta[ph] + pad_lo + mh,
                               delta[pw] + pad_lo + mw, :, ph, pw, :].set(
                        wf[a0[ph] + s * mh, a0[pw] + s * mw])
    return wc.reshape(win * win * cmid, s * s * cout), pad_lo, win


def _group_channels(row, groups, c):
    """row: (1, groups*c) -> (1, c); sums the `groups` phase blocks per channel."""
    acc = row[:, 0:c]
    for g in range(1, groups):
        acc = acc + row[:, g * c:(g + 1) * c]
    return acc


# -----------------------------------------------------------------------------
# Fused Pallas kernel
# -----------------------------------------------------------------------------
def _fused_kernel(x_ref, w1_ref, g1_ref, bt1_ref, wc_ref, bias2_ref, g2_ref,
                  bt2_ref, o_ref, xpad_ref, y1pad_ref, *,
                  n, h, w, c1, cmid, cout, k1, p1, s, qh, qw, win, pad_lo,
                  use_norm, use_act, eps, neg_slope):
    f32 = jnp.float32

    # ---- stage 0: zero-pad the input inside VMEM (no XLA pad / HBM copy) ----
    xpad_ref[...] = jnp.zeros(xpad_ref.shape, f32)
    xpad_ref[:, p1:p1 + h, p1:p1 + w, :] = x_ref[...]

    # ---- conv1 (3x3, stride 1, no bias) as ONE im2col matmul ----------------
    #   (N*H*W, k1*k1*C1) @ (k1*k1*C1, Cmid)     K = 144 for the test config
    cols = [xpad_ref[:, i:i + h, j:j + w, :]
            for i in range(k1) for j in range(k1)]
    patches = jnp.concatenate(cols, axis=-1).reshape(n * h * w, k1 * k1 * c1)
    y1 = jnp.dot(patches, w1_ref[...], preferred_element_type=f32)

    # ---- BN1 (batch stats, biased var) + ReLU, fused in-register ------------
    m1 = jnp.mean(y1, axis=0, keepdims=True)
    v1 = jnp.mean(jnp.square(y1 - m1), axis=0, keepdims=True)
    sc1 = g1_ref[...] * lax.rsqrt(v1 + eps)
    sh1 = bt1_ref[...] - m1 * sc1
    y1 = jnp.maximum(y1 * sc1 + sh1, 0.0)

    # ---- ConvTranspose2d via phase decomposition -----------------------------
    # One matmul over the un-dilated (only pad_lo/pad_hi zero-padded) y1; the
    # s*s sub-pixel phases come out as packed output columns (lane-dense).
    y1pad_ref[...] = jnp.zeros(y1pad_ref.shape, f32)
    y1pad_ref[:, pad_lo:pad_lo + h, pad_lo:pad_lo + w, :] = \
        y1.reshape(n, h, w, cmid)
    cols2 = [y1pad_ref[:, i:i + qh, j:j + qw, :]
             for i in range(win) for j in range(win)]
    p2 = jnp.concatenate(cols2, axis=-1).reshape(n * qh * qw, win * win * cmid)
    y2 = jnp.dot(p2, wc_ref[...], preferred_element_type=f32) + bias2_ref[...]

    # ---- BN2 (batch stats) + LeakyReLU on the phase-packed layout -----------
    # The packed tensor holds every output pixel exactly once per channel, so
    # per-channel moments over it equal the BatchNorm2d batch statistics.
    groups = s * s
    ne = float(n * qh * qw * groups)
    if use_norm:
        col_sum = jnp.sum(y2, axis=0, keepdims=True)               # (1, s*s*C)
        m2 = _group_channels(col_sum, groups, cout) / ne           # (1, C)
        m2p = jnp.concatenate([m2] * groups, axis=-1)              # (1, s*s*C)
        col_sq = jnp.sum(jnp.square(y2 - m2p), axis=0, keepdims=True)
        v2 = _group_channels(col_sq, groups, cout) / ne            # biased var
        sc2 = g2_ref[...] * lax.rsqrt(v2 + eps)
        sh2 = bt2_ref[...] - m2 * sc2
        y2 = (y2 * jnp.concatenate([sc2] * groups, axis=-1)
              + jnp.concatenate([sh2] * groups, axis=-1))
    if use_act:
        y2 = jnp.where(y2 > 0, y2, neg_slope * y2)

    o_ref[...] = y2.reshape(n, qh, qw, groups * cout)


# -----------------------------------------------------------------------------
# Public wrapper: PyTorch layouts in / out, one pallas_call inside
# -----------------------------------------------------------------------------
@functools.partial(jax.jit,
                   static_argnames=("stride", "padding", "use_norm", "use_act",
                                    "eps"))
def double_conv_transpose2d(x_nchw, params, *, stride, padding,
                            use_norm=True, use_act=True, eps=1e-5):
    w1_oihw = params["w1"]          # (Cmid, C1, 3, 3)   PyTorch Conv2d weight
    w2_iohw = params["w2"]          # (Cmid, Cout, K, K) PyTorch ConvTranspose2d
    n, c1, h, w = x_nchw.shape
    cmid = w1_oihw.shape[0]
    cout = w2_iohw.shape[1]
    kk = w2_iohw.shape[2]
    s, p = stride, padding
    k1, p1 = 3, 1                   # conv1 is fixed 3x3 / stride 1 / pad 1

    h_out = (h - 1) * s - 2 * p + kk
    w_out = (w - 1) * s - 2 * p + kk
    assert h_out % s == 0 and w_out % s == 0, \
        "phase-packed layout requires output size divisible by stride"
    qh, qw = h_out // s, w_out // s

    wcf, pad_lo, win = _pack_transpose_conv_weight(w2_iohw, s, p)
    pad_hi_h = qh + win - 1 - pad_lo - h
    pad_hi_w = qw + win - 1 - pad_lo - w
    assert pad_hi_h >= 0 and pad_hi_w >= 0

    # Boundary layout conversions (cheap wrapper glue on tiny tensors).
    x = jnp.transpose(x_nchw, (0, 2, 3, 1)).astype(jnp.float32)      # NHWC
    w1f = jnp.transpose(w1_oihw, (2, 3, 1, 0)).astype(jnp.float32)   # HWIO
    w1f = w1f.reshape(k1 * k1 * c1, cmid)
    g1 = params["gamma1"].reshape(1, cmid).astype(jnp.float32)
    bt1 = params["beta1"].reshape(1, cmid).astype(jnp.float32)
    g2 = params["gamma2"].reshape(1, cout).astype(jnp.float32)
    bt2 = params["beta2"].reshape(1, cout).astype(jnp.float32)
    bias2 = jnp.tile(params["b2"].astype(jnp.float32), s * s).reshape(1, s * s * cout)

    kernel = functools.partial(
        _fused_kernel, n=n, h=h, w=w, c1=c1, cmid=cmid, cout=cout,
        k1=k1, p1=p1, s=s, qh=qh, qw=qw, win=win, pad_lo=pad_lo,
        use_norm=use_norm, use_act=use_act, eps=float(eps), neg_slope=0.2)

    def full(shape):
        return pl.BlockSpec(shape, lambda i: (0,) * len(shape))

    out_shape = (n, qh, qw, s * s * cout)
    out_packed = pl.pallas_call(
        kernel,
        out_shape=jax.ShapeDtypeStruct(out_shape, jnp.float32),
        grid_spec=pltpu.PrefetchScalarGridSpec(
            num_scalar_prefetch=0,
            grid=(1,),
            in_specs=[full(x.shape), full(w1f.shape), full(g1.shape),
                      full(bt1.shape), full(wcf.shape), full(bias2.shape),
                      full(g2.shape), full(bt2.shape)],
            out_specs=full(out_shape),
            scratch_shapes=[
                pltpu.VMEM((n, h + 2 * p1, w + 2 * p1, c1), jnp.float32),
                pltpu.VMEM((n, h + pad_lo + pad_hi_h, w + pad_lo + pad_hi_w,
                            cmid), jnp.float32),
            ]),
        compiler_params=pltpu.CompilerParams(
            dimension_semantics=("arbitrary",)),
    )(x, w1f, g1, bt1, wcf, bias2, g2, bt2)

    # Un-interleave the phase-packed output and return NCHW (layout only).
    out = out_packed.reshape(n, qh, qw, s, s, cout)
    out = jnp.transpose(out, (0, 5, 1, 3, 2, 4)).reshape(n, cout, h_out, w_out)
    return out


# -----------------------------------------------------------------------------
# Pure-JAX reference (correctness check only)
# -----------------------------------------------------------------------------
def _ref_forward(x_nchw, params, *, stride, padding, use_norm=True,
                 use_act=True, eps=1e-5):
    x = jnp.transpose(x_nchw, (0, 2, 3, 1)).astype(jnp.float32)
    w1 = jnp.transpose(params["w1"], (2, 3, 1, 0)).astype(jnp.float32)
    dn1 = lax.conv_dimension_numbers(x.shape, w1.shape, ("NHWC", "HWIO", "NHWC"))
    y1 = lax.conv_general_dilated(x, w1, (1, 1), [(1, 1), (1, 1)],
                                  dimension_numbers=dn1)
    m1 = y1.mean((0, 1, 2)); v1 = ((y1 - m1) ** 2).mean((0, 1, 2))
    y1 = params["gamma1"] * (y1 - m1) / jnp.sqrt(v1 + eps) + params["beta1"]
    y1 = jnp.maximum(y1, 0.0)
    kk = params["w2"].shape[2]
    pad2 = kk - 1 - padding
    w2 = jnp.transpose(params["w2"], (2, 3, 0, 1))[::-1, ::-1, :, :]
    w2 = w2.astype(jnp.float32)
    dn2 = lax.conv_dimension_numbers(y1.shape, w2.shape, ("NHWC", "HWIO", "NHWC"))
    y2 = lax.conv_general_dilated(y1, w2, (1, 1), [(pad2, pad2), (pad2, pad2)],
                                  lhs_dilation=(stride, stride),
                                  dimension_numbers=dn2)
    y2 = y2 + params["b2"]
    if use_norm:
        m2 = y2.mean((0, 1, 2)); v2 = ((y2 - m2) ** 2).mean((0, 1, 2))
        y2 = params["gamma2"] * (y2 - m2) / jnp.sqrt(v2 + eps) + params["beta2"]
    if use_act:
        y2 = jnp.where(y2 > 0, y2, 0.2 * y2)
    return jnp.transpose(y2, (0, 3, 1, 2))


# -----------------------------------------------------------------------------
# Main
# -----------------------------------------------------------------------------
if __name__ == "__main__":
    # DoubleConvTranspose2d(in_ch=8, skip_ch=8, out_ch=4, kernel_size=4,
    #                       stride=2, padding=1)
    in_ch, skip_ch, out_ch = 8, 8, 4
    kernel_size, stride, padding = 4, 2, 1
    N, H, W = 2, 8, 8

    key = jax.random.PRNGKey(0)
    k_x, k_w1, k_w2, k_b2, k_g1, k_b1, k_g2, k_bt2 = jax.random.split(key, 8)

    # Input (NCHW like PyTorch): channels = in_ch + skip_ch
    x = jax.random.normal(k_x, (N, in_ch + skip_ch, H, W), jnp.float32)

    params = dict(
        # PyTorch-native layouts: Conv2d OIHW, ConvTranspose2d IOHW
        w1=jax.random.normal(k_w1, (in_ch, in_ch + skip_ch, 3, 3),
                             jnp.float32) * 0.1,
        w2=jax.random.normal(k_w2, (in_ch, out_ch, kernel_size, kernel_size),
                             jnp.float32) * 0.1,
        b2=jax.random.normal(k_b2, (out_ch,), jnp.float32) * 0.1,
        gamma1=1.0 + 0.1 * jax.random.normal(k_g1, (in_ch,), jnp.float32),
        beta1=0.1 * jax.random.normal(k_b1, (in_ch,), jnp.float32),
        gamma2=1.0 + 0.1 * jax.random.normal(k_g2, (out_ch,), jnp.float32),
        beta2=0.1 * jax.random.normal(k_bt2, (out_ch,), jnp.float32),
    )

    out = double_conv_transpose2d(x, params, stride=stride, padding=padding)
    out = jax.block_until_ready(out)
    h_out = (H - 1) * stride - 2 * padding + kernel_size
    w_out = (W - 1) * stride - 2 * padding + kernel_size
    assert out.shape == (N, out_ch, h_out, w_out), out.shape

    ref = jax.block_until_ready(
        _ref_forward(x, params, stride=stride, padding=padding))
    max_err = float(jnp.max(jnp.abs(out - ref)))
    assert jnp.allclose(out, ref, rtol=1e-3, atol=1e-3), max_err

    print("KERNEL_OK")
</pallas_src>

<mosaic_0001>
module attributes {stable_mosaic.version = 11 : i64} {
  func.func @_fused_kernel(%arg0: i32, %arg1: memref<2x8x8x16xf32, #tpu.memory_space<vmem>>, %arg2: memref<144x8xf32, #tpu.memory_space<vmem>>, %arg3: memref<1x8xf32, #tpu.memory_space<vmem>>, %arg4: memref<1x8xf32, #tpu.memory_space<vmem>>, %arg5: memref<72x16xf32, #tpu.memory_space<vmem>>, %arg6: memref<1x16xf32, #tpu.memory_space<vmem>>, %arg7: memref<1x4xf32, #tpu.memory_space<vmem>>, %arg8: memref<1x4xf32, #tpu.memory_space<vmem>>, %arg9: memref<2x8x8x16xf32, #tpu.memory_space<vmem>>, %arg10: memref<2x10x10x16xf32, #tpu.memory_space<vmem>>, %arg11: memref<2x10x10x8xf32, #tpu.memory_space<vmem>>) attributes {dimension_semantics = [#tpu.dimension_semantics<arbitrary>], iteration_bounds = array<i64: 1>, scalar_prefetch = 0 : i64, scratch_operands = 2 : i64, tpu.core_type = #tpu.core_type<tc>, window_params = [{pipeline_mode = #tpu.pipeline_mode<synchronous>, transform_indices = @transform_0, window_bounds = array<i64: 2, 8, 8, 16>}, {pipeline_mode = #tpu.pipeline_mode<synchronous>, transform_indices = @transform_1, window_bounds = array<i64: 144, 8>}, {pipeline_mode = #tpu.pipeline_mode<synchronous>, transform_indices = @transform_2, window_bounds = array<i64: 1, 8>}, {pipeline_mode = #tpu.pipeline_mode<synchronous>, transform_indices = @transform_3, window_bounds = array<i64: 1, 8>}, {pipeline_mode = #tpu.pipeline_mode<synchronous>, transform_indices = @transform_4, window_bounds = array<i64: 72, 16>}, {pipeline_mode = #tpu.pipeline_mode<synchronous>, transform_indices = @transform_5, window_bounds = array<i64: 1, 16>}, {pipeline_mode = #tpu.pipeline_mode<synchronous>, transform_indices = @transform_6, window_bounds = array<i64: 1, 4>}, {pipeline_mode = #tpu.pipeline_mode<synchronous>, transform_indices = @transform_7, window_bounds = array<i64: 1, 4>}, {pipeline_mode = #tpu.pipeline_mode<synchronous>, transform_indices = @transform_8, window_bounds = array<i64: 2, 8, 8, 16>}]} {
    %cst = arith.constant 0.000000e+00 : f32
    %0 = vector.broadcast %cst : f32 to vector<2x10x10x16xf32>
    %c0 = arith.constant 0 : index
    %c0_0 = arith.constant 0 : index
    %c0_1 = arith.constant 0 : index
    %c0_2 = arith.constant 0 : index
    %1 = vector.load %arg10[%c0, %c0_0, %c0_1, %c0_2] : memref<2x10x10x16xf32, #tpu.memory_space<vmem>>, vector<2x10x10x16xf32>
    tpu.vector_store %arg10[%c0, %c0_0, %c0_1, %c0_2], %0 {strides = array<i32>} : memref<2x10x10x16xf32, #tpu.memory_space<vmem>>, vector<2x10x10x16xf32>,
    %c0_3 = arith.constant 0 : index
    %c0_4 = arith.constant 0 : index
    %c0_5 = arith.constant 0 : index
    %c0_6 = arith.constant 0 : index
    %2 = vector.load %arg1[%c0_3, %c0_4, %c0_5, %c0_6] : memref<2x8x8x16xf32, #tpu.memory_space<vmem>>, vector<2x8x8x16xf32>
    %c0_7 = arith.constant 0 : index
    %c1 = arith.constant 1 : index
    %c1_8 = arith.constant 1 : index
    %c0_9 = arith.constant 0 : index
    %3 = vector.load %arg10[%c0_7, %c1, %c1_8, %c0_9] : memref<2x10x10x16xf32, #tpu.memory_space<vmem>>, vector<2x8x8x16xf32>
    tpu.vector_store %arg10[%c0_7, %c1, %c1_8, %c0_9], %2 {strides = array<i32>} : memref<2x10x10x16xf32, #tpu.memory_space<vmem>>, vector<2x8x8x16xf32>,
    %c0_10 = arith.constant 0 : index
    %c0_11 = arith.constant 0 : index
    %c0_12 = arith.constant 0 : index
    %c0_13 = arith.constant 0 : index
    %4 = vector.load %arg10[%c0_10, %c0_11, %c0_12, %c0_13] : memref<2x10x10x16xf32, #tpu.memory_space<vmem>>, vector<2x8x8x16xf32>
    %c0_14 = arith.constant 0 : index
    %c0_15 = arith.constant 0 : index
    %c1_16 = arith.constant 1 : index
    %c0_17 = arith.constant 0 : index
    %5 = vector.load %arg10[%c0_14, %c0_15, %c1_16, %c0_17] : memref<2x10x10x16xf32, #tpu.memory_space<vmem>>, vector<2x8x8x16xf32>
    %c0_18 = arith.constant 0 : index
    %c0_19 = arith.constant 0 : index
    %c2 = arith.constant 2 : index
    %c0_20 = arith.constant 0 : index
    %6 = vector.load %arg10[%c0_18, %c0_19, %c2, %c0_20] : memref<2x10x10x16xf32, #tpu.memory_space<vmem>>, vector<2x8x8x16xf32>
    %c0_21 = arith.constant 0 : index
    %c1_22 = arith.constant 1 : index
    %c0_23 = arith.constant 0 : index
    %c0_24 = arith.constant 0 : index
    %7 = vector.load %arg10[%c0_21, %c1_22, %c0_23, %c0_24] : memref<2x10x10x16xf32, #tpu.memory_space<vmem>>, vector<2x8x8x16xf32>
    %c0_25 = arith.constant 0 : index
    %c1_26 = arith.constant 1 : index
    %c1_27 = arith.constant 1 : index
    %c0_28 = arith.constant 0 : index
    %8 = vector.load %arg10[%c0_25, %c1_26, %c1_27, %c0_28] : memref<2x10x10x16xf32, #tpu.memory_space<vmem>>, vector<2x8x8x16xf32>
    %c0_29 = arith.constant 0 : index
    %c1_30 = arith.constant 1 : index
    %c2_31 = arith.constant 2 : index
    %c0_32 = arith.constant 0 : index
    %9 = vector.load %arg10[%c0_29, %c1_30, %c2_31, %c0_32] : memref<2x10x10x16xf32, #tpu.memory_space<vmem>>, vector<2x8x8x16xf32>
    %c0_33 = arith.constant 0 : index
    %c2_34 = arith.constant 2 : index
    %c0_35 = arith.constant 0 : index
    %c0_36 = arith.constant 0 : index
    %10 = vector.load %arg10[%c0_33, %c2_34, %c0_35, %c0_36] : memref<2x10x10x16xf32, #tpu.memory_space<vmem>>, vector<2x8x8x16xf32>
    %c0_37 = arith.constant 0 : index
    %c2_38 = arith.constant 2 : index
    %c1_39 = arith.constant 1 : index
    %c0_40 = arith.constant 0 : index
    %11 = vector.load %arg10[%c0_37, %c2_38, %c1_39, %c0_40] : memref<2x10x10x16xf32, #tpu.memory_space<vmem>>, vector<2x8x8x16xf32>
    %c0_41 = arith.constant 0 : index
    %c2_42 = arith.constant 2 : index
    %c2_43 = arith.constant 2 : index
    %c0_44 = arith.constant 0 : index
    %12 = vector.load %arg10[%c0_41, %c2_42, %c2_43, %c0_44] : memref<2x10x10x16xf32, #tpu.memory_space<vmem>>, vector<2x8x8x16xf32>
    %13 = tpu.concatenate %4, %5, %6, %7, %8, %9, %10, %11, %12 in 3 : vector<2x8x8x16xf32>, vector<2x8x8x16xf32>, vector<2x8x8x16xf32>, vector<2x8x8x16xf32>, vector<2x8x8x16xf32>, vector<2x8x8x16xf32>, vector<2x8x8x16xf32>, vector<2x8x8x16xf32>, vector<2x8x8x16xf32> -> vector<2x8x8x144xf32>
    %14 = vector.shape_cast %13 : vector<2x8x8x144xf32> to vector<128x144xf32>
    %c0_45 = arith.constant 0 : index
    %c0_46 = arith.constant 0 : index
    %15 = vector.load %arg2[%c0_45, %c0_46] : memref<144x8xf32, #tpu.memory_space<vmem>>, vector<144x8xf32>
    %cst_47 = arith.constant dense<0.000000e+00> : vector<128x8xf32>
    %16 = tpu.matmul %14, %15, %cst_47 {dimension_numbers = #tpu.dot_dimension_numbers<[1], [0], [0], [1], [0, 0, 1, 1], [], []>} : vector<128x144xf32>, vector<144x8xf32>, vector<128x8xf32> -> vector<128x8xf32>
    %cst_48 = arith.constant dense<0.000000e+00> : vector<8xf32>
    %17 = vector.multi_reduction <add>, %16, %cst_48 [0] : vector<128x8xf32> to vector<8xf32>
    %18 = vector.shape_cast %17 : vector<8xf32> to vector<1x8xf32>
    %cst_49 = arith.constant 1.280000e+02 : f32
    %19 = vector.broadcast %cst_49 : f32 to vector<1x8xf32>
    %20 = arith.divf %18, %19 : vector<1x8xf32>
    %21 = vector.broadcast %20 : vector<1x8xf32> to vector<128x8xf32>
    %22 = arith.subf %16, %21 : vector<128x8xf32>
    %23 = arith.mulf %22, %22 : vector<128x8xf32>
    %cst_50 = arith.constant dense<0.000000e+00> : vector<8xf32>
    %24 = vector.multi_reduction <add>, %23, %cst_50 [0] : vector<128x8xf32> to vector<8xf32>
    %25 = vector.shape_cast %24 : vector<8xf32> to vector<1x8xf32>
    %cst_51 = arith.constant 1.280000e+02 : f32
    %26 = vector.broadcast %cst_51 : f32 to vector<1x8xf32>
    %27 = arith.divf %25, %26 : vector<1x8xf32>
    %c0_52 = arith.constant 0 : index
    %c0_53 = arith.constant 0 : index
    %28 = vector.load %arg3[%c0_52, %c0_53] : memref<1x8xf32, #tpu.memory_space<vmem>>, vector<1x8xf32>
    %cst_54 = arith.constant 9.99999974E-6 : f32
    %29 = vector.broadcast %cst_54 : f32 to vector<1x8xf32>
    %30 = arith.addf %27, %29 : vector<1x8xf32>
    %31 = math.rsqrt %30 : vector<1x8xf32>
    %32 = arith.mulf %28, %31 : vector<1x8xf32>
    %c0_55 = arith.constant 0 : index
    %c0_56 = arith.constant 0 : index
    %33 = vector.load %arg4[%c0_55, %c0_56] : memref<1x8xf32, #tpu.memory_space<vmem>>, vector<1x8xf32>
    %34 = arith.mulf %20, %32 : vector<1x8xf32>
    %35 = arith.subf %33, %34 : vector<1x8xf32>
    %36 = vector.broadcast %32 : vector<1x8xf32> to vector<128x8xf32>
    %37 = arith.mulf %16, %36 : vector<128x8xf32>
    %38 = vector.broadcast %35 : vector<1x8xf32> to vector<128x8xf32>
    %39 = arith.addf %37, %38 : vector<128x8xf32>
    %cst_57 = arith.constant 0.000000e+00 : f32
    %40 = vector.broadcast %cst_57 : f32 to vector<128x8xf32>
    %41 = arith.maximumf %39, %40 : vector<128x8xf32>
    %cst_58 = arith.constant 0.000000e+00 : f32
    %42 = vector.broadcast %cst_58 : f32 to vector<2x10x10x8xf32>
    %c0_59 = arith.constant 0 : index
    %c0_60 = arith.constant 0 : index
    %c0_61 = arith.constant 0 : index
    %c0_62 = arith.constant 0 : index
    %43 = vector.load %arg11[%c0_59, %c0_60, %c0_61, %c0_62] : memref<2x10x10x8xf32, #tpu.memory_space<vmem>>, vector<2x10x10x8xf32>
    tpu.vector_store %arg11[%c0_59, %c0_60, %c0_61, %c0_62], %42 {strides = array<i32>} : memref<2x10x10x8xf32, #tpu.memory_space<vmem>>, vector<2x10x10x8xf32>,
    %44 = vector.shape_cast %41 : vector<128x8xf32> to vector<2x8x8x8xf32>
    %c0_63 = arith.constant 0 : index
    %c1_64 = arith.constant 1 : index
    %c1_65 = arith.constant 1 : index
    %c0_66 = arith.constant 0 : index
    %45 = vector.load %arg11[%c0_63, %c1_64, %c1_65, %c0_66] : memref<2x10x10x8xf32, #tpu.memory_space<vmem>>, vector<2x8x8x8xf32>
    tpu.vector_store %arg11[%c0_63, %c1_64, %c1_65, %c0_66], %44 {strides = array<i32>} : memref<2x10x10x8xf32, #tpu.memory_space<vmem>>, vector<2x8x8x8xf32>,
    %c0_67 = arith.constant 0 : index
    %c0_68 = arith.constant 0 : index
    %c0_69 = arith.constant 0 : index
    %c0_70 = arith.constant 0 : index
    %46 = vector.load %arg11[%c0_67, %c0_68, %c0_69, %c0_70] : memref<2x10x10x8xf32, #tpu.memory_space<vmem>>, vector<2x8x8x8xf32>
    %c0_71 = arith.constant 0 : index
    %c0_72 = arith.constant 0 : index
    %c1_73 = arith.constant 1 : index
    %c0_74 = arith.constant 0 : index
    %47 = vector.load %arg11[%c0_71, %c0_72, %c1_73, %c0_74] : memref<2x10x10x8xf32, #tpu.memory_space<vmem>>, vector<2x8x8x8xf32>
    %c0_75 = arith.constant 0 : index
    %c0_76 = arith.constant 0 : index
    %c2_77 = arith.constant 2 : index
    %c0_78 = arith.constant 0 : index
    %48 = vector.load %arg11[%c0_75, %c0_76, %c2_77, %c0_78] : memref<2x10x10x8xf32, #tpu.memory_space<vmem>>, vector<2x8x8x8xf32>
    %c0_79 = arith.constant 0 : index
    %c1_80 = arith.constant 1 : index
    %c0_81 = arith.constant 0 : index
    %c0_82 = arith.constant 0 : index
    %49 = vector.load %arg11[%c0_79, %c1_80, %c0_81, %c0_82] : memref<2x10x10x8xf32, #tpu.memory_space<vmem>>, vector<2x8x8x8xf32>
    %c0_83 = arith.constant 0 : index
    %c1_84 = arith.constant 1 : index
    %c1_85 = arith.constant 1 : index
    %c0_86 = arith.constant 0 : index
    %50 = vector.load %arg11[%c0_83, %c1_84, %c1_85, %c0_86] : memref<2x10x10x8xf32, #tpu.memory_space<vmem>>, vector<2x8x8x8xf32>
    %c0_87 = arith.constant 0 : index
    %c1_88 = arith.constant 1 : index
    %c2_89 = arith.constant 2 : index
    %c0_90 = arith.constant 0 : index
    %51 = vector.load %arg11[%c0_87, %c1_88, %c2_89, %c0_90] : memref<2x10x10x8xf32, #tpu.memory_space<vmem>>, vector<2x8x8x8xf32>
    %c0_91 = arith.constant 0 : index
    %c2_92 = arith.constant 2 : index
    %c0_93 = arith.constant 0 : index
    %c0_94 = arith.constant 0 : index
    %52 = vector.load %arg11[%c0_91, %c2_92, %c0_93, %c0_94] : memref<2x10x10x8xf32, #tpu.memory_space<vmem>>, vector<2x8x8x8xf32>
    %c0_95 = arith.constant 0 : index
    %c2_96 = arith.constant 2 : index
    %c1_97 = arith.constant 1 : index
    %c0_98 = arith.constant 0 : index
    %53 = vector.load %arg11[%c0_95, %c2_96, %c1_97, %c0_98] : memref<2x10x10x8xf32, #tpu.memory_space<vmem>>, vector<2x8x8x8xf32>
    %c0_99 = arith.constant 0 : index
    %c2_100 = arith.constant 2 : index
    %c2_101 = arith.constant 2 : index
    %c0_102 = arith.constant 0 : index
    %54 = vector.load %arg11[%c0_99, %c2_100, %c2_101, %c0_102] : memref<2x10x10x8xf32, #tpu.memory_space<vmem>>, vector<2x8x8x8xf32>
    %55 = tpu.concatenate %46, %47, %48, %49, %50, %51, %52, %53, %54 in 3 : vector<2x8x8x8xf32>, vector<2x8x8x8xf32>, vector<2x8x8x8xf32>, vector<2x8x8x8xf32>, vector<2x8x8x8xf32>, vector<2x8x8x8xf32>, vector<2x8x8x8xf32>, vector<2x8x8x8xf32>, vector<2x8x8x8xf32> -> vector<2x8x8x72xf32>
    %56 = vector.shape_cast %55 : vector<2x8x8x72xf32> to vector<128x72xf32>
    %c0_103 = arith.constant 0 : index
    %c0_104 = arith.constant 0 : index
    %57 = vector.load %arg5[%c0_103, %c0_104] : memref<72x16xf32, #tpu.memory_space<vmem>>, vector<72x16xf32>
    %cst_105 = arith.constant dense<0.000000e+00> : vector<128x16xf32>
    %58 = tpu.matmul %56, %57, %cst_105 {dimension_numbers = #tpu.dot_dimension_numbers<[1], [0], [0], [1], [0, 0, 1, 1], [], []>} : vector<128x72xf32>, vector<72x16xf32>, vector<128x16xf32> -> vector<128x16xf32>
    %c0_106 = arith.constant 0 : index
    %c0_107 = arith.constant 0 : index
    %59 = vector.load %arg6[%c0_106, %c0_107] : memref<1x16xf32, #tpu.memory_space<vmem>>, vector<1x16xf32>
    %60 = vector.broadcast %59 : vector<1x16xf32> to vector<128x16xf32>
    %61 = arith.addf %58, %60 : vector<128x16xf32>
    %cst_108 = arith.constant dense<0.000000e+00> : vector<16xf32>
    %62 = vector.multi_reduction <add>, %61, %cst_108 [0] : vector<128x16xf32> to vector<16xf32>
    %63 = vector.shape_cast %62 : vector<16xf32> to vector<1x16xf32>
    %64 = vector.extract_strided_slice %63 {offsets = [0, 0], sizes = [1, 4], strides = [1, 1]} : vector<1x16xf32> to vector<1x4xf32>
    %65 = vector.extract_strided_slice %63 {offsets = [0, 4], sizes = [1, 4], strides = [1, 1]} : vector<1x16xf32> to vector<1x4xf32>
    %66 = arith.addf %64, %65 : vector<1x4xf32>
    %67 = vector.extract_strided_slice %63 {offsets = [0, 8], sizes = [1, 4], strides = [1, 1]} : vector<1x16xf32> to vector<1x4xf32>
    %68 = arith.addf %66, %67 : vector<1x4xf32>
    %69 = vector.extract_strided_slice %63 {offsets = [0, 12], sizes = [1, 4], strides = [1, 1]} : vector<1x16xf32> to vector<1x4xf32>
    %70 = arith.addf %68, %69 : vector<1x4xf32>
    %cst_109 = arith.constant 5.120000e+02 : f32
    %71 = vector.broadcast %cst_109 : f32 to vector<1x4xf32>
    %72 = arith.divf %70, %71 : vector<1x4xf32>
    %73 = tpu.concatenate %72, %72, %72, %72 in 1 : vector<1x4xf32>, vector<1x4xf32>, vector<1x4xf32>, vector<1x4xf32> -> vector<1x16xf32>
    %74 = vector.broadcast %73 : vector<1x16xf32> to vector<128x16xf32>
    %75 = arith.subf %61, %74 : vector<128x16xf32>
    %76 = arith.mulf %75, %75 : vector<128x16xf32>
    %cst_110 = arith.constant dense<0.000000e+00> : vector<16xf32>
    %77 = vector.multi_reduction <add>, %76, %cst_110 [0] : vector<128x16xf32> to vector<16xf32>
    %78 = vector.shape_cast %77 : vector<16xf32> to vector<1x16xf32>
    %79 = vector.extract_strided_slice %78 {offsets = [0, 0], sizes = [1, 4], strides = [1, 1]} : vector<1x16xf32> to vector<1x4xf32>
    %80 = vector.extract_strided_slice %78 {offsets = [0, 4], sizes = [1, 4], strides = [1, 1]} : vector<1x16xf32> to vector<1x4xf32>
    %81 = arith.addf %79, %80 : vector<1x4xf32>
    %82 = vector.extract_strided_slice %78 {offsets = [0, 8], sizes = [1, 4], strides = [1, 1]} : vector<1x16xf32> to vector<1x4xf32>
    %83 = arith.addf %81, %82 : vector<1x4xf32>
    %84 = vector.extract_strided_slice %78 {offsets = [0, 12], sizes = [1, 4], strides = [1, 1]} : vector<1x16xf32> to vector<1x4xf32>
    %85 = arith.addf %83, %84 : vector<1x4xf32>
    %cst_111 = arith.constant 5.120000e+02 : f32
    %86 = vector.broadcast %cst_111 : f32 to vector<1x4xf32>
    %87 = arith.divf %85, %86 : vector<1x4xf32>
    %c0_112 = arith.constant 0 : index
    %c0_113 = arith.constant 0 : index
    %88 = vector.load %arg7[%c0_112, %c0_113] : memref<1x4xf32, #tpu.memory_space<vmem>>, vector<1x4xf32>
    %cst_114 = arith.constant 9.99999974E-6 : f32
    %89 = vector.broadcast %cst_114 : f32 to vector<1x4xf32>
    %90 = arith.addf %87, %89 : vector<1x4xf32>
    %91 = math.rsqrt %90 : vector<1x4xf32>
    %92 = arith.mulf %88, %91 : vector<1x4xf32>
    %c0_115 = arith.constant 0 : index
    %c0_116 = arith.constant 0 : index
    %93 = vector.load %arg8[%c0_115, %c0_116] : memref<1x4xf32, #tpu.memory_space<vmem>>, vector<1x4xf32>
    %94 = arith.mulf %72, %92 : vector<1x4xf32>
    %95 = arith.subf %93, %94 : vector<1x4xf32>
    %96 = tpu.concatenate %92, %92, %92, %92 in 1 : vector<1x4xf32>, vector<1x4xf32>, vector<1x4xf32>, vector<1x4xf32> -> vector<1x16xf32>
    %97 = vector.broadcast %96 : vector<1x16xf32> to vector<128x16xf32>
    %98 = arith.mulf %61, %97 : vector<128x16xf32>
    %99 = tpu.concatenate %95, %95, %95, %95 in 1 : vector<1x4xf32>, vector<1x4xf32>, vector<1x4xf32>, vector<1x4xf32> -> vector<1x16xf32>
    %100 = vector.broadcast %99 : vector<1x16xf32> to vector<128x16xf32>
    %101 = arith.addf %98, %100 : vector<128x16xf32>
    %cst_117 = arith.constant 0.000000e+00 : f32
    %102 = vector.broadcast %cst_117 : f32 to vector<128x16xf32>
    %103 = arith.cmpf ogt, %101, %102 : vector<128x16xf32>
    %cst_118 = arith.constant 2.000000e-01 : f32
    %104 = vector.broadcast %cst_118 : f32 to vector<128x16xf32>
    %105 = arith.mulf %104, %101 : vector<128x16xf32>
    %106 = arith.select %103, %101, %105 : vector<128x16xi1>, vector<128x16xf32>
    %107 = vector.shape_cast %106 : vector<128x16xf32> to vector<2x8x8x16xf32>
    %c0_119 = arith.constant 0 : index
    %c0_120 = arith.constant 0 : index
    %c0_121 = arith.constant 0 : index
    %c0_122 = arith.constant 0 : index
    %108 = vector.load %arg9[%c0_119, %c0_120, %c0_121, %c0_122] : memref<2x8x8x16xf32, #tpu.memory_space<vmem>>, vector<2x8x8x16xf32>
    tpu.vector_store %arg9[%c0_119, %c0_120, %c0_121, %c0_122], %107 {strides = array<i32>} : memref<2x8x8x16xf32, #tpu.memory_space<vmem>>, vector<2x8x8x16xf32>,
    return
  }
  func.func @transform_0(%arg0: i32) -> (i32, i32, i32, i32) {
    %c0_i32 = arith.constant 0 : i32
    %c0_i32_0 = arith.constant 0 : i32
    %c0_i32_1 = arith.constant 0 : i32
    %c0_i32_2 = arith.constant 0 : i32
    %c0_i32_3 = arith.constant 0 : i32
    return %c0_i32, %c0_i32_0, %c0_i32_1, %c0_i32_2 : i32, i32, i32, i32
  }
  func.func @transform_1(%arg0: i32) -> (i32, i32) {
    %c0_i32 = arith.constant 0 : i32
    %c0_i32_0 = arith.constant 0 : i32
    %c0_i32_1 = arith.constant 0 : i32
    return %c0_i32, %c0_i32_0 : i32, i32
  }
  func.func @transform_2(%arg0: i32) -> (i32, i32) {
    %c0_i32 = arith.constant 0 : i32
    %c0_i32_0 = arith.constant 0 : i32
    %c0_i32_1 = arith.constant 0 : i32
    return %c0_i32, %c0_i32_0 : i32, i32
  }
  func.func @transform_3(%arg0: i32) -> (i32, i32) {
    %c0_i32 = arith.constant 0 : i32
    %c0_i32_0 = arith.constant 0 : i32
    %c0_i32_1 = arith.constant 0 : i32
    return %c0_i32, %c0_i32_0 : i32, i32
  }
  func.func @transform_4(%arg0: i32) -> (i32, i32) {
    %c0_i32 = arith.constant 0 : i32
    %c0_i32_0 = arith.constant 0 : i32
    %c0_i32_1 = arith.constant 0 : i32
    return %c0_i32, %c0_i32_0 : i32, i32
  }
  func.func @transform_5(%arg0: i32) -> (i32, i32) {
    %c0_i32 = arith.constant 0 : i32
    %c0_i32_0 = arith.constant 0 : i32
    %c0_i32_1 = arith.constant 0 : i32
    return %c0_i32, %c0_i32_0 : i32, i32
  }
  func.func @transform_6(%arg0: i32) -> (i32, i32) {
    %c0_i32 = arith.constant 0 : i32
    %c0_i32_0 = arith.constant 0 : i32
    %c0_i32_1 = arith.constant 0 : i32
    return %c0_i32, %c0_i32_0 : i32, i32
  }
  func.func @transform_7(%arg0: i32) -> (i32, i32) {
    %c0_i32 = arith.constant 0 : i32
    %c0_i32_0 = arith.constant 0 : i32
    %c0_i32_1 = arith.constant 0 : i32
    return %c0_i32, %c0_i32_0 : i32, i32
  }
  func.func @transform_8(%arg0: i32) -> (i32, i32, i32, i32) {
    %c0_i32 = arith.constant 0 : i32
    %c0_i32_0 = arith.constant 0 : i32
    %c0_i32_1 = arith.constant 0 : i32
    %c0_i32_2 = arith.constant 0 : i32
    %c0_i32_3 = arith.constant 0 : i32
    return %c0_i32, %c0_i32_0, %c0_i32_1, %c0_i32_2 : i32, i32, i32, i32
  }
}

</mosaic_0001>

<bundles_post_ra>
// kernel: tile.8
= control target key start
LH: loop header
LB: loop body
LE: loop exit
PB: predicated region body
PF: predicated region fallthrough
CT: control target
= control target key end

     0   :  { %s22_s0 = inlined_call_operand.vmem [shape: f32[4], index: 0, kind: input, shape index: {}]   ;;  %s23_s1 = inlined_call_operand.vmem [shape: f32[4,4], index: 1, kind: output, shape index: {}]  }
   0x1   :  { %v4_v0 = vld [vmem:[%s22_s0] ss:$0 sm:$0xff] }
   0x2   :  { %5 = vst [vmem:[%s23_s1] sm:$0xf] %v4_v0 }

// kernel: tile.9
= control target key start
LH: loop header
LB: loop body
LE: loop exit
PB: predicated region body
PF: predicated region fallthrough
CT: control target
= control target key end

     0   :  { %s37_s8 = smov 4   ;;  %s38_s9 = smov 8   ;;  %vm7_vm0 = vcmask 31744   ;;  %vm13_vm1 = vcmask 130144   ;;  %vm19_vm2 = vcmask 97344   ;;  %vm25_vm3 = vcmask 64544   ;;  %s55_s0 = inlined_call_operand.vmem [shape: f32[4,4], index: 0, kind: input, shape index: {}]   ;;  %s56_s1 = inlined_call_operand.vmem [shape: f32[1,16], index: 1, kind: output, shape index: {}]  }
   0x1   :  { %v4_v0 = vld [vmem:[%s55_s0] sm:$0xf]  ;;  %s36_s0 = smov 12  }
   0x2   :  { %5 = vst [vmem:[#allocation1] sm:$0xf] %v4_v0 }
   0x9   :  { %v10_v1 = vld [vmem:[#allocation1 + $0x3] sm:$0x1]   ;;  %v22_v2 = vld [vmem:[#allocation1 + $0x1] sm:$0x1]   ;;  %v16_v3 = vld [vmem:[#allocation1 + $0x2] sm:$0x1]  }
   0xa   :  { %11 = vrot.lane.b32.xlu0 %v10_v1, %s36_s0  ;;  %23 = vrot.lane.b32.xlu1 %v22_v2, %s37_s8  ;;  %v6_v4 = vld [vmem:[#allocation1] sm:$0x1]  }
   0xb   :  { %8 = vst.msk [vmem:[#allocation0] sm:$0x1] %vm7_vm0, %v6_v4  }
  0x12   :  { %17 = vrot.lane.b32.xlu0 %v16_v3, %s38_s9 }
  0x7c   :  { %v12_v5 = vpop.permute.xlu0 %11   ;;  %v24_v6 = vpop.permute.xlu1 %23  }
  0x7d   :  { %14 = vst.msk [vmem:[#allocation0] sm:$0x1] %vm13_vm1, %v12_v5  }
  0x84   :  { %v18_v7 = vpop.permute.xlu0 %17  }
  0x85   :  { %20 = vst.msk [vmem:[#allocation0] sm:$0x1] %vm19_vm2, %v18_v7  }
  0x86   :  { %26 = vst.msk [vmem:[#allocation0] sm:$0x1] %vm25_vm3, %v24_v6  }
  0x8d   :  { %v29_v8 = vld [vmem:[#allocation0] sm:$0x1] }
  0x8e   :  { %32 = vst [vmem:[%s56_s1] sm:$0x1] %v29_v8 }

// kernel: double_conv_transpose2d.1
= control target key start
LH: loop header
LB: loop body
LE: loop exit
PB: predicated region body
PF: predicated region fallthrough
CT: control target
= control target key end

     0   :  { %vm29_vm0 = vcmask 130048   ;;  %vm31_vm1 = vcmask 123904   ;;  %v2833_v0 = vmov 0.0   ;;  %s2834_s29 = smov 16   ;;  %s2835_s30 = smov 32   ;;  %vm713_vm2 = vcmask 261120   ;;  %s4365_s0 = inlined_call_operand.vmem [shape: f32[2,8,8,16], index: 0, kind: input, shape index: {}]   ;;  %s4366_s1 = inlined_call_operand.vmem [shape: f32[144,8], index: 1, kind: input, shape index: {}]   ;;  %s4367_s2 = inlined_call_operand.vmem [shape: f32[1,8], index: 2, kind: input, shape index: {}]   ;;  %s4368_s3 = inlined_call_operand.vmem [shape: f32[1,8], index: 3, kind: input, shape index: {}]   ;;  %s4369_s4 = inlined_call_operand.vmem [shape: f32[72,16], index: 4, kind: input, shape index: {}]   ;;  %s4370_s5 = inlined_call_operand.vmem [shape: f32[1,16], index: 5, kind: input, shape index: {}]   ;;  %s4371_s6 = inlined_call_operand.vmem [shape: f32[1,4], index: 6, kind: input, shape index: {}]   ;;  %s4372_s7 = inlined_call_operand.vmem [shape: f32[1,4], index: 7, kind: input, shape index: {}]   ;;  %s4373_s8 = inlined_call_operand.vmem [shape: f32[2,8,8,16], index: 8, kind: output, shape index: {}]  }
   0x1   :  { %30 = vst.msk [vmem:[#allocation2] sm:$0xff] %vm29_vm0, %v2833_v0  ;;  %v71_v1 = vld [vmem:[%s4365_s0] sm:$0xff]  ;;  %v72_v8 = vld [vmem:[%s4365_s0 + $0x8] sm:$0xff]  ;;  %v73_v9 = vld [vmem:[%s4365_s0 + $0x10] sm:$0xff]  ;;  %s2836_s19 = smov 48   ;;  %s2837_s20 = smov 80  }
   0x2   :  { %32 = vst.msk [vmem:[#allocation2 + $0x8] sm:$0x3] %vm31_vm1, %v2833_v0  ;;  %v74_v10 = vld [vmem:[%s4365_s0 + $0x18] sm:$0xff]  ;;  %v75_v11 = vld [vmem:[%s4365_s0 + $0x20] sm:$0xff]  ;;  %v76_v19 = vld [vmem:[%s4365_s0 + $0x28] sm:$0xff]  ;;  %s2838_s21 = smov 112  }
   0x3   :  { %33 = vst.msk [vmem:[#allocation2 + $0x10] sm:$0xff] %vm29_vm0, %v2833_v0  ;;  %v77_v26 = vld [vmem:[%s4365_s0 + $0x30] sm:$0xff]  ;;  %s2839_s24 = smov 64   ;;  %s2840_s25 = smov 96   ;;  %v82_v37 = vld [vmem:[%s4365_s0 + $0x58] sm:$0xff]  ;;  %v83_v44 = vld [vmem:[%s4365_s0 + $0x60] sm:$0xff] }
   0x4   :  { %34 = vst.msk [vmem:[#allocation2 + $0x18] sm:$0x3] %vm31_vm1, %v2833_v0  ;;  %v81_v30 = vld [vmem:[%s4365_s0 + $0x50] sm:$0xff]  ;;  %v78_v42 = vld [vmem:[%s4365_s0 + $0x38] sm:$0xff]  ;;  %v84_v56 = vld [vmem:[%s4365_s0 + $0x68] sm:$0xff]  ;;  %vm730_vm3 = vcmask 392192  }
   0x5   :  { %88 = vst.msk [vmem:[#allocation2 + $0x11] sm:$0xff] %vm29_vm0, %v71_v1  ;;  %vm747_vm4 = vcmask 523264   ;;  %vm764_vm5 = vcmask 654336   ;;  %vm781_vm6 = vcmask 785408   ;;  %vm798_vm7 = vcmask 916480  }
   0x6   :  { %35 = vst.msk [vmem:[#allocation2 + $0x20] sm:$0xff] %vm29_vm0, %v2833_v0  ;;  %vm1011_vm8 = vcmask 64512   ;;  %vm1198_vm10 = vcmask 58368   ;;  %vm1944_vm14 = vcmask 195584   ;;  %vm1977_vm15 = vcmask 326656  }
   0x7   :  { %36 = vst.msk [vmem:[#allocation2 + $0x28] sm:$0x3] %vm31_vm1, %v2833_v0 }
   0x8   :  { %37 = vst.msk [vmem:[#allocation2 + $0x30] sm:$0xff] %vm29_vm0, %v2833_v0 }
   0x9   :  { %38 = vst.msk [vmem:[#allocation2 + $0x38] sm:$0x3] %vm31_vm1, %v2833_v0  ;;  %v120_v2 = vld [vmem:[#allocation2 + $0x1] sm:$0xff] }
   0xa   :  { %39 = vst.msk [vmem:[#allocation2 + $0x40] sm:$0xff] %vm29_vm0, %v2833_v0  ;;  %v136_v5 = vld [vmem:[#allocation2 + $0x2] sm:$0xff] }
   0xb   :  { %40 = vst.msk [vmem:[#allocation2 + $0x48] sm:$0x3] %vm31_vm1, %v2833_v0 }
   0xc   :  { %v2921_v3 = vld [vmem:[#allocation2 + $0x11] sm:$0xff]  ;;  %41 = vst.msk [vmem:[#allocation2 + $0x50] sm:$0xff] %vm29_vm0, %v2833_v0 }
   0xd   :  { %v2549_v4 = vpack.i.bf16 %v2921_v3, %v120_v2  ;;  %42 = vst.msk [vmem:[#allocation2 + $0x58] sm:$0x3] %vm31_vm1, %v2833_v0  ;;  %v137_v6 = vld [vmem:[#allocation2 + $0x12] sm:$0xff]  ;;  %v79_v2 = vld [vmem:[%s4365_s0 + $0x40] sm:$0xff] }
   0xe   :  { %43 = vst.msk [vmem:[#allocation2 + $0x60] sm:$0xff] %vm29_vm0, %v2833_v0  ;;  %v2554_v7 = vpack.i.bf16 %v137_v6, %v136_v5  ;;  %v3002_v12 = vld [vmem:[#allocation2 + $0x10] sm:$0xff] }
   0xf   :  { %2550 = vrot.lane.b32.xlu0 %v2549_v4, %s2834_s29  ;;  %44 = vst.msk [vmem:[#allocation2 + $0x68] sm:$0x3] %vm31_vm1, %v2833_v0 }
  0x10   :  { %45 = vst.msk [vmem:[#allocation2 + $0x70] sm:$0xff] %vm29_vm0, %v2833_v0 }
  0x11   :  { %46 = vst.msk [vmem:[#allocation2 + $0x78] sm:$0x3] %vm31_vm1, %v2833_v0 }
  0x12   :  { %47 = vst.msk [vmem:[#allocation2 + $0x80] sm:$0xff] %vm29_vm0, %v2833_v0 }
  0x13   :  { %48 = vst.msk [vmem:[#allocation2 + $0x88] sm:$0x3] %vm31_vm1, %v2833_v0 }
  0x14   :  { %49 = vst.msk [vmem:[#allocation2 + $0x90] sm:$0xff] %vm29_vm0, %v2833_v0 }
  0x15   :  { %50 = vst.msk [vmem:[#allocation2 + $0x98] sm:$0x3] %vm31_vm1, %v2833_v0 }
  0x16   :  { %51 = vst.msk [vmem:[#allocation2 + $0xa0] sm:$0xff] %vm29_vm0, %v2833_v0 }
  0x17   :  { %52 = vst.msk [vmem:[#allocation2 + $0xa8] sm:$0x3] %vm31_vm1, %v2833_v0  ;;  %2555 = vrot.lane.b32.xlu0 %v2554_v7, %s2835_s30 }
  0x18   :  { %53 = vst.msk [vmem:[#allocation2 + $0xb0] sm:$0xff] %vm29_vm0, %v2833_v0 }
  0x19   :  { %54 = vst.msk [vmem:[#allocation2 + $0xb8] sm:$0x3] %vm31_vm1, %v2833_v0 }
  0x1a   :  { %55 = vst.msk [vmem:[#allocation2 + $0xc0] sm:$0xff] %vm29_vm0, %v2833_v0 }
  0x1b   :  { %56 = vst.msk [vmem:[#allocation2 + $0xc8] sm:$0x3] %vm31_vm1, %v2833_v0 }
  0x1c   :  { %57 = vst.msk [vmem:[#allocation2 + $0xd0] sm:$0xff] %vm29_vm0, %v2833_v0 }
  0x1d   :  { %58 = vst.msk [vmem:[#allocation2 + $0xd8] sm:$0x3] %vm31_vm1, %v2833_v0 }
  0x1e   :  { %59 = vst.msk [vmem:[#allocation2 + $0xe0] sm:$0xff] %vm29_vm0, %v2833_v0 }
  0x1f   :  { %60 = vst.msk [vmem:[#allocation2 + $0xe8] sm:$0x3] %vm31_vm1, %v2833_v0 }
  0x20   :  { %61 = vst.msk [vmem:[#allocation2 + $0xf0] sm:$0xff] %vm29_vm0, %v2833_v0 }
  0x21   :  { %62 = vst.msk [vmem:[#allocation2 + $0xf8] sm:$0x3] %vm31_vm1, %v2833_v0 }
  0x22   :  { %63 = vst.msk [vmem:[#allocation2 + $0x100] sm:$0xff] %vm29_vm0, %v2833_v0 }
  0x23   :  { %64 = vst.msk [vmem:[#allocation2 + $0x108] sm:$0x3] %vm31_vm1, %v2833_v0 }
  0x24   :  { %65 = vst.msk [vmem:[#allocation2 + $0x110] sm:$0xff] %vm29_vm0, %v2833_v0 }
  0x25   :  { %66 = vst.msk [vmem:[#allocation2 + $0x118] sm:$0x3] %vm31_vm1, %v2833_v0 }
  0x26   :  { %67 = vst.msk [vmem:[#allocation2 + $0x120] sm:$0xff] %vm29_vm0, %v2833_v0 }
  0x27   :  { %68 = vst.msk [vmem:[#allocation2 + $0x128] sm:$0x3] %vm31_vm1, %v2833_v0 }
  0x28   :  { %69 = vst.msk [vmem:[#allocation2 + $0x130] sm:$0xff] %vm29_vm0, %v2833_v0 }
  0x29   :  { %70 = vst.msk [vmem:[#allocation2 + $0x138] sm:$0x3] %vm31_vm1, %v2833_v0  ;;  %vm2010_vm1 = vcmask 457728  }
  0x2a   :  { %89 = vst.msk [vmem:[#allocation2 + $0x21] sm:$0xff] %vm29_vm0, %v72_v8 }
  0x2b   :  { %90 = vst.msk [vmem:[#allocation2 + $0x31] sm:$0xff] %vm29_vm0, %v73_v9  ;;  %v80_v9 = vld [vmem:[%s4365_s0 + $0x48] sm:$0xff] }
  0x2c   :  { %91 = vst.msk [vmem:[#allocation2 + $0x41] sm:$0xff] %vm29_vm0, %v74_v10  ;;  %v85_v10 = vld [vmem:[%s4365_s0 + $0x70] sm:$0xff] }
  0x2d   :  { %92 = vst.msk [vmem:[#allocation2 + $0x51] sm:$0xff] %vm29_vm0, %v75_v11  ;;  %v830_v11 = vld [vmem:[%s4366_s1 + $0x78] sm:$0xff] }
  0x2e   :  { %93 = vst.msk [vmem:[#allocation2 + $0x61] sm:$0xff] %vm29_vm0, %v76_v19  ;;  %881 = vmatpush.msra.mxu0 %v830_v11  ;;  %2505 = vmatpush.msra.mxu3 %v830_v11 }
  0x2f   :  { %94 = vst.msk [vmem:[#allocation2 + $0x71] sm:$0xff] %vm29_vm0, %v77_v26  ;;  %v144_v26 = vld [vmem:[#allocation2 + $0xa2] sm:$0xff] }
  0x30   :  { %98 = vst.msk [vmem:[#allocation2 + $0xd1] sm:$0xff] %vm29_vm0, %v81_v30  ;;  %v826_v30 = vld [vmem:[%s4366_s1 + $0x58] sm:$0xff] }
  0x31   :  { %v3004_v13 = vld [vmem:[#allocation2 + $0x20] sm:$0xff]  ;;  %99 = vst.msk [vmem:[#allocation2 + $0xe1] sm:$0xff] %vm29_vm0, %v82_v37 }
  0x32   :  { %v3006_v14 = vld [vmem:[#allocation2 + $0x22] sm:$0xff]  ;;  %v2559_v15 = vpack.i.bf16 %v3004_v13, %v3002_v12  ;;  %v218_v17 = vld [vmem:[#allocation2 + $0x31] sm:$0xff]  ;;  %95 = vst.msk [vmem:[#allocation2 + $0x81] sm:$0xff] %vm29_vm0, %v78_v42 }
  0x33   :  { %v169_v16 = vld [vmem:[#allocation2 + $0x21] sm:$0xff]  ;;  %v2569_v18 = vpack.i.bf16 %v3006_v14, %v137_v6  ;;  %v3018_v21 = vld [vmem:[#allocation2 + $0x30] sm:$0xff]  ;;  %100 = vst.msk [vmem:[#allocation2 + $0xf1] sm:$0xff] %vm29_vm0, %v83_v44 }
  0x34   :  { %v2579_v20 = vpack.i.bf16 %v218_v17, %v169_v16  ;;  %2560 = vrot.lane.b32.xlu1 %v2559_v15, %s2836_s19  ;;  %v3020_v22 = vld [vmem:[#allocation2 + $0x40] sm:$0xff]  ;;  %v2564_v23 = vpack.i.bf16 %v169_v16, %v2921_v3  ;;  %v2574_v24 = vpack.i.bf16 %v3018_v21, %v3004_v13  ;;  %v3034_v27 = vld [vmem:[#allocation2 + $0x32] sm:$0xff]  ;;  %101 = vst.msk [vmem:[#allocation2 + $0x101] sm:$0xff] %vm29_vm0, %v84_v56  ;;  %v832_v16 = vld [vmem:[%s4366_s1 + $0x88] sm:$0xff] }
  0x35   :  { %2570 = vrot.lane.b32.xlu2 %v2569_v18, %s2837_s20  ;;  %v2594_v25 = vpack.i.bf16 %v3020_v22, %v3018_v21  ;;  %v3036_v28 = vld [vmem:[#allocation2 + $0x50] sm:$0xff]  ;;  %v2589_v29 = vpack.i.bf16 %v3034_v27, %v3006_v14  ;;  %v171_v32 = vld [vmem:[#allocation2 + $0x41] sm:$0xff]  ;;  %96 = vst.msk [vmem:[#allocation2 + $0xb1] sm:$0xff] %vm29_vm0, %v79_v2  ;;  %960 = vmatpush.msra.mxu1 %v832_v16 }
  0x36   :  { %2580 = vrot.lane.b32.xlu0 %v2579_v20, %s2838_s21  ;;  %v2609_v31 = vpack.i.bf16 %v3036_v28, %v3020_v22  ;;  %v3049_v33 = vld [vmem:[#allocation2 + $0x42] sm:$0xff]  ;;  %v3051_v34 = vld [vmem:[#allocation2 + $0x52] sm:$0xff]  ;;  %v2599_v35 = vpack.i.bf16 %v171_v32, %v218_v17  ;;  %97 = vst.msk [vmem:[#allocation2 + $0xc1] sm:$0xff] %vm29_vm0, %v80_v9 }
  0x37   :  { %v2604_v36 = vpack.i.bf16 %v3049_v33, %v3034_v27  ;;  %v2624_v38 = vpack.i.bf16 %v3051_v34, %v3049_v33  ;;  %v220_v39 = vld [vmem:[#allocation2 + $0x51] sm:$0xff]  ;;  %v3064_v40 = vld [vmem:[#allocation2 + $0x62] sm:$0xff]  ;;  %102 = vst.msk [vmem:[#allocation2 + $0x111] sm:$0xff] %vm29_vm0, %v85_v10 }
  0x38   :  { %v2614_v41 = vpack.i.bf16 %v220_v39, %v171_v32  ;;  %v2639_v43 = vpack.i.bf16 %v3064_v40, %v3051_v34  ;;  %v3078_v45 = vld [vmem:[#allocation2 + $0x60] sm:$0xff]  ;;  %v3081_v47 = vld [vmem:[#allocation2 + $0xd1] sm:$0xff]  ;;  %1197 = vst.msk [vmem:[#allocation3] sm:$0xff] %vm1011_vm8, %v2833_v0 }
  0x39   :  { %v126_v46 = vld [vmem:[#allocation2 + $0x61] sm:$0xff]  ;;  %v2629_v48 = vpack.i.bf16 %v3078_v45, %v3036_v28  ;;  %v3088_v51 = vld [vmem:[#allocation2 + $0x70] sm:$0xff]  ;;  %1200 = vst.msk [vmem:[#allocation3 + $0x10] sm:$0xff] %vm1011_vm8, %v2833_v0 }
  0x3a   :  { %v2634_v49 = vpack.i.bf16 %v126_v46, %v220_v39  ;;  %v2654_v50 = vpack.i.bf16 %v3081_v47, %v126_v46  ;;  %v174_v52 = vld [vmem:[#allocation2 + $0x71] sm:$0xff]  ;;  %v3091_v53 = vld [vmem:[#allocation2 + $0xe1] sm:$0xff]  ;;  %v2644_v54 = vpack.i.bf16 %v3088_v51, %v3078_v45  ;;  %1202 = vst.msk [vmem:[#allocation3 + $0x20] sm:$0xff] %vm1011_vm8, %v2833_v0 }
  0x3b   :  { %v2649_v55 = vpack.i.bf16 %v174_v52, %v126_v46  ;;  %v2669_v57 = vpack.i.bf16 %v3091_v53, %v174_v52  ;;  %v3102_v58 = vld [vmem:[#allocation2 + $0xd2] sm:$0xff]  ;;  %v3105_v59 = vld [vmem:[#allocation2 + $0xe0] sm:$0xff]  ;;  %1204 = vst.msk [vmem:[#allocation3 + $0x30] sm:$0xff] %vm1011_vm8, %v2833_v0 }
  0x3c   :  { %2565 = vrot.lane.b32.xlu1 %v2564_v23, %s2839_s24  ;;  %v223_v60 = vld [vmem:[#allocation2 + $0x81] sm:$0xff]  ;;  %v3107_v61 = vld [vmem:[#allocation2 + $0xf1] sm:$0xff]  ;;  %v2659_v62 = vpack.i.bf16 %v3102_v58, %v3064_v40  ;;  %v2664_v63 = vpack.i.bf16 %v3105_v59, %v3088_v51  ;;  %1206 = vst.msk [vmem:[#allocation3 + $0x40] sm:$0xff] %vm1011_vm8, %v2833_v0 }
  0x3d   :  { %2575 = vrot.lane.b32.xlu2 %v2574_v24, %s2840_s25  ;;  %v2684_v1 = vpack.i.bf16 %v3107_v61, %v223_v60  ;;  %v3120_v3 = vld [vmem:[#allocation2 + $0x72] sm:$0xff]  ;;  %v3122_v4 = vld [vmem:[#allocation2 + $0xe2] sm:$0xff]  ;;  %1208 = vst.msk [vmem:[#allocation3 + $0x50] sm:$0xff] %vm1011_vm8, %v2833_v0 }
  0x3e   :  { %2595 = vrot.lane.b32.xlu0 %v2594_v25, %s2836_s19  ;;  %v159_v5 = vld [vmem:[#allocation2 + $0x80] sm:$0xff]  ;;  %v3125_v6 = vld [vmem:[#allocation2 + $0xf0] sm:$0xff]  ;;  %v2674_v7 = vpack.i.bf16 %v3122_v4, %v3120_v3  ;;  %v818_v60 = vld [vmem:[%s4366_s1 + $0x18] sm:$0xff]  ;;  %1210 = vst.msk [vmem:[#allocation3 + $0x60] sm:$0xff] %vm1011_vm8, %v2833_v0 }
  0x3f   :  { %v2699_v8 = vpack.i.bf16 %v3125_v6, %v159_v5  ;;  %v829_v15 = vld [vmem:[%s4366_s1 + $0x70] sm:$0xff]  ;;  %v3150_v18 = vld [vmem:[#allocation2 + $0x100] sm:$0xff]  ;;  %1212 = vst.msk [vmem:[#allocation3 + $0x70] sm:$0xff] %vm1011_vm8, %v2833_v0 }
  0x40   :  { %v208_v17 = vld [vmem:[#allocation2 + $0x90] sm:$0xff]  ;;  %882 = vmatpush.msra.mxu0 %v829_v15  ;;  %2506 = vmatpush.msra.mxu3 %v829_v15  ;;  %v831_v23 = vld [vmem:[%s4366_s1 + $0x80] sm:$0xff]  ;;  %1214 = vst.msk [vmem:[#allocation3 + $0x80] sm:$0xff] %vm1011_vm8, %v2833_v0 }
  0x41   :  { %v2714_v19 = vpack.i.bf16 %v3150_v18, %v208_v17  ;;  %v3162_v24 = vld [vmem:[#allocation2 + $0x82] sm:$0xff]  ;;  %961 = vmatpush.msra.mxu1 %v831_v23  ;;  %v825_v32 = vld [vmem:[%s4366_s1 + $0x50] sm:$0xff]  ;;  %1216 = vst.msk [vmem:[#allocation3 + $0x90] sm:$0xff] %vm1011_vm8, %v2833_v0 }
  0x42   :  { %v827_v25 = vld [vmem:[%s4366_s1 + $0x60] sm:$0xff]  ;;  %2473 = vmatmul.msk.f32.vlgmr.msra.gmra.mxu1 %vm29_vm0, %v3006_v14  ;;  %v824_v14 = vld [vmem:[%s4366_s1 + $0x48] sm:$0xff]  ;;  %v192_v39 = vld [vmem:[#allocation2 + $0xb2] sm:$0xff]  ;;  %1218 = vst.msk [vmem:[#allocation3 + $0xa0] sm:$0xff] %vm1011_vm8, %v2833_v0 }
  0x43   :  { %v229_v37 = vld [vmem:[#allocation2 + $0x101] sm:$0xff]  ;;  %v3210_v52 = vld [vmem:[#allocation2 + $0xb0] sm:$0xff]  ;;  %1220 = vst.msk [vmem:[#allocation3 + $0xb0] sm:$0xff] %vm1011_vm8, %v2833_v0 }
  0x44   :  { %2585 = vrot.lane.b32.xlu1 %v2579_v20, %s2834_s29  ;;  %v828_v20 = vld [vmem:[%s4366_s1 + $0x68] sm:$0xff]  ;;  %v823_v42 = vld [vmem:[%s4366_s1 + $0x40] sm:$0xff]  ;;  %v3235_v2 = vld [vmem:[#allocation2 + $0x110] sm:$0xff]  ;;  %1222 = vst.msk [vmem:[#allocation3 + $0xc0] sm:$0xff] %vm1011_vm8, %v2833_v0 }
  0x45   :  { %2590 = vrot.lane.b32.xlu2 %v2589_v29, %s2835_s30  ;;  %883 = vmatpush.msra.mxu0 %v828_v20  ;;  %v3167_v29 = vld [vmem:[#allocation2 + $0xf2] sm:$0xff]  ;;  %v819_v56 = vld [vmem:[%s4366_s1 + $0x20] sm:$0xff]  ;;  %1224 = vst.msk [vmem:[#allocation3 + $0xd0] sm:$0xff] %vm1011_vm8, %v2833_v0 }
  0x46   :  { %2610 = vrot.lane.b32.xlu0 %v2609_v31, %s2840_s25  ;;  %2507 = vmatpush.msra.mxu3 %v828_v20  ;;  %v2709_v31 = vpack.i.bf16 %v3167_v29, %v3162_v24  ;;  %v177_v5 = vld [vmem:[#allocation2 + $0xc1] sm:$0xff]  ;;  %v3265_v20 = vld [vmem:[#allocation2 + $0x112] sm:$0xff]  ;;  %1226 = vst.msk [vmem:[#allocation3 + $0xe0] sm:$0xff] %vm1011_vm8, %v2833_v0 }
  0x47   :  { %884 = vmatpush.msra.mxu0 %v827_v25  ;;  %v815_v9 = vld [vmem:[%s4366_s1] sm:$0xff]  ;;  %1228 = vst.msk [vmem:[#allocation3 + $0xf0] sm:$0xff] %vm1011_vm8, %v2833_v0 }
  0x48   :  { %2508 = vmatpush.msra.mxu3 %v827_v25  ;;  %1230 = vst.msk [vmem:[#allocation3 + $0x100] sm:$0xff] %vm1011_vm8, %v2833_v0 }
  0x49   :  { %885 = vmatpush.msra.mxu0 %v826_v30  ;;  %1232 = vst.msk [vmem:[#allocation3 + $0x110] sm:$0xff] %vm1011_vm8, %v2833_v0 }
  0x4a   :  { %2509 = vmatpush.msra.mxu3 %v826_v30  ;;  %2474 = vmatmul.msk.f32.gmra.mxu1 %vm29_vm0, %v3034_v27  ;;  %v821_v27 = vld [vmem:[%s4366_s1 + $0x30] sm:$0xff]  ;;  %1234 = vst.msk [vmem:[#allocation3 + $0x120] sm:$0xff] %vm1011_vm8, %v2833_v0 }
  0x4b   :  { %886 = vmatpush.msra.mxu0 %v825_v32  ;;  %1236 = vst.msk [vmem:[#allocation3 + $0x130] sm:$0xff] %vm1011_vm8, %v2833_v0 }
  0x4c   :  { %2600 = vrot.lane.b32.xlu1 %v2599_v35, %s2839_s24  ;;  %v2729_v35 = vpack.i.bf16 %v3167_v29, %v144_v26  ;;  %2510 = vmatpush.msra.mxu3 %v825_v32  ;;  %v3269_v26 = vld [vmem:[#allocation2 + $0xd0] sm:$0xff]  ;;  %1235 = vst.msk [vmem:[#allocation3 + $0x128] sm:$0x3] %vm1198_vm10, %v2833_v0 }
  0x4d   :  { %2605 = vrot.lane.b32.xlu2 %v2604_v36, %s2837_s20  ;;  %v224_v36 = vld [vmem:[#allocation2 + $0x91] sm:$0xff]  ;;  %887 = vmatpush.msra.mxu0 %v824_v14  ;;  %1199 = vst.msk [vmem:[#allocation3 + $0x8] sm:$0x3] %vm1198_vm10, %v2833_v0 }
  0x4e   :  { %2625 = vrot.lane.b32.xlu0 %v2624_v38, %s2835_s30  ;;  %v128_v38 = vld [vmem:[#allocation2 + $0xa1] sm:$0xff]  ;;  %v2719_v44 = vpack.i.bf16 %v229_v37, %v224_v36  ;;  %2511 = vmatpush.msra.mxu3 %v824_v14  ;;  %1201 = vst.msk [vmem:[#allocation3 + $0x18] sm:$0x3] %vm1198_vm10, %v2833_v0 }
  0x4f   :  { %v2724_v46 = vpack.i.bf16 %v3107_v61, %v128_v38  ;;  %888 = vmatpush.msra.mxu0 %v823_v42  ;;  %1203 = vst.msk [vmem:[#allocation3 + $0x28] sm:$0x3] %vm1198_vm10, %v2833_v0 }
  0x50   :  { %2512 = vmatpush.msra.mxu3 %v823_v42  ;;  %1205 = vst.msk [vmem:[#allocation3 + $0x38] sm:$0x3] %vm1198_vm10, %v2833_v0 }
  0x51   :  { %1207 = vst.msk [vmem:[#allocation3 + $0x48] sm:$0x3] %vm1198_vm10, %v2833_v0 }
  0x52   :  { %2475 = vmatmul.msk.f32.gmra.mxu1 %vm29_vm0, %v3049_v33  ;;  %1209 = vst.msk [vmem:[#allocation3 + $0x58] sm:$0x3] %vm1198_vm10, %v2833_v0 }
  0x53   :  { %1211 = vst.msk [vmem:[#allocation3 + $0x68] sm:$0x3] %vm1198_vm10, %v2833_v0 }
  0x54   :  { %2615 = vrot.lane.b32.xlu1 %v2614_v41, %s2838_s21  ;;  %1213 = vst.msk [vmem:[#allocation3 + $0x78] sm:$0x3] %vm1198_vm10, %v2833_v0 }
  0x55   :  { %2620 = vrot.lane.b32.xlu2 %v2614_v41, %s2834_s29  ;;  %v3186_v41 = vld [vmem:[#allocation2 + $0x102] sm:$0xff]  ;;  %1215 = vst.msk [vmem:[#allocation3 + $0x88] sm:$0x3] %vm1198_vm10, %v2833_v0 }
  0x56   :  { %2640 = vrot.lane.b32.xlu0 %v2639_v43, %s2837_s20  ;;  %v822_v43 = vld [vmem:[%s4366_s1 + $0x38] sm:$0xff]  ;;  %1217 = vst.msk [vmem:[#allocation3 + $0x98] sm:$0x3] %vm1198_vm10, %v2833_v0 }
  0x57   :  { %889 = vmatpush.msra.mxu0 %v822_v43  ;;  %2513 = vmatpush.msra.mxu3 %v822_v43  ;;  %1219 = vst.msk [vmem:[#allocation3 + $0xa8] sm:$0x3] %vm1198_vm10, %v2833_v0 }
  0x58   :  { %1221 = vst.msk [vmem:[#allocation3 + $0xb8] sm:$0x3] %vm1198_vm10, %v2833_v0 }
  0x59   :  { %890 = vmatpush.msra.mxu0 %v821_v27  ;;  %2514 = vmatpush.msra.mxu3 %v821_v27  ;;  %1223 = vst.msk [vmem:[#allocation3 + $0xc8] sm:$0x3] %vm1198_vm10, %v2833_v0 }
  0x5a   :  { %2476 = vmatmul.msk.f32.gmra.mxu1 %vm29_vm0, %v3051_v34  ;;  %1225 = vst.msk [vmem:[#allocation3 + $0xd8] sm:$0x3] %vm1198_vm10, %v2833_v0 }
  0x5b   :  { %1227 = vst.msk [vmem:[#allocation3 + $0xe8] sm:$0x3] %vm1198_vm10, %v2833_v0 }
  0x5c   :  { %2630 = vrot.lane.b32.xlu1 %v2629_v48, %s2836_s19  ;;  %v2744_v48 = vpack.i.bf16 %v3186_v41, %v192_v39  ;;  %1229 = vst.msk [vmem:[#allocation3 + $0xf8] sm:$0x3] %vm1198_vm10, %v2833_v0 }
  0x5d   :  { %2635 = vrot.lane.b32.xlu2 %v2634_v49, %s2839_s24  ;;  %v86_v49 = vld [vmem:[%s4365_s0 + $0x78] sm:$0xff]  ;;  %1231 = vst.msk [vmem:[#allocation3 + $0x108] sm:$0x3] %vm1198_vm10, %v2833_v0 }
  0x5e   :  { %2655 = vrot.lane.b32.xlu0 %v2654_v50, %s2834_s29  ;;  %103 = vst.msk [vmem:[#allocation2 + $0x121] sm:$0xff] %vm29_vm0, %v86_v49  ;;  %v820_v50 = vld [vmem:[%s4366_s1 + $0x28] sm:$0xff] }
  0x5f   :  { %891 = vmatpush.msra.mxu0 %v820_v50  ;;  %2515 = vmatpush.msra.mxu3 %v820_v50  ;;  %1233 = vst.msk [vmem:[#allocation3 + $0x118] sm:$0x3] %vm1198_vm10, %v2833_v0 }
  0x60   :  { %1237 = vst.msk [vmem:[#allocation3 + $0x138] sm:$0x3] %vm1198_vm10, %v2833_v0  ;;  %v1127_v0 = vld [vmem:[%s4367_s2] sm:$0x1]  ;;  %s2844_s2 = smov 40  }
  0x61   :  { %892 = vmatpush.msra.mxu0 %v819_v56  ;;  %2516 = vmatpush.msra.mxu3 %v819_v56 }
  0x62   :  { %2477 = vmatmul.msk.f32.gmra.mxu1 %vm29_vm0, %v3064_v40 }
  0x63   :  { %893 = vmatpush.msra.mxu0 %v818_v60  ;;  %2517 = vmatpush.msra.mxu3 %v818_v60 }
  0x64   :  { %2645 = vrot.lane.b32.xlu1 %v2644_v54, %s2840_s25  ;;  %v129_v54 = vld [vmem:[#allocation2 + $0xb1] sm:$0xff] }
  0x65   :  { %2650 = vrot.lane.b32.xlu2 %v2649_v55, %s2838_s21  ;;  %v2759_v61 = vpack.i.bf16 %v229_v37, %v129_v54  ;;  %v231_v15 = vld [vmem:[#allocation2 + $0x121] sm:$0xff] }
  0x66   :  { %2670 = vrot.lane.b32.xlu0 %v2669_v57, %s2839_s24  ;;  %v3259_v17 = vpack.i.bf16 %v231_v15, %v3081_v47  ;;  %v167_v40 = vld [vmem:[#allocation2 + $0x120] sm:$0xff] }
  0x67   :  { %v104_v47 = vld [vmem:[#allocation2] sm:$0xff]  ;;  %v2804_v14 = vpack.i.bf16 %v167_v40, %v3269_v26 }
  0x6a   :  { %2478 = vmatmul.msk.f32.gmra.mxu1 %vm29_vm0, %v3120_v3 }
  0x6c   :  { %2660 = vrot.lane.b32.xlu1 %v2659_v62, %s2835_s30  ;;  %v817_v62 = vld [vmem:[%s4366_s1 + $0x10] sm:$0xff] }
  0x6d   :  { %2665 = vrot.lane.b32.xlu2 %v2664_v63, %s2836_s19  ;;  %v816_v63 = vld [vmem:[%s4366_s1 + $0x8] sm:$0xff]  ;;  %894 = vmatpush.msra.mxu0 %v817_v62  ;;  %s2842_s1 = smov 8  }
  0x6e   :  { %2685 = vrot.lane.b32.xlu0 %v2684_v1, %s2838_s21  ;;  %2518 = vmatpush.msra.mxu3 %v817_v62 }
  0x6f   :  { %895 = vmatpush.msra.mxu0 %v816_v63 }
  0x70   :  { %2519 = vmatpush.msra.mxu3 %v816_v63 }
  0x71   :  { %896 = vmatpush.msra.mxu0 %v815_v9 }
  0x72   :  { %2520 = vmatpush.msra.mxu3 %v815_v9  ;;  %2479 = vmatmul.msk.f32.gmra.mxu1 %vm29_vm0, %v3162_v24  ;;  %v3306_v9 = vld [vmem:[#allocation2 + $0x122] sm:$0xff] }
  0x74   :  { %2675 = vrot.lane.b32.xlu1 %v2674_v7, %s2837_s20 }
  0x75   :  { %2680 = vrot.lane.b32.xlu2 %v2699_v8, %s2840_s25 }
  0x76   :  { %2700 = vrot.lane.b32.xlu0 %v2699_v8, %s2836_s19 }
  0x7c   :  { %2690 = vrot.lane.b32.xlu1 %v2669_v57, %s2834_s29  ;;  %v2734_v57 = vpack.i.bf16 %v3150_v18, %v3210_v52 }
  0x7d   :  { %2695 = vrot.lane.b32.xlu2 %v2674_v7, %s2835_s30  ;;  %v182_v7 = vld [vmem:[#allocation2 + $0x111] sm:$0xff] }
  0x7e   :  { %2715 = vrot.lane.b32.xlu0 %v2714_v19, %s2840_s25  ;;  %v3247_v11 = vpack.i.bf16 %v182_v7, %v177_v5  ;;  %v3263_v19 = vld [vmem:[#allocation2 + $0xc2] sm:$0xff] }
  0x81   :  { %v2551_v33 = vpop.permute.xlu0 %2550 }
  0x82   :  { %v2552_v23 = vunpack.i.l.bf16 %v2551_v33  ;;  %v2553_v36 = vunpack.i.h.bf16 %v2551_v33 }
  0x84   :  { %2705 = vrot.lane.b32.xlu1 %v2684_v1, %s2839_s24  ;;  %v3233_v1 = vld [vmem:[#allocation2 + $0xc0] sm:$0xff]  ;;  %v697_v37 = vsel %vm29_vm0, %v104_v47, %v2552_v23  ;;  %v698_v3 = vsel %vm29_vm0, %v3002_v12, %v2553_v36  ;;  %v240_v23 = vld [vmem:[#allocation2 + $0x92] sm:$0xff] }
  0x85   :  { %2710 = vrot.lane.b32.xlu2 %v2709_v31, %s2837_s20  ;;  %v2749_v10 = vpack.i.bf16 %v3235_v2, %v3233_v1  ;;  %2480 = vmatmul.msk.f32.gmra.mxu1 %vm29_vm0, %v240_v23 }
  0x86   :  { %2730 = vrot.lane.b32.xlu0 %v2729_v35, %s2835_s30  ;;  %v2779_v35 = vpack.i.bf16 %v3265_v20, %v3263_v19 }
  0x89   :  { %v2556_v34 = vpop.permute.xlu0 %2555 }
  0x8a   :  { %v2557_v31 = vunpack.i.l.bf16 %v2556_v34  ;;  %v2558_v38 = vunpack.i.h.bf16 %v2556_v34 }
  0x8c   :  { %2720 = vrot.lane.b32.xlu1 %v2719_v44, %s2838_s21  ;;  %v714_v39 = vsel %vm713_vm2, %v697_v37, %v2557_v31  ;;  %v715_v49 = vsel %vm713_vm2, %v698_v3, %v2558_v38 }
  0x8d   :  { %2725 = vrot.lane.b32.xlu2 %v2724_v46, %s2834_s29  ;;  %v216_v46 = vld [vmem:[#allocation2 + $0x130] sm:$0xff]  ;;  %2481 = vmatmul.msk.f32.gmra.mxu1 %vm29_vm0, %v3263_v19 }
  0x8e   :  { %2745 = vrot.lane.b32.xlu0 %v2744_v48, %s2837_s20  ;;  %v2819_v62 = vpack.i.bf16 %v216_v46, %v3105_v59 }
  0x8f   :  { %v3213_v55 = vpop.permute.xlu2 %2570 }
  0x90   :  { %v2572_v12 = vunpack.i.l.bf16 %v3213_v55 }
  0x94   :  { %2735 = vrot.lane.b32.xlu1 %v2734_v57, %s2836_s19 }
  0x95   :  { %2740 = vrot.lane.b32.xlu2 %v2759_v61, %s2839_s24  ;;  %2482 = vmatmul.msk.f32.gmra.mxu1 %vm29_vm0, %v3102_v58 }
  0x96   :  { %2760 = vrot.lane.b32.xlu0 %v2759_v61, %s2834_s29 }
  0x97   :  { %v3238_v8 = vpop.permute.xlu2 %2575 }
  0x98   :  { %v2577_v50 = vunpack.i.l.bf16 %v3238_v8 }
  0x9c   :  { %2750 = vrot.lane.b32.xlu1 %v2749_v10, %s2840_s25 }
  0x9d   :  { %2755 = vrot.lane.b32.xlu2 %v3247_v11, %s2838_s21  ;;  %2483 = vmatmul.msk.f32.gmra.mxu1 %vm29_vm0, %v3122_v4 }
  0x9e   :  { %2775 = vrot.lane.b32.xlu0 %v3247_v11, %s2839_s24 }
  0x9f   :  { %v3254_v16 = vpop.permute.xlu2 %2590 }
  0xa0   :  { %v2593_v46 = vunpack.i.h.bf16 %v3254_v16 }
  0xa4   :  { %2765 = vrot.lane.b32.xlu1 %v2744_v48, %s2835_s30 }
  0xa5   :  { %2770 = vrot.lane.b32.xlu2 %v2749_v10, %s2836_s19  ;;  %v2573_v10 = vunpack.i.h.bf16 %v3213_v55  ;;  %2484 = vmatmul.msk.f32.gmra.mxu1 %vm29_vm0, %v3167_v29 }
  0xa6   :  { %2790 = vrot.lane.b32.xlu0 %v3259_v17, %s2838_s21  ;;  %v2561_v25 = vpop.permute.xlu1 %2560 }
  0xa7   :  { %v3271_v30 = vpop.permute.xlu2 %2605  ;;  %v2562_v42 = vunpack.i.l.bf16 %v2561_v25  ;;  %v2563_v56 = vunpack.i.h.bf16 %v2561_v25  ;;  %v2578_v25 = vunpack.i.h.bf16 %v3238_v8 }
  0xa8   :  { %v2581_v32 = vpop.permute.xlu0 %2580 }
  0xa9   :  { %v731_v44 = vsel %vm730_vm3, %v714_v39, %v2562_v42  ;;  %v2582_v57 = vunpack.i.l.bf16 %v2581_v32  ;;  %v732_v63 = vsel %vm730_vm3, %v715_v49, %v2563_v56  ;;  %v2583_v47 = vunpack.i.h.bf16 %v2581_v32 }
  0xac   :  { %2780 = vrot.lane.b32.xlu1 %v2779_v35, %s2837_s20 }
  0xad   :  { %2785 = vrot.lane.b32.xlu2 %v2804_v14, %s2840_s25  ;;  %2485 = vmatmul.msk.f32.gmra.mxu1 %vm29_vm0, %v3186_v41 }
  0xae   :  { %2805 = vrot.lane.b32.xlu0 %v2804_v14, %s2836_s19  ;;  %v2566_v43 = vpop.permute.xlu1 %2565  ;;  %v2592_v14 = vunpack.i.l.bf16 %v3254_v16 }
  0xaf   :  { %v3286_v48 = vpop.permute.xlu2 %2620  ;;  %v2567_v27 = vunpack.i.l.bf16 %v2566_v43  ;;  %v2568_v60 = vunpack.i.h.bf16 %v2566_v43 }
  0xb0   :  { %v3290_v54 = vpop.permute.xlu0 %2595 }
  0xb1   :  { %v748_v61 = vsel %vm747_vm4, %v731_v44, %v2567_v27  ;;  %v749_v7 = vsel %vm747_vm4, %v732_v63, %v2568_v60  ;;  %v2597_v36 = vunpack.i.l.bf16 %v3290_v54  ;;  %v232_v44 = vld [vmem:[#allocation2 + $0x131] sm:$0xff]  ;;  %v2598_v56 = vunpack.i.h.bf16 %v3290_v54 }
  0xb2   :  { %v765_v33 = vsel %vm764_vm5, %v748_v61, %v2572_v12  ;;  %v766_v31 = vsel %vm764_vm5, %v749_v7, %v2573_v10  ;;  %v2608_v54 = vunpack.i.h.bf16 %v3271_v30 }
  0xb3   :  { %v782_v5 = vsel %vm781_vm6, %v765_v33, %v2577_v50  ;;  %v783_v37 = vsel %vm781_vm6, %v766_v31, %v2578_v25  ;;  %v2623_v25 = vunpack.i.h.bf16 %v3286_v48 }
  0xb4   :  { %2795 = vrot.lane.b32.xlu1 %v3247_v11, %s2834_s29  ;;  %v799_v24 = vsel %vm798_vm7, %v782_v5, %v2582_v57  ;;  %v800_v8 = vsel %vm798_vm7, %v783_v37, %v2583_v47 }
  0xb5   :  { %2800 = vrot.lane.b32.xlu2 %v2779_v35, %s2835_s30  ;;  %897 = vmatmul.f32.vlgmr.msra.gmra.mxu0 %v799_v24  ;;  %v2814_v35 = vpack.i.bf16 %v3306_v9, %v3102_v58 }
  0xb6   :  { %2820 = vrot.lane.b32.xlu0 %v2819_v62, %s2840_s25  ;;  %v2586_v34 = vpop.permute.xlu1 %2585  ;;  %2486 = vmatmul.msk.f32.gmra.mxu1 %vm29_vm0, %v3265_v20 }
  0xb7   :  { %v3309_v15 = vpop.permute.xlu2 %2635  ;;  %v2587_v11 = vunpack.i.l.bf16 %v2586_v34  ;;  %v2588_v42 = vunpack.i.h.bf16 %v2586_v34 }
  0xb8   :  { %v2611_v40 = vpop.permute.xlu0 %2610 }
  0xb9   :  { %v699_v55 = vsel %vm29_vm0, %v3004_v13, %v2587_v11  ;;  %v2612_v49 = vunpack.i.l.bf16 %v2611_v40  ;;  %v700_v50 = vsel %vm29_vm0, %v3018_v21, %v2588_v42  ;;  %v2613_v5 = vunpack.i.h.bf16 %v2611_v40 }
  0xba   :  { %v716_v32 = vsel %vm713_vm2, %v699_v55, %v2592_v14  ;;  %v717_v12 = vsel %vm713_vm2, %v700_v50, %v2593_v46 }
  0xbb   :  { %v733_v13 = vsel %vm730_vm3, %v716_v32, %v2597_v36  ;;  %v734_v62 = vsel %vm730_vm3, %v717_v12, %v2598_v56 }
  0xbc   :  { %2810 = vrot.lane.b32.xlu1 %v3259_v17, %s2839_s24  ;;  %v2607_v17 = vunpack.i.l.bf16 %v3271_v30 }
  0xbd   :  { %2815 = vrot.lane.b32.xlu2 %v2814_v35, %s2837_s20  ;;  %900 = vmatmul.f32.gmra.mxu0 %v800_v8  ;;  %s2843_s20 = smov 56  }
  0xbe   :  { %v2601_v38 = vpop.permute.xlu1 %2600  ;;  %2487 = vmatmul.msk.f32.gmra.mxu1 %vm29_vm0, %v3306_v9 }
  0xbf   :  { %v3326_v39 = vpop.permute.xlu2 %2650  ;;  %v2602_v3 = vunpack.i.l.bf16 %v2601_v38  ;;  %v2603_v57 = vunpack.i.h.bf16 %v2601_v38 }
  0xc0   :  { %v2626_v43 = vpop.permute.xlu0 %2625  ;;  %v2652_v4 = vunpack.i.l.bf16 %v3326_v39  ;;  %v2653_v12 = vunpack.i.h.bf16 %v3326_v39 }
  0xc1   :  { %v750_v27 = vsel %vm747_vm4, %v733_v13, %v2602_v3  ;;  %v751_v24 = vsel %vm747_vm4, %v734_v62, %v2603_v57  ;;  %v2627_v7 = vunpack.i.l.bf16 %v2626_v43  ;;  %v2628_v35 = vunpack.i.h.bf16 %v2626_v43 }
  0xc2   :  { %v767_v19 = vsel %vm764_vm5, %v750_v27, %v2607_v17  ;;  %v768_v23 = vsel %vm764_vm5, %v751_v24, %v2608_v54  ;;  %v2638_v13 = vunpack.i.h.bf16 %v3309_v15 }
  0xc3   :  { %v784_v16 = vsel %vm781_vm6, %v767_v19, %v2612_v49  ;;  %v785_v11 = vsel %vm781_vm6, %v768_v23, %v2613_v5 }
  0xc4   :  { %669 = vrot.lane.b32.xlu1 %v3091_v53, %s2838_s21  ;;  %v2622_v53 = vunpack.i.l.bf16 %v3286_v48  ;;  %v702_v48 = vsel %vm29_vm0, %v3036_v28, %v2623_v25 }
  0xc5   :  { %679 = vrot.lane.b32.xlu2 %v232_v44, %s2838_s21  ;;  %v719_v8 = vsel %vm713_vm2, %v702_v48, %v2628_v35 }
  0xc6   :  { %v2616_v60 = vpop.permute.xlu1 %2615  ;;  %v701_v10 = vsel %vm29_vm0, %v3020_v22, %v2622_v53  ;;  %v2637_v22 = vunpack.i.l.bf16 %v3309_v15 }
  0xc7   :  { %v3343_v61 = vpop.permute.xlu2 %2665  ;;  %v2617_v21 = vunpack.i.l.bf16 %v2616_v60  ;;  %v2618_v34 = vunpack.i.h.bf16 %v2616_v60  ;;  %v718_v30 = vsel %vm713_vm2, %v701_v10, %v2627_v7 }
  0xc8   :  { %v2641_v33 = vpop.permute.xlu0 %2640  ;;  %v2668_v53 = vunpack.i.h.bf16 %v3343_v61  ;;  %v2667_v54 = vunpack.i.l.bf16 %v3343_v61 }
  0xc9   :  { %v801_v63 = vsel %vm798_vm7, %v784_v16, %v2617_v21  ;;  %v802_v14 = vsel %vm798_vm7, %v785_v11, %v2618_v34  ;;  %v2642_v36 = vunpack.i.l.bf16 %v2641_v33  ;;  %v2643_v44 = vunpack.i.h.bf16 %v2641_v33 }
  0xca   :  { %903 = vmatmul.f32.gmra.mxu0 %v801_v63 }
  0xce   :  { %v2631_v58 = vpop.permute.xlu1 %2630 }
  0xcf   :  { %v3357_v47 = vpop.permute.xlu2 %2680  ;;  %v2632_v40 = vunpack.i.l.bf16 %v2631_v58  ;;  %v2633_v37 = vunpack.i.h.bf16 %v2631_v58 }
  0xd0   :  { %v2656_v31 = vpop.permute.xlu0 %2655  ;;  %v2683_v41 = vunpack.i.h.bf16 %v3357_v47  ;;  %v2682_v23 = vunpack.i.l.bf16 %v3357_v47 }
  0xd1   :  { %v735_v55 = vsel %vm730_vm3, %v718_v30, %v2632_v40  ;;  %v736_v28 = vsel %vm730_vm3, %v719_v8, %v2633_v37  ;;  %v2658_v27 = vunpack.i.h.bf16 %v2656_v31  ;;  %v2657_v56 = vunpack.i.l.bf16 %v2656_v31 }
  0xd2   :  { %906 = vmatmul.f32.gmra.mxu0 %v802_v14  ;;  %v752_v32 = vsel %vm747_vm4, %v735_v55, %v2637_v22  ;;  %v753_v15 = vsel %vm747_vm4, %v736_v28, %v2638_v13 }
  0xd3   :  { %v769_v42 = vsel %vm764_vm5, %v752_v32, %v2642_v36  ;;  %v770_v19 = vsel %vm764_vm5, %v753_v15, %v2643_v44  ;;  %v708_v29 = vsel %vm29_vm0, %v3269_v26, %v2658_v27  ;;  %v703_v60 = vsel %vm29_vm0, %v3078_v45, %v2657_v56 }
  0xd6   :  { %v2646_v38 = vpop.permute.xlu1 %2645 }
  0xd7   :  { %v2647_v3 = vunpack.i.l.bf16 %v2646_v38  ;;  %v3372_v17 = vpop.permute.xlu2 %2695  ;;  %v2648_v50 = vunpack.i.h.bf16 %v2646_v38 }
  0xd8   :  { %v2671_v43 = vpop.permute.xlu0 %2670  ;;  %v2698_v20 = vunpack.i.h.bf16 %v3372_v17 }
  0xd9   :  { %v786_v46 = vsel %vm781_vm6, %v769_v42, %v2647_v3  ;;  %v787_v21 = vsel %vm781_vm6, %v770_v19, %v2648_v50  ;;  %v2673_v39 = vunpack.i.h.bf16 %v2671_v43  ;;  %v2672_v24 = vunpack.i.l.bf16 %v2671_v43 }
  0xda   :  { %v803_v49 = vsel %vm798_vm7, %v786_v46, %v2652_v4  ;;  %v804_v45 = vsel %vm798_vm7, %v787_v21, %v2653_v12  ;;  %v2697_v4 = vunpack.i.l.bf16 %v3372_v17 }
  0xdb   :  { %909 = vmatmul.f32.gmra.mxu0 %v803_v49 }
  0xde   :  { %v2661_v57 = vpop.permute.xlu1 %2660 }
  0xdf   :  { %v2663_v16 = vunpack.i.h.bf16 %v2661_v57  ;;  %v2662_v62 = vunpack.i.l.bf16 %v2661_v57  ;;  %v2711_v63 = vpop.permute.xlu2 %2710 }
  0xe0   :  { %v2686_v33 = vpop.permute.xlu0 %2685  ;;  %v2713_v15 = vunpack.i.h.bf16 %v2711_v63 }
  0xe1   :  { %v720_v26 = vsel %vm713_vm2, %v703_v60, %v2662_v62  ;;  %v725_v5 = vsel %vm713_vm2, %v708_v29, %v2663_v16  ;;  %v2688_v30 = vunpack.i.h.bf16 %v2686_v33  ;;  %v2687_v40 = vunpack.i.l.bf16 %v2686_v33 }
  0xe2   :  { %v737_v7 = vsel %vm730_vm3, %v720_v26, %v2667_v54  ;;  %v742_v10 = vsel %vm730_vm3, %v725_v5, %v2668_v53  ;;  %v112_v5 = vld [vmem:[#allocation2 + $0xa0] sm:$0xff] }
  0xe3   :  { %912 = vmatmul.f32.gmra.mxu0 %v804_v45  ;;  %v754_v61 = vsel %vm747_vm4, %v737_v7, %v2672_v24  ;;  %v759_v25 = vsel %vm747_vm4, %v742_v10, %v2673_v39 }
  0xe6   :  { %v2676_v34 = vpop.permute.xlu1 %2675 }
  0xe7   :  { %v2678_v58 = vunpack.i.h.bf16 %v2676_v34  ;;  %v2677_v11 = vunpack.i.l.bf16 %v2676_v34  ;;  %v2726_v36 = vpop.permute.xlu2 %2725 }
  0xe8   :  { %v2701_v31 = vpop.permute.xlu0 %2700  ;;  %v2727_v26 = vunpack.i.l.bf16 %v2726_v36 }
  0xe9   :  { %v771_v35 = vsel %vm764_vm5, %v754_v61, %v2677_v11  ;;  %v776_v22 = vsel %vm764_vm5, %v759_v25, %v2678_v58  ;;  %v2703_v3 = vunpack.i.h.bf16 %v2701_v31  ;;  %v2702_v43 = vunpack.i.l.bf16 %v2701_v31 }
  0xea   :  { %v788_v14 = vsel %vm781_vm6, %v771_v35, %v2682_v23  ;;  %v793_v47 = vsel %vm781_vm6, %v776_v22, %v2683_v41  ;;  %v705_v41 = vsel %vm29_vm0, %v112_v5, %v2727_v26 }
  0xeb   :  { %v805_v48 = vsel %vm798_vm7, %v788_v14, %v2687_v40  ;;  %v810_v55 = vsel %vm798_vm7, %v793_v47, %v2688_v30 }
  0xec   :  { %915 = vmatmul.f32.gmra.mxu0 %v805_v48  ;;  %930 = vmatmul.f32.vlgmr.msra.gmra.mxu3 %v810_v55 }
  0xee   :  { %v2691_v37 = vpop.permute.xlu1 %2690 }
  0xef   :  { %v2693_v8 = vunpack.i.h.bf16 %v2691_v37  ;;  %v2692_v32 = vunpack.i.l.bf16 %v2691_v37  ;;  %v2741_v28 = vpop.permute.xlu2 %2740 }
  0xf0   :  { %v2716_v38 = vpop.permute.xlu0 %2715  ;;  %v2743_v40 = vunpack.i.h.bf16 %v2741_v28  ;;  %v2742_v31 = vunpack.i.l.bf16 %v2741_v28 }
  0xf1   :  { %v709_v42 = vsel %vm29_vm0, %v3105_v59, %v2693_v8  ;;  %v704_v13 = vsel %vm29_vm0, %v3088_v51, %v2692_v32  ;;  %v2712_v59 = vunpack.i.l.bf16 %v2711_v63  ;;  %v2718_v19 = vunpack.i.h.bf16 %v2716_v38 }
  0xf2   :  { %v721_v44 = vsel %vm713_vm2, %v704_v13, %v2697_v4  ;;  %v726_v46 = vsel %vm713_vm2, %v709_v42, %v2698_v20  ;;  %v2717_v12 = vunpack.i.l.bf16 %v2716_v38  ;;  %v2728_v63 = vunpack.i.h.bf16 %v2726_v36 }
  0xf3   :  { %v743_v9 = vsel %vm730_vm3, %v726_v46, %v2703_v3  ;;  %v738_v27 = vsel %vm730_vm3, %v721_v44, %v2702_v43 }
  0xf4   :  { %v710_v34 = vsel %vm29_vm0, %v3125_v6, %v2728_v63 }
  0xf6   :  { %v2706_v49 = vpop.permute.xlu1 %2705 }
  0xf7   :  { %v2708_v50 = vunpack.i.h.bf16 %v2706_v49  ;;  %v2707_v17 = vunpack.i.l.bf16 %v2706_v49  ;;  %v2756_v39 = vpop.permute.xlu2 %2755 }
  0xf8   :  { %v2731_v56 = vpop.permute.xlu0 %2730  ;;  %v2758_v37 = vunpack.i.h.bf16 %v2756_v39  ;;  %v2757_v8 = vunpack.i.l.bf16 %v2756_v39 }
  0xf9   :  { %v755_v51 = vsel %vm747_vm4, %v738_v27, %v2707_v17  ;;  %v760_v29 = vsel %vm747_vm4, %v743_v9, %v2708_v50  ;;  %v2733_v7 = vunpack.i.h.bf16 %v2731_v56  ;;  %v2732_v10 = vunpack.i.l.bf16 %v2731_v56 }
  0xfa   :  { %v772_v57 = vsel %vm764_vm5, %v755_v51, %v2712_v59  ;;  %v777_v60 = vsel %vm764_vm5, %v760_v29, %v2713_v15 }
  0xfb   :  { %v789_v62 = vsel %vm781_vm6, %v772_v57, %v2717_v12  ;;  %v794_v21 = vsel %vm781_vm6, %v777_v60, %v2718_v19  ;;  %v727_v61 = vsel %vm713_vm2, %v710_v34, %v2733_v7  ;;  %v722_v25 = vsel %vm713_vm2, %v705_v41, %v2732_v10 }
  0xfe   :  { %v2721_v16 = vpop.permute.xlu1 %2720 }
  0xff   :  { %v2723_v33 = vunpack.i.h.bf16 %v2721_v16  ;;  %v2722_v53 = vunpack.i.l.bf16 %v2721_v16  ;;  %v2771_v35 = vpop.permute.xlu2 %2770 }
 0x100   :  { %v2746_v54 = vpop.permute.xlu0 %2745  ;;  %v2773_v59 = vunpack.i.h.bf16 %v2771_v35  ;;  %v2772_v19 = vunpack.i.l.bf16 %v2771_v35 }
 0x101   :  { %v806_v45 = vsel %vm798_vm7, %v789_v62, %v2722_v53  ;;  %v811_v24 = vsel %vm798_vm7, %v794_v21, %v2723_v33  ;;  %v2748_v47 = vunpack.i.h.bf16 %v2746_v54  ;;  %v2747_v48 = vunpack.i.l.bf16 %v2746_v54  ;;  %v248_v54 = vld [vmem:[#allocation2 + $0x132] sm:$0xff] }
 0x102   :  { %918 = vmatmul.f32.gmra.mxu0 %v806_v45  ;;  %933 = vmatmul.f32.gmra.mxu3 %v811_v24 }
 0x103   :  { %2488 = vmatmul.msk.f32.gmra.mxu1 %vm29_vm0, %v248_v54 }
 0x106   :  { %v2736_v23 = vpop.permute.xlu1 %2735 }
 0x107   :  { %v2738_v58 = vunpack.i.h.bf16 %v2736_v23  ;;  %v2737_v11 = vunpack.i.l.bf16 %v2736_v23  ;;  %v2786_v49 = vpop.permute.xlu2 %2785 }
 0x108   :  { %v2761_v30 = vpop.permute.xlu0 %2760  ;;  %v2788_v62 = vunpack.i.h.bf16 %v2786_v49  ;;  %v2787_v21 = vunpack.i.l.bf16 %v2786_v49 }
 0x109   :  { %v739_v22 = vsel %vm730_vm3, %v722_v25, %v2737_v11  ;;  %v744_v14 = vsel %vm730_vm3, %v727_v61, %v2738_v58  ;;  %v2763_v44 = vunpack.i.h.bf16 %v2761_v30  ;;  %v2762_v46 = vunpack.i.l.bf16 %v2761_v30 }
 0x10a   :  { %v756_v6 = vsel %vm747_vm4, %v739_v22, %v2742_v31  ;;  %v761_v55 = vsel %vm747_vm4, %v744_v14, %v2743_v40 }
 0x10b   :  { %v773_v32 = vsel %vm764_vm5, %v756_v6, %v2747_v48  ;;  %v778_v38 = vsel %vm764_vm5, %v761_v55, %v2748_v47  ;;  %v711_v27 = vsel %vm29_vm0, %v3150_v18, %v2763_v44  ;;  %v706_v50 = vsel %vm29_vm0, %v3210_v52, %v2762_v46  ;;  %v963_v48 = vpop.f32.mrf.mxu1 }
 0x10e   :  { %v2751_v36 = vpop.permute.xlu1 %2750 }
 0x10f   :  { %v2753_v20 = vunpack.i.h.bf16 %v2751_v36  ;;  %v2752_v4 = vunpack.i.l.bf16 %v2751_v36  ;;  %v2801_v60 = vpop.permute.xlu2 %2800 }
 0x110   :  { %v2776_v42 = vpop.permute.xlu0 %2775  ;;  %v2803_v30 = vunpack.i.h.bf16 %v2801_v60  ;;  %v2802_v40 = vunpack.i.l.bf16 %v2801_v60 }
 0x111   :  { %v790_v13 = vsel %vm781_vm6, %v773_v32, %v2752_v4  ;;  %v795_v3 = vsel %vm781_vm6, %v778_v38, %v2753_v20  ;;  %v2778_v51 = vunpack.i.h.bf16 %v2776_v42  ;;  %v2777_v52 = vunpack.i.l.bf16 %v2776_v42 }
 0x112   :  { %v807_v43 = vsel %vm798_vm7, %v790_v13, %v2757_v8  ;;  %v812_v28 = vsel %vm798_vm7, %v795_v3, %v2758_v37 }
 0x113   :  { %921 = vmatmul.f32.gmra.mxu0 %v807_v43  ;;  %936 = vmatmul.f32.gmra.mxu3 %v812_v28 }
 0x116   :  { %v2766_v9 = vpop.permute.xlu1 %2765 }
 0x117   :  { %v2768_v17 = vunpack.i.h.bf16 %v2766_v9  ;;  %v2767_v56 = vunpack.i.l.bf16 %v2766_v9  ;;  %v2816_v11 = vpop.permute.xlu2 %2815 }
 0x118   :  { %v2791_v15 = vpop.permute.xlu0 %2790  ;;  %v2818_v32 = vunpack.i.h.bf16 %v2816_v11 }
 0x119   :  { %v723_v12 = vsel %vm713_vm2, %v706_v50, %v2767_v56  ;;  %v728_v18 = vsel %vm713_vm2, %v711_v27, %v2768_v17  ;;  %v2793_v26 = vunpack.i.h.bf16 %v2791_v15  ;;  %v2792_v5 = vunpack.i.l.bf16 %v2791_v15  ;;  %v966_v27 = vpop.f32.mrf.mxu1 }
 0x11a   :  { %v740_v29 = vsel %vm730_vm3, %v723_v12, %v2772_v19  ;;  %v745_v57 = vsel %vm730_vm3, %v728_v18, %v2773_v59 }
 0x11b   :  { %v757_v33 = vsel %vm747_vm4, %v740_v29, %v2777_v52  ;;  %v762_v53 = vsel %vm747_vm4, %v745_v57, %v2778_v51 }
 0x11e   :  { %v2781_v16 = vpop.permute.xlu1 %2780 }
 0x11f   :  { %v2783_v39 = vunpack.i.h.bf16 %v2781_v16  ;;  %v2782_v63 = vunpack.i.l.bf16 %v2781_v16 }
 0x120   :  { %v2806_v34 = vpop.permute.xlu0 %2805 }
 0x121   :  { %v774_v45 = vsel %vm764_vm5, %v757_v33, %v2782_v63  ;;  %v779_v24 = vsel %vm764_vm5, %v762_v53, %v2783_v39  ;;  %v2808_v22 = vunpack.i.h.bf16 %v2806_v34  ;;  %v2807_v14 = vunpack.i.l.bf16 %v2806_v34  ;;  %v969_v17 = vpop.f32.mrf.mxu1 }
 0x122   :  { %v791_v7 = vsel %vm781_vm6, %v774_v45, %v2787_v21  ;;  %v796_v10 = vsel %vm781_vm6, %v779_v24, %v2788_v62 }
 0x123   :  { %v808_v41 = vsel %vm798_vm7, %v791_v7, %v2792_v5  ;;  %v813_v23 = vsel %vm798_vm7, %v796_v10, %v2793_v26 }
 0x124   :  { %924 = vmatmul.f32.gmra.mxu0 %v808_v41  ;;  %939 = vmatmul.f32.gmra.mxu3 %v813_v23 }
 0x126   :  { %v2796_v61 = vpop.permute.xlu1 %2795 }
 0x127   :  { %v2798_v25 = vunpack.i.h.bf16 %v2796_v61  ;;  %v2797_v58 = vunpack.i.l.bf16 %v2796_v61 }
 0x128   :  { %v2821_v47 = vpop.permute.xlu0 %2820 }
 0x129   :  { %v712_v31 = vsel %vm29_vm0, %v3235_v2, %v2798_v25  ;;  %v707_v35 = vsel %vm29_vm0, %v3233_v1, %v2797_v58  ;;  %v2817_v2 = vunpack.i.l.bf16 %v2816_v11  ;;  %v2823_v4 = vunpack.i.h.bf16 %v2821_v47  ;;  %v680_v1 = vpop.permute.xlu2 %679  ;;  %v972_v56 = vpop.f32.mrf.mxu1 }
 0x12a   :  { %v724_v6 = vsel %vm713_vm2, %v707_v35, %v2802_v40  ;;  %v729_v55 = vsel %vm713_vm2, %v712_v31, %v2803_v30  ;;  %v2822_v42 = vunpack.i.l.bf16 %v2821_v47 }
 0x12b   :  { %v746_v36 = vsel %vm730_vm3, %v729_v55, %v2808_v22  ;;  %v741_v37 = vsel %vm730_vm3, %v724_v6, %v2807_v14 }
 0x12e   :  { %v2811_v8 = vpop.permute.xlu1 %2810 }
 0x12f   :  { %v2813_v38 = vunpack.i.h.bf16 %v2811_v8  ;;  %v2812_v20 = vunpack.i.l.bf16 %v2811_v8 }
 0x131   :  { %v758_v13 = vsel %vm747_vm4, %v741_v37, %v2812_v20  ;;  %v763_v3 = vsel %vm747_vm4, %v746_v36, %v2813_v38  ;;  %v975_v15 = vpop.f32.mrf.mxu1 }
 0x132   :  { %v780_v43 = vsel %vm764_vm5, %v763_v3, %v2818_v32  ;;  %v775_v28 = vsel %vm764_vm5, %v758_v13, %v2817_v2  ;;  %v898_v59 = vpop.f32.mrf.mxu0  ;;  %vm2056_vm5 = vcmask 588800  }
 0x133   :  { %v797_v44 = vsel %vm781_vm6, %v780_v43, %v2823_v4  ;;  %v792_v46 = vsel %vm781_vm6, %v775_v28, %v2822_v42  ;;  %v3518_v26 = vadd.f32 %v963_v48, %v898_v59  ;;  %v2841_v28 = vmov 128.0  }
 0x134   :  { %v814_v49 = vsel %vm798_vm7, %v797_v44, %v680_v1  ;;  %2825 = vrcp.f32 %v2841_v28 }
 0x135   :  { %942 = vmatmul.f32.gmra.mxu3 %v814_v49  ;;  %v1012_v41 = vsel %vm1011_vm8, %v3518_v26, 0.0 }
 0x136   :  { %v670_v9 = vpop.permute.xlu1 %669 }
 0x137   :  { %v809_v50 = vsel %vm798_vm7, %v792_v46, %v670_v9 }
 0x138   :  { %927 = vmatmul.f32.gmra.mxu0 %v809_v50 }
 0x139   :  { %v978_v19 = vpop.f32.mrf.mxu1 }
 0x13a   :  { %v901_v12 = vpop.f32.mrf.mxu0 }
 0x13b   :  { %v3516_v63 = vadd.f32 %v966_v27, %v901_v12 }
 0x13d   :  { %v1013_v7 = vsel %vm1011_vm8, %v3516_v63, 0.0 }
 0x13e   :  { %v1014_v25 = vadd.f32 %v1013_v7, %v1012_v41 }
 0x141   :  { %v981_v18 = vpop.f32.mrf.mxu1 }
 0x147   :  { %v904_v51 = vpop.f32.mrf.mxu0 }
 0x148   :  { %v3520_v5 = vadd.f32 %v969_v17, %v904_v51 }
 0x149   :  { %v984_v52 = vpop.f32.mrf.mxu1 }
 0x14a   :  { %v1015_v23 = vsel %vm1011_vm8, %v3520_v5, 0.0 }
 0x14b   :  { %v1016_v30 = vadd.f32 %v1015_v23, %v1014_v25 }
 0x14f   :  { %v907_v29 = vpop.f32.mrf.mxu0 }
 0x150   :  { %v3524_v10 = vadd.f32 %v972_v56, %v907_v29 }
 0x151   :  { %v987_v57 = vpop.f32.mrf.mxu1 }
 0x152   :  { %v1017_v58 = vsel %vm1011_vm8, %v3524_v10, 0.0 }
 0x153   :  { %v1018_v35 = vadd.f32 %v1017_v58, %v1016_v30 }
 0x158   :  { %v910_v60 = vpop.f32.mrf.mxu0 }
 0x159   :  { %v990_v16 = vpop.f32.mrf.mxu1  ;;  %v3530_v61 = vadd.f32 %v975_v15, %v910_v60  ;;  %v2826_v15 = vpop.eup %2825 }
 0x15a   :  { %v1050_v60 = vmul.f32 128.0, %v2826_v15  ;;  %vm1054_vm9 = vweird.f32 %v2826_v15 }
 0x15b   :  { %v1019_v40 = vsel %vm1011_vm8, %v3530_v61, 0.0 }
 0x15c   :  { %v1020_v6 = vadd.f32 %v1019_v40, %v1018_v35 }
 0x160   :  { %v913_v62 = vpop.f32.mrf.mxu0 }
 0x161   :  { %v993_v21 = vpop.f32.mrf.mxu1  ;;  %v3534_v11 = vadd.f32 %v978_v19, %v913_v62 }
 0x163   :  { %v1021_v47 = vsel %vm1011_vm8, %v3534_v11, 0.0 }
 0x164   :  { %v1022_v8 = vadd.f32 %v1021_v47, %v1020_v6 }
 0x169   :  { %v916_v33 = vpop.f32.mrf.mxu0  ;;  %v996_v54 = vpop.f32.mrf.mxu1 }
 0x16a   :  { %v3538_v31 = vadd.f32 %v981_v18, %v916_v33 }
 0x16c   :  { %v1023_v36 = vsel %vm1011_vm8, %v3538_v31, 0.0 }
 0x16d   :  { %v1024_v20 = vadd.f32 %v1023_v36, %v1022_v8 }
 0x16f   :  { %v931_v53 = vpop.f32.mrf.mxu3 }
 0x170   :  { %v3556_v44 = vadd.f32 %v996_v54, %v931_v53  ;;  %v1051_v53 = vsub.f32 1.0, %v1050_v60 }
 0x171   :  { %v999_v24 = vpop.f32.mrf.mxu1 }
 0x172   :  { %v1033_v17 = vsel %vm1011_vm8, %v3556_v44, 0.0 }
 0x179   :  { %v1002_v14 = vpop.f32.mrf.mxu1 }
 0x17f   :  { %v919_v39 = vpop.f32.mrf.mxu0 }
 0x180   :  { %v3542_v48 = vadd.f32 %v984_v52, %v919_v39 }
 0x181   :  { %v1005_v1 = vpop.f32.mrf.mxu1 }
 0x182   :  { %v1025_v32 = vsel %vm1011_vm8, %v3542_v48, 0.0 }
 0x183   :  { %v1026_v4 = vadd.f32 %v1025_v32, %v1024_v20 }
 0x185   :  { %v934_v45 = vpop.f32.mrf.mxu3 }
 0x186   :  { %v3560_v9 = vadd.f32 %v999_v24, %v934_v45  ;;  %v1052_v45 = vmul.f32 %v2826_v15, %v1051_v53 }
 0x188   :  { %v1035_v18 = vsel %vm1011_vm8, %v3560_v9, 0.0 }
 0x189   :  { %v1008_v12 = vpop.f32.mrf.mxu1 }
 0x190   :  { %v922_v34 = vpop.f32.mrf.mxu0 }
 0x191   :  { %v3546_v37 = vadd.f32 %v987_v57, %v922_v34  ;;  %v1053_v34 = vadd.f32 %v2826_v15, %v1052_v45 }
 0x193   :  { %v1027_v2 = vsel %vm1011_vm8, %v3546_v37, 0.0  ;;  %v3580_v25 = vsel %vm1054_vm9, %v2826_v15, %v1053_v34 }
 0x194   :  { %v1028_v3 = vadd.f32 %v1027_v2, %v1026_v4 }
 0x196   :  { %v937_v22 = vpop.f32.mrf.mxu3 }
 0x197   :  { %v3566_v56 = vadd.f32 %v1002_v14, %v937_v22 }
 0x199   :  { %v1037_v29 = vsel %vm1011_vm8, %v3566_v56, 0.0 }
 0x1a1   :  { %v925_v55 = vpop.f32.mrf.mxu0 }
 0x1a2   :  { %v3550_v38 = vadd.f32 %v990_v16, %v925_v55 }
 0x1a4   :  { %v1029_v13 = vsel %vm1011_vm8, %v3550_v38, 0.0 }
 0x1a5   :  { %v1030_v49 = vadd.f32 %v1029_v13, %v1028_v3 }
 0x1a7   :  { %v940_v42 = vpop.f32.mrf.mxu3 }
 0x1a8   :  { %v3570_v51 = vadd.f32 %v1005_v1, %v940_v42 }
 0x1aa   :  { %v1039_v62 = vsel %vm1011_vm8, %v3570_v51, 0.0 }
 0x1b5   :  { %v928_v43 = vpop.f32.mrf.mxu0 }
 0x1b6   :  { %v3558_v46 = vadd.f32 %v993_v21, %v928_v43 }
 0x1b8   :  { %v1031_v27 = vsel %vm1011_vm8, %v3558_v46, 0.0  ;;  %v943_v19 = vpop.f32.mrf.mxu3 }
 0x1b9   :  { %v1032_v50 = vadd.f32 %v1031_v27, %v1030_v49  ;;  %v3574_v57 = vadd.f32 %v1008_v12, %v943_v19 }
 0x1bb   :  { %v1034_v59 = vadd.f32 %v1033_v17, %v1032_v50  ;;  %v1041_v33 = vsel %vm1011_vm8, %v3574_v57, 0.0 }
 0x1bd   :  { %v1036_v52 = vadd.f32 %v1035_v18, %v1034_v59 }
 0x1bf   :  { %v1038_v16 = vadd.f32 %v1037_v29, %v1036_v52 }
 0x1c1   :  { %v1040_v21 = vadd.f32 %v1039_v62, %v1038_v16 }
 0x1c3   :  { %v1042_v54 = vadd.f32 %v1041_v33, %v1040_v21 }
 0x1c5   :  { %v1043_v39 = vrot.slane %v1042_v54, 4 }
 0x1c7   :  { %v1044_v24 = vadd.f32 %v1043_v39, %v1042_v54 }
 0x1c9   :  { %v1045_v7 = vrot.slane %v1044_v24, 2 }
 0x1cb   :  { %v1046_v41 = vadd.f32 %v1045_v7, %v1044_v24 }
 0x1cd   :  { %v1047_v23 = vrot.slane %v1046_v41, 1 }
 0x1cf   :  { %v1048_v58 = vadd.f32 %v1047_v23, %v1046_v41 }
 0x1d1   :  { %v3583_v30 = vmul.f32 %v3580_v25, %v1048_v58 }
 0x1d3   :  { %v1057_v40 = vsub.f32 %v3518_v26, %v3583_v30  ;;  %v1058_v35 = vsub.f32 %v3516_v63, %v3583_v30  ;;  %v1059_v22 = vsub.f32 %v3520_v5, %v3583_v30  ;;  %v1060_v14 = vsub.f32 %v3524_v10, %v3583_v30 }
 0x1d4   :  { %v1061_v55 = vsub.f32 %v3530_v61, %v3583_v30  ;;  %v1062_v8 = vsub.f32 %v3534_v11, %v3583_v30  ;;  %v1063_v42 = vsub.f32 %v3538_v31, %v3583_v30  ;;  %v1064_v43 = vsub.f32 %v3542_v48, %v3583_v30 }
 0x1d5   :  { %v1073_v47 = vmul.f32 %v1057_v40, %v1057_v40  ;;  %v1074_v6 = vmul.f32 %v1058_v35, %v1058_v35  ;;  %v1075_v36 = vmul.f32 %v1059_v22, %v1059_v22  ;;  %v1076_v32 = vmul.f32 %v1060_v14, %v1060_v14 }
 0x1d6   :  { %v1077_v1 = vmul.f32 %v1061_v55, %v1061_v55  ;;  %v1078_v28 = vmul.f32 %v1062_v8, %v1062_v8  ;;  %v1065_v50 = vsub.f32 %v3546_v37, %v3583_v30  ;;  %v1079_v17 = vmul.f32 %v1063_v42, %v1063_v42 }
 0x1d7   :  { %v1089_v20 = vsel %vm1011_vm8, %v1073_v47, 0.0  ;;  %v1090_v2 = vsel %vm1011_vm8, %v1074_v6, 0.0  ;;  %v1092_v13 = vsel %vm1011_vm8, %v1075_v36, 0.0  ;;  %v1094_v49 = vsel %vm1011_vm8, %v1076_v32, 0.0 }
 0x1d8   :  { %v1091_v4 = vadd.f32 %v1090_v2, %v1089_v20  ;;  %v1096_v15 = vsel %vm1011_vm8, %v1077_v1, 0.0  ;;  %v1066_v19 = vsub.f32 %v3550_v38, %v3583_v30  ;;  %v1080_v12 = vmul.f32 %v1064_v43, %v1064_v43 }
 0x1d9   :  { %v1098_v18 = vsel %vm1011_vm8, %v1078_v28, 0.0  ;;  %v1067_v29 = vsub.f32 %v3558_v46, %v3583_v30  ;;  %v1081_v60 = vmul.f32 %v1065_v50, %v1065_v50  ;;  %v1100_v16 = vsel %vm1011_vm8, %v1079_v17, 0.0 }
 0x1da   :  { %v1093_v3 = vadd.f32 %v1092_v13, %v1091_v4  ;;  %v1068_v21 = vsub.f32 %v3556_v44, %v3583_v30  ;;  %v1082_v33 = vmul.f32 %v1066_v19, %v1066_v19  ;;  %v1102_v53 = vsel %vm1011_vm8, %v1080_v12, 0.0  ;;  %v1375_v19 = vld [vmem:[#allocation3 + $0x91] sm:$0xff] }
 0x1db   :  { %v1069_v39 = vsub.f32 %v3560_v9, %v3583_v30  ;;  %v1083_v45 = vmul.f32 %v1067_v29, %v1067_v29  ;;  %v1104_v24 = vsel %vm1011_vm8, %v1081_v60, 0.0  ;;  %v1070_v34 = vsub.f32 %v3566_v56, %v3583_v30  ;;  %v1359_v12 = vld [vmem:[#allocation3 + $0x90] sm:$0xff]  ;;  %1814 = vrot.lane.b32.xlu2 %v1375_v19, %s2843_s20 }
 0x1dc   :  { %v1095_v27 = vadd.f32 %v1094_v49, %v1093_v3  ;;  %v1084_v41 = vmul.f32 %v1068_v21, %v1068_v21  ;;  %v1106_v23 = vsel %vm1011_vm8, %v1082_v33, 0.0  ;;  %v1071_v40 = vsub.f32 %v3570_v51, %v3583_v30  ;;  %v1271_v49 = vld [vmem:[#allocation3 + $0x1] sm:$0xff]  ;;  %v1391_v60 = vld [vmem:[#allocation3 + $0x92] sm:$0xff] }
 0x1dd   :  { %v1085_v35 = vmul.f32 %v1069_v39, %v1069_v39  ;;  %v1108_v22 = vsel %vm1011_vm8, %v1083_v45, 0.0  ;;  %v1072_v47 = vsub.f32 %v3574_v57, %v3583_v30  ;;  %v1086_v6 = vmul.f32 %v1070_v34, %v1070_v34  ;;  %1416 = vrot.lane.b32.xlu0 %v1271_v49, %s2842_s1 }
 0x1de   :  { %v1097_v59 = vadd.f32 %v1096_v15, %v1095_v27  ;;  %v1110_v55 = vsel %vm1011_vm8, %v1084_v41, 0.0  ;;  %v1087_v8 = vmul.f32 %v1071_v40, %v1071_v40  ;;  %v1287_v27 = vld [vmem:[#allocation3 + $0x2] sm:$0xff] }
 0x1df   :  { %v1112_v32 = vsel %vm1011_vm8, %v1085_v35, 0.0  ;;  %v1088_v2 = vmul.f32 %v1072_v47, %v1072_v47  ;;  %v1114_v4 = vsel %vm1011_vm8, %v1086_v6, 0.0  ;;  %1480 = vrot.lane.b32.xlu1 %v1287_v27, %s2834_s29 }
 0x1e0   :  { %v1099_v52 = vadd.f32 %v1098_v18, %v1097_v59  ;;  %v1116_v1 = vsel %vm1011_vm8, %v1087_v8, 0.0 }
 0x1e1   :  { %v1118_v3 = vsel %vm1011_vm8, %v1088_v2, 0.0 }
 0x1e2   :  { %v1101_v62 = vadd.f32 %v1100_v16, %v1099_v52  ;;  %v1295_v16 = vld [vmem:[#allocation3 + $0xa2] sm:$0xff] }
 0x1e3   :  { %1496 = vrot.lane.b32.xlu2 %v1295_v16, %s2834_s29 }
 0x1e4   :  { %v1103_v54 = vadd.f32 %v1102_v53, %v1101_v62  ;;  %v1279_v62 = vld [vmem:[#allocation3 + $0xa1] sm:$0xff] }
 0x1e5   :  { %1878 = vrot.lane.b32.xlu0 %v1391_v60, %s2839_s24 }
 0x1e6   :  { %v1105_v7 = vadd.f32 %v1104_v24, %v1103_v54 }
 0x1e7   :  { %1750 = vrot.lane.b32.xlu1 %v1359_v12, %s2836_s19 }
 0x1e8   :  { %v1107_v58 = vadd.f32 %v1106_v23, %v1105_v7  ;;  %v1140_v7 = vld [vmem:[%s4368_s3] sm:$0x1]  ;;  %s2845_s3 = smov 24  }
 0x1ea   :  { %v1109_v14 = vadd.f32 %v1108_v22, %v1107_v58 }
 0x1ec   :  { %v1111_v36 = vadd.f32 %v1110_v55, %v1109_v14 }
 0x1ee   :  { %v1113_v20 = vadd.f32 %v1112_v32, %v1111_v36 }
 0x1ef   :  { %1432 = vrot.lane.b32.xlu1 %v1279_v62, %s2842_s1 }
 0x1f0   :  { %v1115_v42 = vadd.f32 %v1114_v4, %v1113_v20 }
 0x1f2   :  { %v1117_v13 = vadd.f32 %v1116_v1, %v1115_v42 }
 0x1f4   :  { %v1119_v43 = vadd.f32 %v1118_v3, %v1117_v13 }
 0x1f6   :  { %v1120_v28 = vrot.slane %v1119_v43, 4 }
 0x1f8   :  { %v1121_v50 = vadd.f32 %v1120_v28, %v1119_v43 }
 0x1fa   :  { %v1122_v17 = vrot.slane %v1121_v50, 2 }
 0x1fc   :  { %v1123_v15 = vadd.f32 %v1122_v17, %v1121_v50 }
 0x1fe   :  { %v1124_v59 = vrot.slane %v1123_v15, 1 }
 0x200   :  { %v1125_v18 = vadd.f32 %v1124_v59, %v1123_v15 }
 0x202   :  { %v1126_v52 = vmul.f32 %v1125_v18, %v3580_v25 }
 0x204   :  { %v1128_v29 = vadd.f32 1e-05, %v1126_v52 }
 0x206   :  { %2827 = vrsqrt.f32 %v1128_v29  ;;  %vm1135_vm12 = vweird.f32 %v1128_v29 }
 0x20c   :  { %v2828_v21 = vpop.eup %2827 }
 0x20d   :  { %v1130_v33 = vmul.f32 %v2828_v21, %v1128_v29  ;;  %vm1136_vm11 = vweird.f32 %v2828_v21 }
 0x20e   :  { %vm1137_vm13 = vmor %vm1135_vm12, %vm1136_vm11 }
 0x20f   :  { %v1131_v53 = vmul.f32 %v2828_v21, %v1130_v33 }
 0x211   :  { %v1132_v54 = vmul.f32 0.5, %v1131_v53 }
 0x213   :  { %v1133_v39 = vsub.f32 1.5, %v1132_v54 }
 0x215   :  { %v1134_v25 = vmul.f32 %v2828_v21, %v1133_v39 }
 0x217   :  { %v1138_v45 = vsel %vm1137_vm13, %v2828_v21, %v1134_v25 }
 0x218   :  { %v1139_v24 = vmul.f32 %v1138_v45, %v1127_v0 }
 0x21a   :  { %v1141_v34 = vmul.f32 %v1139_v24, %v3583_v30  ;;  %v1144_v41 = vperm.slane %v1139_v24, 0 }
 0x21c   :  { %v1142_v23 = vsub.f32 %v1140_v7, %v1141_v34  ;;  %v1161_v58 = vmul.f32 %v1144_v41, %v3574_v57  ;;  %v1146_v35 = vmul.f32 %v1144_v41, %v3518_v26  ;;  %v1147_v22 = vmul.f32 %v1144_v41, %v3516_v63 }
 0x21d   :  { %v1148_v14 = vmul.f32 %v1144_v41, %v3520_v5  ;;  %v1149_v47 = vmul.f32 %v1144_v41, %v3524_v10  ;;  %v1150_v6 = vmul.f32 %v1144_v41, %v3530_v61  ;;  %v1151_v55 = vmul.f32 %v1144_v41, %v3534_v11 }
 0x21e   :  { %v1163_v40 = vperm.slane %v1142_v23, 0  ;;  %v1152_v57 = vmul.f32 %v1144_v41, %v3538_v31  ;;  %v1153_v26 = vmul.f32 %v1144_v41, %v3542_v48  ;;  %v1154_v61 = vmul.f32 %v1144_v41, %v3546_v37 }
 0x21f   :  { %v1155_v3 = vmul.f32 %v1144_v41, %v3550_v38  ;;  %v1156_v48 = vmul.f32 %v1144_v41, %v3558_v46  ;;  %v1157_v27 = vmul.f32 %v1144_v41, %v3556_v44  ;;  %v1158_v17 = vmul.f32 %v1144_v41, %v3560_v9 }
 0x220   :  { %v1180_v36 = vadd.f32 %v1163_v40, %v1161_v58  ;;  %v1165_v8 = vadd.f32 %v1163_v40, %v1146_v35  ;;  %v1166_v30 = vadd.f32 %v1163_v40, %v1147_v22  ;;  %v1167_v32 = vadd.f32 %v1163_v40, %v1148_v14  ;;  %v2051_v35 = vld [vmem:[%s4369_s4 + $0x40] sm:$0xff]  ;;  %v2050_v22 = vld [vmem:[%s4369_s4 + $0x38] sm:$0xff]  ;;  %v2049_v14 = vld [vmem:[%s4369_s4 + $0x30] sm:$0xff] }
 0x221   :  { %v1168_v20 = vadd.f32 %v1163_v40, %v1149_v47  ;;  %v1169_v2 = vadd.f32 %v1163_v40, %v1150_v6  ;;  %v1170_v5 = vadd.f32 %v1163_v40, %v1151_v55  ;;  %v1171_v10 = vadd.f32 %v1163_v40, %v1152_v57  ;;  %2112 = vmatpush.msra.mxu2 %v2051_v35  ;;  %v2048_v6 = vld [vmem:[%s4369_s4 + $0x28] sm:$0xff] }
 0x222   :  { %v1196_v4 = vmax.f32 %v1180_v36, 0.0  ;;  %v1181_v63 = vmax.f32 %v1165_v8, 0.0  ;;  %v1182_v42 = vmax.f32 %v1166_v30, 0.0  ;;  %v1183_v1 = vmax.f32 %v1167_v32, 0.0  ;;  %2521 = vmatpush.msrb.mxu3 %v2051_v35  ;;  %v2047_v36 = vld [vmem:[%s4369_s4 + $0x20] sm:$0xff]  ;;  %v2046_v8 = vld [vmem:[%s4369_s4 + $0x18] sm:$0xff] }
 0x223   :  { %v1184_v11 = vmax.f32 %v1168_v20, 0.0  ;;  %v1172_v13 = vadd.f32 %v1163_v40, %v1153_v26  ;;  %v1185_v43 = vmax.f32 %v1169_v2, 0.0  ;;  %v1173_v31 = vadd.f32 %v1163_v40, %v1154_v61  ;;  %2113 = vmatpush.msra.mxu2 %v2050_v22  ;;  %v2045_v30 = vld [vmem:[%s4369_s4 + $0x10] sm:$0xff]  ;;  %v2044_v20 = vld [vmem:[%s4369_s4 + $0x8] sm:$0xff]  ;;  %v1263_v2 = vld [vmem:[#allocation3 + $0xa0] sm:$0xff] }
 0x224   :  { %1254 = vst.msk [vmem:[#allocation3 + $0x121] sm:$0xff] %vm1011_vm8, %v1196_v4  ;;  %v1186_v28 = vmax.f32 %v1170_v5, 0.0  ;;  %v1174_v49 = vadd.f32 %v1163_v40, %v1155_v3  ;;  %v1187_v37 = vmax.f32 %v1171_v10, 0.0  ;;  %v1175_v50 = vadd.f32 %v1163_v40, %v1156_v48  ;;  %2522 = vmatpush.msrb.mxu3 %v2050_v22  ;;  %v2043_v26 = vld [vmem:[%s4369_s4] sm:$0xff] }
 0x225   :  { %1239 = vst.msk [vmem:[#allocation3 + $0x11] sm:$0xff] %vm1011_vm8, %v1181_v63  ;;  %v1188_v38 = vmax.f32 %v1172_v13, 0.0  ;;  %v1176_v15 = vadd.f32 %v1163_v40, %v1157_v27  ;;  %v1159_v59 = vmul.f32 %v1144_v41, %v3566_v56  ;;  %v1189_v46 = vmax.f32 %v1173_v31, 0.0  ;;  %2114 = vmatpush.msra.mxu2 %v2049_v14  ;;  %v1255_v13 = vld [vmem:[#allocation3] sm:$0xff] }
 0x226   :  { %1240 = vst.msk [vmem:[#allocation3 + $0x21] sm:$0xff] %vm1011_vm8, %v1182_v42  ;;  %v1177_v19 = vadd.f32 %v1163_v40, %v1158_v17  ;;  %v1160_v12 = vmul.f32 %v1144_v41, %v3570_v51  ;;  %v1190_v44 = vmax.f32 %v1174_v49, 0.0  ;;  %v1191_v52 = vmax.f32 %v1175_v50, 0.0  ;;  %2523 = vmatpush.msrb.mxu3 %v2049_v14 }
 0x227   :  { %1241 = vst.msk [vmem:[#allocation3 + $0x31] sm:$0xff] %vm1011_vm8, %v1183_v1  ;;  %v1178_v18 = vadd.f32 %v1163_v40, %v1159_v59  ;;  %v1192_v56 = vmax.f32 %v1176_v15, 0.0  ;;  %2115 = vmatpush.msra.mxu2 %v2048_v6 }
 0x228   :  { %1242 = vst.msk [vmem:[#allocation3 + $0x41] sm:$0xff] %vm1011_vm8, %v1184_v11  ;;  %v1179_v9 = vadd.f32 %v1163_v40, %v1160_v12  ;;  %v1193_v51 = vmax.f32 %v1177_v19, 0.0  ;;  %2524 = vmatpush.msrb.mxu3 %v2048_v6 }
 0x229   :  { %1243 = vst.msk [vmem:[#allocation3 + $0x51] sm:$0xff] %vm1011_vm8, %v1185_v43  ;;  %v1194_v62 = vmax.f32 %v1178_v18, 0.0  ;;  %2116 = vmatpush.msra.mxu2 %v2047_v36 }
 0x22a   :  { %1244 = vst.msk [vmem:[#allocation3 + $0x61] sm:$0xff] %vm1011_vm8, %v1186_v28  ;;  %v1195_v21 = vmax.f32 %v1179_v9, 0.0  ;;  %2525 = vmatpush.msrb.mxu3 %v2047_v36 }
 0x22b   :  { %1245 = vst.msk [vmem:[#allocation3 + $0x71] sm:$0xff] %vm1011_vm8, %v1187_v37  ;;  %2117 = vmatpush.msra.mxu2 %v2046_v8 }
 0x22c   :  { %v1335_v29 = vld [vmem:[#allocation3 + $0x12] sm:$0xff]  ;;  %1246 = vst.msk [vmem:[#allocation3 + $0x81] sm:$0xff] %vm1011_vm8, %v1188_v38  ;;  %2526 = vmatpush.msrb.mxu3 %v2046_v8 }
 0x22d   :  { %v1319_v60 = vld [vmem:[#allocation3 + $0x11] sm:$0xff]  ;;  %1672 = vrot.lane.b32.xlu1 %v1335_v29, %s2844_s2  ;;  %1247 = vst.msk [vmem:[#allocation3 + $0xb1] sm:$0xff] %vm1011_vm8, %v1189_v46  ;;  %v1384_v33 = vld [vmem:[#allocation3 + $0x22] sm:$0xff]  ;;  %2118 = vmatpush.msra.mxu2 %v2045_v30 }
 0x22e   :  { %v3712_v16 = vld [vmem:[#allocation3 + $0x10] sm:$0xff]  ;;  %1608 = vrot.lane.b32.xlu0 %v1319_v60, %s2835_s30  ;;  %1248 = vst.msk [vmem:[#allocation3 + $0xc1] sm:$0xff] %vm1011_vm8, %v1190_v44  ;;  %v1368_v53 = vld [vmem:[#allocation3 + $0x21] sm:$0xff]  ;;  %2527 = vmatpush.msrb.mxu3 %v2045_v30 }
 0x22f   :  { %1544 = vrot.lane.b32.xlu2 %v3712_v16, %s2845_s3  ;;  %1249 = vst.msk [vmem:[#allocation3 + $0xd1] sm:$0xff] %vm1011_vm8, %v1191_v52  ;;  %v3728_v54 = vld [vmem:[#allocation3 + $0x20] sm:$0xff]  ;;  %v3736_v39 = vld [vmem:[#allocation3 + $0x30] sm:$0xff]  ;;  %2119 = vmatpush.msra.mxu2 %v2044_v20 }
 0x230   :  { %1250 = vst.msk [vmem:[#allocation3 + $0xe1] sm:$0xff] %vm1011_vm8, %v1192_v56  ;;  %v1385_v0 = vld [vmem:[#allocation3 + $0x32] sm:$0xff]  ;;  %v1370_v45 = vld [vmem:[#allocation3 + $0x41] sm:$0xff]  ;;  %2528 = vmatpush.msrb.mxu3 %v2044_v20 }
 0x231   :  { %1251 = vst.msk [vmem:[#allocation3 + $0xf1] sm:$0xff] %vm1011_vm8, %v1193_v51  ;;  %v1369_v25 = vld [vmem:[#allocation3 + $0x31] sm:$0xff]  ;;  %v3749_v24 = vld [vmem:[#allocation3 + $0x40] sm:$0xff]  ;;  %2120 = vmatpush.msra.mxu2 %v2043_v26 }
 0x232   :  { %1252 = vst.msk [vmem:[#allocation3 + $0x101] sm:$0xff] %vm1011_vm8, %v1194_v62  ;;  %v1386_v7 = vld [vmem:[#allocation3 + $0x42] sm:$0xff]  ;;  %v1387_v34 = vld [vmem:[#allocation3 + $0x52] sm:$0xff]  ;;  %2529 = vmatpush.msrb.mxu3 %v2043_v26 }
 0x233   :  { %1253 = vst.msk [vmem:[#allocation3 + $0x111] sm:$0xff] %vm1011_vm8, %v1195_v21  ;;  %v1371_v41 = vld [vmem:[#allocation3 + $0x51] sm:$0xff]  ;;  %v3797_v32 = vld [vmem:[#allocation3 + $0x60] sm:$0xff] }
 0x234   :  { %v3766_v58 = vld [vmem:[#allocation3 + $0x50] sm:$0xff]  ;;  %v1388_v42 = vld [vmem:[#allocation3 + $0x62] sm:$0xff] }
 0x235   :  { %1864 = vrot.lane.b32.xlu1 %v1384_v33, %s2839_s24  ;;  %v3762_v23 = vpop.permute.xlu2 %1814  ;;  %v1372_v1 = vld [vmem:[#allocation3 + $0x61] sm:$0xff]  ;;  %v1373_v31 = vld [vmem:[#allocation3 + $0x71] sm:$0xff] }
 0x236   :  { %1800 = vrot.lane.b32.xlu0 %v1368_v53, %s2843_s20  ;;  %v3823_v48 = vld [vmem:[#allocation3 + $0x70] sm:$0xff]  ;;  %v1390_v51 = vld [vmem:[#allocation3 + $0x82] sm:$0xff] }
 0x237   :  { %1736 = vrot.lane.b32.xlu2 %v3728_v54, %s2836_s19  ;;  %v1389_v15 = vld [vmem:[#allocation3 + $0x72] sm:$0xff]  ;;  %v1374_v62 = vld [vmem:[#allocation3 + $0x81] sm:$0xff] }
 0x238   :  { %v1327_v14 = vld [vmem:[#allocation3 + $0xb1] sm:$0xff] }
 0x239   :  { %v3868_v26 = vld [vmem:[#allocation3 + $0xb0] sm:$0xff] }
 0x23d   :  { %1546 = vrot.lane.b32.xlu1 %v3728_v54, %s2845_s3  ;;  %v1497_v47 = vpop.permute.xlu2 %1496 }
 0x23e   :  { %1482 = vrot.lane.b32.xlu0 %v1335_v29, %s2834_s29 }
 0x23f   :  { %1418 = vrot.lane.b32.xlu2 %v1319_v60, %s2842_s1 }
 0x245   :  { %1738 = vrot.lane.b32.xlu1 %v3736_v39, %s2836_s19 }
 0x246   :  { %1674 = vrot.lane.b32.xlu0 %v1384_v33, %s2844_s2 }
 0x247   :  { %1610 = vrot.lane.b32.xlu2 %v1368_v53, %s2835_s30 }
 0x24d   :  { %1420 = vrot.lane.b32.xlu1 %v1368_v53, %s2842_s1 }
 0x24e   :  { %1866 = vrot.lane.b32.xlu0 %v1385_v0, %s2839_s24 }
 0x24f   :  { %1802 = vrot.lane.b32.xlu2 %v1369_v25, %s2843_s20  ;;  %v1417_v5 = vpop.permute.xlu0 %1416 }
 0x250   :  { %v1912_v43 = vsel %vm1011_vm8, %v1255_v13, %v1417_v5 }
 0x251   :  { %v1481_v40 = vpop.permute.xlu1 %1480 }
 0x252   :  { %v1928_v28 = vsel %vm29_vm0, %v1912_v43, %v1481_v40  ;;  %v1392_v43 = vld [vmem:[#allocation3 + $0xc2] sm:$0xff] }
 0x255   :  { %1612 = vrot.lane.b32.xlu1 %v1369_v25, %s2835_s30 }
 0x256   :  { %1548 = vrot.lane.b32.xlu0 %v3736_v39, %s2845_s3 }
 0x257   :  { %1484 = vrot.lane.b32.xlu2 %v1384_v33, %s2834_s29  ;;  %v3819_v11 = vpop.permute.xlu0 %1878  ;;  %v1358_v33 = vld [vmem:[#allocation3 + $0x80] sm:$0xff] }
 0x259   :  { %v3786_v55 = vpop.permute.xlu1 %1750 }
 0x25d   :  { %1804 = vrot.lane.b32.xlu1 %v1370_v45, %s2843_s20 }
 0x25e   :  { %1740 = vrot.lane.b32.xlu0 %v3749_v24, %s2836_s19 }
 0x25f   :  { %1676 = vrot.lane.b32.xlu2 %v1385_v0, %s2844_s2 }
 0x261   :  { %v1433_v4 = vpop.permute.xlu1 %1432 }
 0x262   :  { %v1920_v63 = vsel %vm1011_vm8, %v1263_v2, %v1433_v4 }
 0x263   :  { %v3813_v10 = vsel %vm29_vm0, %v1920_v63, %v1497_v47 }
 0x265   :  { %1486 = vrot.lane.b32.xlu1 %v1385_v0, %s2834_s29 }
 0x266   :  { %1422 = vrot.lane.b32.xlu0 %v1369_v25, %s2842_s1 }
 0x267   :  { %1868 = vrot.lane.b32.xlu2 %v1386_v7, %s2839_s24 }
 0x26d   :  { %1678 = vrot.lane.b32.xlu1 %v1386_v7, %s2844_s2 }
 0x26e   :  { %1614 = vrot.lane.b32.xlu0 %v1370_v45, %s2835_s30 }
 0x26f   :  { %1550 = vrot.lane.b32.xlu2 %v3749_v24, %s2845_s3 }
 0x275   :  { %1870 = vrot.lane.b32.xlu1 %v1387_v34, %s2839_s24 }
 0x276   :  { %1806 = vrot.lane.b32.xlu0 %v1371_v41, %s2843_s20 }
 0x277   :  { %1742 = vrot.lane.b32.xlu2 %v3766_v58, %s2836_s19 }
 0x27d   :  { %1552 = vrot.lane.b32.xlu1 %v3766_v58, %s2845_s3 }
 0x27e   :  { %1488 = vrot.lane.b32.xlu0 %v1386_v7, %s2834_s29 }
 0x27f   :  { %1424 = vrot.lane.b32.xlu2 %v1370_v45, %s2842_s1 }
 0x285   :  { %1744 = vrot.lane.b32.xlu1 %v3797_v32, %s2836_s19 }
 0x286   :  { %1680 = vrot.lane.b32.xlu0 %v1387_v34, %s2844_s2 }
 0x287   :  { %1616 = vrot.lane.b32.xlu2 %v1371_v41, %s2835_s30 }
 0x289   :  { %v1545_v57 = vpop.permute.xlu2 %1544 }
 0x28a   :  { %v1945_v37 = vsel %vm1944_vm14, %v1928_v28, %v1545_v57  ;;  %v1376_v57 = vld [vmem:[#allocation3 + $0xc1] sm:$0xff] }
 0x28d   :  { %1426 = vrot.lane.b32.xlu1 %v1371_v41, %s2842_s1 }
 0x28e   :  { %1872 = vrot.lane.b32.xlu0 %v1388_v42, %s2839_s24 }
 0x28f   :  { %1808 = vrot.lane.b32.xlu2 %v1372_v1, %s2843_s20 }
 0x291   :  { %v1737_v61 = vpop.permute.xlu2 %1736 }
 0x295   :  { %1618 = vrot.lane.b32.xlu1 %v1372_v1, %s2835_s30 }
 0x296   :  { %1554 = vrot.lane.b32.xlu0 %v3797_v32, %s2845_s3 }
 0x297   :  { %1490 = vrot.lane.b32.xlu2 %v1387_v34, %s2834_s29 }
 0x299   :  { %v1419_v3 = vpop.permute.xlu2 %1418 }
 0x29a   :  { %v1913_v60 = vsel %vm1011_vm8, %v3712_v16, %v1419_v3  ;;  %v3879_v3 = vld [vmem:[#allocation3 + $0xc0] sm:$0xff] }
 0x29d   :  { %1810 = vrot.lane.b32.xlu1 %v1373_v31, %s2843_s20 }
 0x29e   :  { %1746 = vrot.lane.b32.xlu0 %v3823_v48, %s2836_s19 }
 0x29f   :  { %1682 = vrot.lane.b32.xlu2 %v1388_v42, %s2844_s2  ;;  %v1673_v49 = vpop.permute.xlu1 %1672 }
 0x2a0   :  { %v1609_v27 = vpop.permute.xlu0 %1608 }
 0x2a1   :  { %v1611_v50 = vpop.permute.xlu2 %1610  ;;  %v1961_v17 = vsel %vm713_vm2, %v1945_v37, %v1609_v27 }
 0x2a2   :  { %v1978_v38 = vsel %vm1977_vm15, %v1961_v17, %v1673_v49 }
 0x2a3   :  { %v1994_v19 = vsel %vm730_vm3, %v1978_v38, %v1737_v61 }
 0x2a5   :  { %1492 = vrot.lane.b32.xlu1 %v1388_v42, %s2834_s29 }
 0x2a6   :  { %1428 = vrot.lane.b32.xlu0 %v1372_v1, %s2842_s1 }
 0x2a7   :  { %1874 = vrot.lane.b32.xlu2 %v1389_v15, %s2839_s24  ;;  %v1865_v59 = vpop.permute.xlu1 %1864 }
 0x2a8   :  { %v1801_v46 = vpop.permute.xlu0 %1800 }
 0x2a9   :  { %v2011_v12 = vsel %vm2010_vm1, %v1994_v19, %v1801_v46  ;;  %v1803_v44 = vpop.permute.xlu2 %1802  ;;  %v1393_v19 = vld [vmem:[#allocation3 + $0xd2] sm:$0xff] }
 0x2aa   :  { %v2027_v18 = vsel %vm747_vm4, %v2011_v12, %v1865_v59 }
 0x2ab   :  { %2489 = vmatmul.msk.f32.vlgmr.msra.gmra.mxu2 %vm2056_vm5, %v2027_v18 }
 0x2ad   :  { %1684 = vrot.lane.b32.xlu1 %v1389_v15, %s2844_s2 }
 0x2ae   :  { %1620 = vrot.lane.b32.xlu0 %v1373_v31, %s2835_s30 }
 0x2af   :  { %1556 = vrot.lane.b32.xlu2 %v3823_v48, %s2845_s3  ;;  %v1547_v52 = vpop.permute.xlu1 %1546 }
 0x2b0   :  { %v1483_v9 = vpop.permute.xlu0 %1482 }
 0x2b1   :  { %v1485_v29 = vpop.permute.xlu2 %1484  ;;  %v1929_v56 = vsel %vm29_vm0, %v1913_v60, %v1483_v9  ;;  %v1377_v60 = vld [vmem:[#allocation3 + $0xd1] sm:$0xff] }
 0x2b2   :  { %v1946_v21 = vsel %vm1944_vm14, %v1929_v56, %v1547_v52 }
 0x2b3   :  { %v1962_v25 = vsel %vm713_vm2, %v1946_v21, %v1611_v50 }
 0x2b5   :  { %1876 = vrot.lane.b32.xlu1 %v1390_v51, %s2839_s24 }
 0x2b6   :  { %1812 = vrot.lane.b32.xlu0 %v1374_v62, %s2843_s20 }
 0x2b7   :  { %1748 = vrot.lane.b32.xlu2 %v1358_v33, %s2836_s19  ;;  %v1739_v53 = vpop.permute.xlu1 %1738 }
 0x2b8   :  { %v1675_v0 = vpop.permute.xlu0 %1674 }
 0x2b9   :  { %v1677_v45 = vpop.permute.xlu2 %1676  ;;  %v1979_v16 = vsel %vm1977_vm15, %v1962_v25, %v1675_v0 }
 0x2ba   :  { %v1995_v7 = vsel %vm730_vm3, %v1979_v16, %v1739_v53  ;;  %v3912_v53 = vld [vmem:[#allocation3 + $0xe0] sm:$0xff] }
 0x2bb   :  { %v2012_v40 = vsel %vm2010_vm1, %v1995_v7, %v1803_v44 }
 0x2bd   :  { %1558 = vrot.lane.b32.xlu1 %v1358_v33, %s2845_s3 }
 0x2be   :  { %1494 = vrot.lane.b32.xlu0 %v1389_v15, %s2834_s29 }
 0x2bf   :  { %1430 = vrot.lane.b32.xlu2 %v1373_v31, %s2842_s1  ;;  %v1421_v34 = vpop.permute.xlu1 %1420 }
 0x2c0   :  { %v1867_v41 = vpop.permute.xlu0 %1866  ;;  %v1914_v47 = vsel %vm1011_vm8, %v3728_v54, %v1421_v34  ;;  %v1343_v54 = vld [vmem:[#allocation3 + $0xb2] sm:$0xff] }
 0x2c1   :  { %v1869_v35 = vpop.permute.xlu2 %1868  ;;  %v2028_v22 = vsel %vm747_vm4, %v2012_v40, %v1867_v41  ;;  %v1930_v8 = vsel %vm29_vm0, %v1914_v47, %v1485_v29  ;;  %v3922_v41 = vld [vmem:[#allocation3 + $0xf2] sm:$0xff] }
 0x2c2   :  { %2490 = vmatmul.msk.f32.gmra.mxu2 %vm2056_vm5, %v2028_v22  ;;  %v3927_v40 = vld [vmem:[#allocation3 + $0xf1] sm:$0xff] }
 0x2c5   :  { %1624 = vrot.lane.b32.xlu1 %v1327_v14, %s2835_s30 }
 0x2c6   :  { %1686 = vrot.lane.b32.xlu0 %v1390_v51, %s2844_s2 }
 0x2c7   :  { %1622 = vrot.lane.b32.xlu2 %v1374_v62, %s2835_s30  ;;  %v1613_v6 = vpop.permute.xlu1 %1612 }
 0x2c8   :  { %v1549_v36 = vpop.permute.xlu0 %1548 }
 0x2c9   :  { %v1551_v30 = vpop.permute.xlu2 %1550  ;;  %v1947_v20 = vsel %vm1944_vm14, %v1930_v8, %v1549_v36  ;;  %v3934_v36 = vld [vmem:[#allocation3 + $0x100] sm:$0xff] }
 0x2ca   :  { %v1963_v2 = vsel %vm713_vm2, %v1947_v20, %v1613_v6  ;;  %v1378_v8 = vld [vmem:[#allocation3 + $0xe1] sm:$0xff] }
 0x2cb   :  { %v1980_v42 = vsel %vm1977_vm15, %v1963_v2, %v1677_v45  ;;  %v3941_v20 = vld [vmem:[#allocation3 + $0xe2] sm:$0xff] }
 0x2cd   :  { %1816 = vrot.lane.b32.xlu1 %v1376_v57, %s2843_s20 }
 0x2ce   :  { %1560 = vrot.lane.b32.xlu0 %v3868_v26, %s2845_s3 }
 0x2cf   :  { %1688 = vrot.lane.b32.xlu2 %v1343_v54, %s2844_s2  ;;  %v1805_v4 = vpop.permute.xlu1 %1804 }
 0x2d0   :  { %v1741_v63 = vpop.permute.xlu0 %1740 }
 0x2d1   :  { %v1996_v5 = vsel %vm730_vm3, %v1980_v42, %v1741_v63  ;;  %v1743_v1 = vpop.permute.xlu2 %1742 }
 0x2d2   :  { %v2013_v61 = vsel %vm2010_vm1, %v1996_v5, %v1805_v4 }
 0x2d3   :  { %v2029_v13 = vsel %vm747_vm4, %v2013_v61, %v1869_v35 }
 0x2d4   :  { %2491 = vmatmul.msk.f32.gmra.mxu2 %vm2056_vm5, %v2029_v13 }
 0x2d5   :  { %1498 = vrot.lane.b32.xlu1 %v1343_v54, %s2834_s29 }
 0x2d6   :  { %1752 = vrot.lane.b32.xlu0 %v3879_v3, %s2836_s19 }
 0x2d7   :  { %1880 = vrot.lane.b32.xlu2 %v1392_v43, %s2839_s24  ;;  %v1487_v31 = vpop.permute.xlu1 %1486 }
 0x2d8   :  { %v1423_v28 = vpop.permute.xlu0 %1422 }
 0x2d9   :  { %v1425_v49 = vpop.permute.xlu2 %1424  ;;  %v1915_v27 = vsel %vm1011_vm8, %v3736_v39, %v1423_v28  ;;  %v3897_v39 = vld [vmem:[#allocation3 + $0xd0] sm:$0xff] }
 0x2da   :  { %v1931_v37 = vsel %vm29_vm0, %v1915_v27, %v1487_v31  ;;  %v1916_v21 = vsel %vm1011_vm8, %v3749_v24, %v1425_v49  ;;  %v3957_v28 = vld [vmem:[#allocation3 + $0x110] sm:$0xff]  ;;  %v3959_v49 = vld [vmem:[#allocation3 + $0x101] sm:$0xff] }
 0x2db   :  { %v1948_v38 = vsel %vm1944_vm14, %v1931_v37, %v1551_v30  ;;  %v3965_v27 = vld [vmem:[#allocation3 + $0x102] sm:$0xff] }
 0x2dd   :  { %1690 = vrot.lane.b32.xlu1 %v1392_v43, %s2844_s2 }
 0x2de   :  { %1434 = vrot.lane.b32.xlu0 %v1327_v14, %s2842_s1 }
 0x2df   :  { %1562 = vrot.lane.b32.xlu2 %v3879_v3, %s2845_s3  ;;  %v1679_v50 = vpop.permute.xlu1 %1678 }
 0x2e0   :  { %v1615_v17 = vpop.permute.xlu0 %1614 }
 0x2e1   :  { %v1617_v15 = vpop.permute.xlu2 %1616  ;;  %v1964_v59 = vsel %vm713_vm2, %v1948_v38, %v1615_v17 }
 0x2e2   :  { %v1981_v46 = vsel %vm1977_vm15, %v1964_v59, %v1679_v50 }
 0x2e3   :  { %v1997_v18 = vsel %vm730_vm3, %v1981_v46, %v1743_v1 }
 0x2e5   :  { %1882 = vrot.lane.b32.xlu1 %v1393_v19, %s2839_s24 }
 0x2e6   :  { %1626 = vrot.lane.b32.xlu0 %v1376_v57, %s2835_s30 }
 0x2e7   :  { %1754 = vrot.lane.b32.xlu2 %v3897_v39, %s2836_s19  ;;  %v1871_v12 = vpop.permute.xlu1 %1870 }
 0x2e8   :  { %v1807_v44 = vpop.permute.xlu0 %1806 }
 0x2e9   :  { %v2014_v52 = vsel %vm2010_vm1, %v1997_v18, %v1807_v44  ;;  %v1809_v9 = vpop.permute.xlu2 %1808 }
 0x2ea   :  { %v2030_v29 = vsel %vm747_vm4, %v2014_v52, %v1871_v12  ;;  %v1381_v52 = vld [vmem:[#allocation3 + $0x111] sm:$0xff] }
 0x2eb   :  { %2492 = vmatmul.msk.f32.gmra.mxu2 %vm2056_vm5, %v2030_v29 }
 0x2ed   :  { %1564 = vrot.lane.b32.xlu1 %v3897_v39, %s2845_s3 }
 0x2ee   :  { %1818 = vrot.lane.b32.xlu0 %v1377_v60, %s2843_s20 }
 0x2ef   :  { %1436 = vrot.lane.b32.xlu2 %v1376_v57, %s2842_s1  ;;  %v1553_v56 = vpop.permute.xlu1 %1552 }
 0x2f0   :  { %v1489_v51 = vpop.permute.xlu0 %1488 }
 0x2f1   :  { %v1491_v62 = vpop.permute.xlu2 %1490  ;;  %v1932_v33 = vsel %vm29_vm0, %v1916_v21, %v1489_v51 }
 0x2f2   :  { %v1949_v0 = vsel %vm1944_vm14, %v1932_v33, %v1553_v56 }
 0x2f3   :  { %v1965_v16 = vsel %vm713_vm2, %v1949_v0, %v1617_v15  ;;  %v3971_v15 = vld [vmem:[#allocation3 + $0xf0] sm:$0xff] }
 0x2f5   :  { %1756 = vrot.lane.b32.xlu1 %v3912_v53, %s2836_s19 }
 0x2f6   :  { %1500 = vrot.lane.b32.xlu0 %v1392_v43, %s2834_s29 }
 0x2f7   :  { %1628 = vrot.lane.b32.xlu2 %v1377_v60, %s2835_s30  ;;  %v1745_v25 = vpop.permute.xlu1 %1744 }
 0x2f8   :  { %v1681_v45 = vpop.permute.xlu0 %1680 }
 0x2f9   :  { %v1683_v7 = vpop.permute.xlu2 %1682  ;;  %v1982_v24 = vsel %vm1977_vm15, %v1965_v16, %v1681_v45 }
 0x2fa   :  { %v1998_v34 = vsel %vm730_vm3, %v1982_v24, %v1745_v25 }
 0x2fb   :  { %v2015_v14 = vsel %vm2010_vm1, %v1998_v34, %v1809_v9  ;;  %v3985_v9 = vld [vmem:[#allocation3 + $0x112] sm:$0xff] }
 0x2fd   :  { %1506 = vrot.lane.b32.xlu1 %v3922_v41, %s2834_s29 }
 0x2fe   :  { %1692 = vrot.lane.b32.xlu0 %v1393_v19, %s2844_s2 }
 0x2ff   :  { %1442 = vrot.lane.b32.xlu2 %v3927_v40, %s2842_s1  ;;  %v1427_v35 = vpop.permute.xlu1 %1426 }
 0x300   :  { %v1873_v22 = vpop.permute.xlu0 %1872  ;;  %v1917_v30 = vsel %vm1011_vm8, %v3766_v58, %v1427_v35 }
 0x301   :  { %v1875_v47 = vpop.permute.xlu2 %1874  ;;  %v2031_v6 = vsel %vm747_vm4, %v2015_v14, %v1873_v22  ;;  %v1933_v54 = vsel %vm29_vm0, %v1917_v30, %v1491_v62 }
 0x302   :  { %2493 = vmatmul.msk.f32.gmra.mxu2 %vm2056_vm5, %v2031_v6 }
 0x305   :  { %1570 = vrot.lane.b32.xlu1 %v3934_v36, %s2845_s3 }
 0x306   :  { %1820 = vrot.lane.b32.xlu0 %v1378_v8, %s2843_s20 }
 0x307   :  { %1884 = vrot.lane.b32.xlu2 %v3941_v20, %s2839_s24  ;;  %v1619_v2 = vpop.permute.xlu1 %1618 }
 0x308   :  { %v1555_v57 = vpop.permute.xlu0 %1554 }
 0x309   :  { %v1557_v4 = vpop.permute.xlu2 %1556  ;;  %v1950_v63 = vsel %vm1944_vm14, %v1933_v54, %v1555_v57 }
 0x30a   :  { %v1966_v42 = vsel %vm713_vm2, %v1950_v63, %v1619_v2 }
 0x30b   :  { %v1983_v1 = vsel %vm1977_vm15, %v1966_v42, %v1683_v7 }
 0x30d   :  { %1566 = vrot.lane.b32.xlu1 %v3912_v53, %s2845_s3 }
 0x30e   :  { %1438 = vrot.lane.b32.xlu0 %v1377_v60, %s2842_s1 }
 0x30f   :  { %1502 = vrot.lane.b32.xlu2 %v1393_v19, %s2834_s29  ;;  %v1811_v58 = vpop.permute.xlu1 %1810 }
 0x310   :  { %v1747_v5 = vpop.permute.xlu0 %1746 }
 0x311   :  { %v1999_v61 = vsel %vm730_vm3, %v1983_v1, %v1747_v5  ;;  %v1749_v13 = vpop.permute.xlu2 %1748 }
 0x312   :  { %v2016_v43 = vsel %vm2010_vm1, %v1999_v61, %v1811_v58 }
 0x313   :  { %v2032_v31 = vsel %vm747_vm4, %v2016_v43, %v1875_v47 }
 0x314   :  { %2494 = vmatmul.msk.f32.gmra.mxu2 %vm2056_vm5, %v2032_v31 }
 0x315   :  { %1762 = vrot.lane.b32.xlu1 %v3957_v28, %s2836_s19 }
 0x316   :  { %1634 = vrot.lane.b32.xlu0 %v3959_v49, %s2835_s30 }
 0x317   :  { %1698 = vrot.lane.b32.xlu2 %v3965_v27, %s2844_s2  ;;  %v1493_v37 = vpop.permute.xlu1 %1492 }
 0x318   :  { %v1429_v50 = vpop.permute.xlu0 %1428 }
 0x319   :  { %v1431_v17 = vpop.permute.xlu2 %1430  ;;  %v1918_v38 = vsel %vm1011_vm8, %v3797_v32, %v1429_v50 }
 0x31a   :  { %v1934_v59 = vsel %vm29_vm0, %v1918_v38, %v1493_v37  ;;  %v1919_v25 = vsel %vm1011_vm8, %v3823_v48, %v1431_v17 }
 0x31b   :  { %v1951_v12 = vsel %vm1944_vm14, %v1934_v59, %v1557_v4 }
 0x31d   :  { %1758 = vrot.lane.b32.xlu1 %v3971_v15, %s2836_s19 }
 0x31e   :  { %1630 = vrot.lane.b32.xlu0 %v1378_v8, %s2835_s30 }
 0x31f   :  { %1694 = vrot.lane.b32.xlu2 %v3941_v20, %s2844_s2  ;;  %v1685_v46 = vpop.permute.xlu1 %1684 }
 0x320   :  { %v1621_v19 = vpop.permute.xlu0 %1620 }
 0x321   :  { %v1623_v44 = vpop.permute.xlu2 %1622  ;;  %v1967_v18 = vsel %vm713_vm2, %v1951_v12, %v1621_v19  ;;  %v1399_v12 = vld [vmem:[#allocation3 + $0x132] sm:$0xff] }
 0x322   :  { %v1984_v32 = vsel %vm1977_vm15, %v1967_v18, %v1685_v46 }
 0x323   :  { %v2000_v56 = vsel %vm730_vm3, %v1984_v32, %v1749_v13  ;;  %v1398_v13 = vld [vmem:[#allocation3 + $0x122] sm:$0xff] }
 0x325   :  { %1822 = vrot.lane.b32.xlu1 %v3927_v40, %s2843_s20 }
 0x326   :  { %1826 = vrot.lane.b32.xlu0 %v1381_v52, %s2843_s20 }
 0x327   :  { %1890 = vrot.lane.b32.xlu2 %v3985_v9, %s2839_s24  ;;  %v1877_v29 = vpop.permute.xlu1 %1876 }
 0x328   :  { %v1813_v60 = vpop.permute.xlu0 %1812 }
 0x329   :  { %v2017_v51 = vsel %vm2010_vm1, %v2000_v56, %v1813_v60  ;;  %v1689_v62 = vpop.permute.xlu2 %1688 }
 0x32a   :  { %v2033_v21 = vsel %vm747_vm4, %v2017_v51, %v1877_v29 }
 0x32b   :  { %2495 = vmatmul.msk.f32.gmra.mxu2 %vm2056_vm5, %v2033_v21 }
 0x32d   :  { %1440 = vrot.lane.b32.xlu1 %v1378_v8, %s2842_s1 }
 0x32e   :  { %1444 = vrot.lane.b32.xlu0 %v3959_v49, %s2842_s1 }
 0x32f   :  { %1508 = vrot.lane.b32.xlu2 %v3965_v27, %s2834_s29  ;;  %v1559_v33 = vpop.permute.xlu1 %1558 }
 0x330   :  { %v1495_v0 = vpop.permute.xlu0 %1494 }
 0x331   :  { %v1881_v45 = vpop.permute.xlu2 %1880  ;;  %v1935_v16 = vsel %vm29_vm0, %v1919_v25, %v1495_v0 }
 0x332   :  { %v1952_v7 = vsel %vm1944_vm14, %v1935_v16, %v1559_v33 }
 0x333   :  { %v1968_v35 = vsel %vm713_vm2, %v1952_v7, %v1623_v44  ;;  %v1367_v44 = vld [vmem:[#allocation3 + $0x130] sm:$0xff] }
 0x335   :  { %1636 = vrot.lane.b32.xlu1 %v1381_v52, %s2835_s30 }
 0x336   :  { %1886 = vrot.lane.b32.xlu0 %v3922_v41, %s2839_s24 }
 0x337   :  { %1572 = vrot.lane.b32.xlu2 %v3957_v28, %s2845_s3  ;;  %v1625_v24 = vpop.permute.xlu1 %1624 }
 0x338   :  { %v1687_v34 = vpop.permute.xlu0 %1686 }
 0x339   :  { %v1985_v22 = vsel %vm1977_vm15, %v1968_v35, %v1687_v34  ;;  %v1563_v48 = vpop.permute.xlu2 %1562 }
 0x33a   :  { %v2001_v14 = vsel %vm730_vm3, %v1985_v22, %v3786_v55 }
 0x33b   :  { %v2018_v47 = vsel %vm2010_vm1, %v2001_v14, %v3762_v23 }
 0x33c   :  { %v2034_v6 = vsel %vm747_vm4, %v2018_v47, %v3819_v11  ;;  %v1382_v11 = vld [vmem:[#allocation3 + $0x121] sm:$0xff] }
 0x33d   :  { %2496 = vmatmul.msk.f32.gmra.mxu2 %vm2056_vm5, %v2034_v6  ;;  %1632 = vrot.lane.b32.xlu1 %v3927_v40, %s2835_s30  ;;  %v1366_v40 = vld [vmem:[#allocation3 + $0x120] sm:$0xff] }
 0x33e   :  { %1504 = vrot.lane.b32.xlu0 %v3941_v20, %s2834_s29 }
 0x33f   :  { %1568 = vrot.lane.b32.xlu2 %v3971_v15, %s2845_s3  ;;  %v1817_v8 = vpop.permute.xlu1 %1816 }
 0x340   :  { %v1561_v30 = vpop.permute.xlu0 %1560 }
 0x341   :  { %v1755_v55 = vpop.permute.xlu2 %1754  ;;  %v1953_v23 = vsel %vm1944_vm14, %v3813_v10, %v1561_v30 }
 0x342   :  { %v1969_v2 = vsel %vm713_vm2, %v1953_v23, %v1625_v24 }
 0x343   :  { %v1986_v54 = vsel %vm1977_vm15, %v1969_v2, %v1689_v62 }
 0x345   :  { %1828 = vrot.lane.b32.xlu1 %v1382_v11, %s2843_s20 }
 0x346   :  { %1700 = vrot.lane.b32.xlu0 %v3985_v9, %s2844_s2 }
 0x347   :  { %1764 = vrot.lane.b32.xlu2 %v1366_v40, %s2836_s19  ;;  %v1499_v20 = vpop.permute.xlu1 %1498 }
 0x348   :  { %v1753_v57 = vpop.permute.xlu0 %1752 }
 0x349   :  { %v2002_v4 = vsel %vm730_vm3, %v1986_v54, %v1753_v57  ;;  %v1437_v63 = vpop.permute.xlu2 %1436 }
 0x34a   :  { %v2019_v10 = vsel %vm2010_vm1, %v2002_v4, %v1817_v8 }
 0x34b   :  { %v2035_v42 = vsel %vm747_vm4, %v2019_v10, %v1881_v45 }
 0x34c   :  { %2497 = vmatmul.msk.f32.gmra.mxu2 %vm2056_vm5, %v2035_v42 }
 0x34d   :  { %1446 = vrot.lane.b32.xlu1 %v1381_v52, %s2842_s1  ;;  %v1383_v52 = vld [vmem:[#allocation3 + $0x131] sm:$0xff] }
 0x34e   :  { %1696 = vrot.lane.b32.xlu0 %v3922_v41, %s2844_s2 }
 0x34f   :  { %1760 = vrot.lane.b32.xlu2 %v3934_v36, %s2836_s19  ;;  %v1691_v58 = vpop.permute.xlu1 %1690 }
 0x350   :  { %v1435_v5 = vpop.permute.xlu0 %1434 }
 0x351   :  { %v1629_v1 = vpop.permute.xlu2 %1628  ;;  %v1921_v61 = vsel %vm1011_vm8, %v3868_v26, %v1435_v5 }
 0x352   :  { %v1937_v43 = vsel %vm29_vm0, %v1921_v61, %v1499_v20 }
 0x353   :  { %v1954_v37 = vsel %vm1944_vm14, %v1937_v43, %v1563_v48 }
 0x355   :  { %1888 = vrot.lane.b32.xlu1 %v3965_v27, %s2839_s24 }
 0x356   :  { %1892 = vrot.lane.b32.xlu0 %v1398_v13, %s2839_s24 }
 0x357   :  { %1824 = vrot.lane.b32.xlu2 %v3959_v49, %s2843_s20  ;;  %v1883_v41 = vpop.permute.xlu1 %1882 }
 0x358   :  { %v1627_v31 = vpop.permute.xlu0 %1626 }
 0x359   :  { %v1443_v50 = vpop.permute.xlu2 %1442  ;;  %v1970_v17 = vsel %vm713_vm2, %v1954_v37, %v1627_v31 }
 0x35a   :  { %v1987_v26 = vsel %vm1977_vm15, %v1970_v17, %v1691_v58  ;;  %v1925_v47 = vsel %vm1011_vm8, %v3971_v15, %v1443_v50 }
 0x35b   :  { %v2003_v49 = vsel %vm730_vm3, %v1987_v26, %v1755_v55 }
 0x35d   :  { %1702 = vrot.lane.b32.xlu1 %v1398_v13, %s2844_s2 }
 0x35e   :  { %1510 = vrot.lane.b32.xlu0 %v3985_v9, %s2834_s29  ;;  %v1922_v9 = vsel %vm1011_vm8, %v3879_v3, %v1437_v63 }
 0x35f   :  { %1574 = vrot.lane.b32.xlu2 %v1366_v40, %s2845_s3  ;;  %v1565_v27 = vpop.permute.xlu1 %1564 }
 0x360   :  { %v1819_v38 = vpop.permute.xlu0 %1818 }
 0x361   :  { %v2020_v59 = vsel %vm2010_vm1, %v2003_v49, %v1819_v38  ;;  %v1885_v19 = vpop.permute.xlu2 %1884 }
 0x362   :  { %v2036_v46 = vsel %vm747_vm4, %v2020_v59, %v1883_v41 }
 0x363   :  { %2498 = vmatmul.msk.f32.gmra.mxu2 %vm2056_vm5, %v2036_v46 }
 0x365   :  { %1894 = vrot.lane.b32.xlu1 %v1399_v12, %s2839_s24  ;;  %s2850_s24 = smov 12  }
 0x366   :  { %1638 = vrot.lane.b32.xlu0 %v1382_v11, %s2835_s30  ;;  %s2847_s30 = smov 120  }
 0x367   :  { %1766 = vrot.lane.b32.xlu2 %v1367_v44, %s2836_s19  ;;  %v1757_v18 = vpop.permute.xlu1 %1756  ;;  %s2848_s19 = smov 124  }
 0x368   :  { %v1501_v32 = vpop.permute.xlu0 %1500 }
 0x369   :  { %v1503_v29 = vpop.permute.xlu2 %1502  ;;  %v1938_v60 = vsel %vm29_vm0, %v1922_v9, %v1501_v32 }
 0x36a   :  { %v1955_v62 = vsel %vm1944_vm14, %v1938_v60, %v1565_v27 }
 0x36b   :  { %v1971_v21 = vsel %vm713_vm2, %v1955_v62, %v1629_v1 }
 0x36e   :  { %1830 = vrot.lane.b32.xlu0 %v1383_v52, %s2843_s20  ;;  %s2851_s20 = smov 4  }
 0x36f   :  { %v1507_v56 = vpop.permute.xlu1 %1506 }
 0x370   :  { %v1693_v51 = vpop.permute.xlu0 %1692  ;;  %v1941_v6 = vsel %vm29_vm0, %v1925_v47, %v1507_v56 }
 0x371   :  { %v1988_v33 = vsel %vm1977_vm15, %v1971_v21, %v1693_v51  ;;  %v1699_v0 = vpop.permute.xlu2 %1698 }
 0x372   :  { %v2004_v16 = vsel %vm730_vm3, %v1988_v33, %v1757_v18 }
 0x377   :  { %v1571_v25 = vpop.permute.xlu1 %1570 }
 0x378   :  { %v1821_v45 = vpop.permute.xlu0 %1820  ;;  %v1958_v55 = vsel %vm1944_vm14, %v1941_v6, %v1571_v25 }
 0x379   :  { %v2021_v3 = vsel %vm2010_vm1, %v2004_v16, %v1821_v45  ;;  %v1695_v35 = vpop.permute.xlu2 %1694 }
 0x37a   :  { %v2037_v7 = vsel %vm747_vm4, %v2021_v3, %v1885_v19 }
 0x37b   :  { %2499 = vmatmul.msk.f32.gmra.mxu2 %vm2056_vm5, %v2037_v7 }
 0x37f   :  { %v1567_v24 = vpop.permute.xlu1 %1566 }
 0x380   :  { %v1439_v34 = vpop.permute.xlu0 %1438 }
 0x381   :  { %v1891_v14 = vpop.permute.xlu2 %1890  ;;  %v1923_v15 = vsel %vm1011_vm8, %v3897_v39, %v1439_v34 }
 0x382   :  { %v1939_v63 = vsel %vm29_vm0, %v1923_v15, %v1503_v29 }
 0x383   :  { %v1956_v42 = vsel %vm1944_vm14, %v1939_v63, %v1567_v24 }
 0x387   :  { %v1763_v22 = vpop.permute.xlu1 %1762 }
 0x388   :  { %v1635_v48 = vpop.permute.xlu0 %1634 }
 0x389   :  { %v1974_v23 = vsel %vm713_vm2, %v1958_v55, %v1635_v48  ;;  %v1509_v11 = vpop.permute.xlu2 %1508 }
 0x38a   :  { %v1991_v2 = vsel %vm1977_vm15, %v1974_v23, %v1699_v0 }
 0x38b   :  { %v2007_v57 = vsel %vm730_vm3, %v1991_v2, %v1763_v22 }
 0x38f   :  { %v1759_v8 = vpop.permute.xlu1 %1758 }
 0x390   :  { %v1631_v30 = vpop.permute.xlu0 %1630 }
 0x391   :  { %v1573_v10 = vpop.permute.xlu2 %1572  ;;  %v1972_v1 = vsel %vm713_vm2, %v1956_v42, %v1631_v30 }
 0x392   :  { %v1989_v61 = vsel %vm1977_vm15, %v1972_v1, %v1695_v35 }
 0x393   :  { %v2005_v13 = vsel %vm730_vm3, %v1989_v61, %v1759_v8 }
 0x397   :  { %v1823_v40 = vpop.permute.xlu1 %1822 }
 0x398   :  { %v1827_v20 = vpop.permute.xlu0 %1826  ;;  %v2022_v43 = vsel %vm2010_vm1, %v2005_v13, %v1823_v40 }
 0x399   :  { %v2024_v54 = vsel %vm2010_vm1, %v2007_v57, %v1827_v20  ;;  %v1569_v31 = vpop.permute.xlu2 %1568 }
 0x39a   :  { %v2040_v4 = vsel %vm747_vm4, %v2024_v54, %v1891_v14 }
 0x39b   :  { %2502 = vmatmul.msk.f32.vlgmr.msrb.gmra.mxu3 %vm2056_vm5, %v2040_v4 }
 0x39f   :  { %v1441_v58 = vpop.permute.xlu1 %1440 }
 0x3a0   :  { %v1445_v5 = vpop.permute.xlu0 %1444  ;;  %v1924_v49 = vsel %vm1011_vm8, %v3912_v53, %v1441_v58 }
 0x3a1   :  { %v1765_v26 = vpop.permute.xlu2 %1764  ;;  %v1926_v59 = vsel %vm1011_vm8, %v3934_v36, %v1445_v5 }
 0x3a2   :  { %v1942_v19 = vsel %vm29_vm0, %v1926_v59, %v1509_v11 }
 0x3a3   :  { %v1959_v18 = vsel %vm1944_vm14, %v1942_v19, %v1573_v10  ;;  %v2824_v10 = vld [vmem:[%s4370_s5] ss:$0 sm:$0xff]  ;;  %s2846_s5 = smov 116  }
 0x3a7   :  { %v1637_v39 = vpop.permute.xlu1 %1636 }
 0x3a8   :  { %v1887_v41 = vpop.permute.xlu0 %1886  ;;  %v1975_v9 = vsel %vm713_vm2, %v1959_v18, %v1637_v39 }
 0x3a9   :  { %v2038_v37 = vsel %vm747_vm4, %v2022_v43, %v1887_v41  ;;  %v1761_v12 = vpop.permute.xlu2 %1760 }
 0x3aa   :  { %2500 = vmatmul.msk.f32.gmra.mxu2 %vm2056_vm5, %v2038_v37 }
 0x3af   :  { %v1633_v50 = vpop.permute.xlu1 %1632 }
 0x3b0   :  { %v1505_v17 = vpop.permute.xlu0 %1504 }
 0x3b1   :  { %v1940_v46 = vsel %vm29_vm0, %v1924_v49, %v1505_v17  ;;  %v1825_v51 = vpop.permute.xlu2 %1824 }
 0x3b2   :  { %v1957_v44 = vsel %vm1944_vm14, %v1940_v46, %v1569_v31 }
 0x3b3   :  { %v1973_v29 = vsel %vm713_vm2, %v1957_v44, %v1633_v50 }
 0x3b7   :  { %v1829_v27 = vpop.permute.xlu1 %1828 }
 0x3b8   :  { %v1701_v38 = vpop.permute.xlu0 %1700 }
 0x3b9   :  { %v1992_v53 = vsel %vm1977_vm15, %v1975_v9, %v1701_v38  ;;  %v1575_v3 = vpop.permute.xlu2 %1574 }
 0x3ba   :  { %v2008_v36 = vsel %vm730_vm3, %v1992_v53, %v1765_v26 }
 0x3bb   :  { %v2025_v0 = vsel %vm2010_vm1, %v2008_v36, %v1829_v27 }
 0x3bf   :  { %v1447_v32 = vpop.permute.xlu1 %1446 }
 0x3c0   :  { %v1697_v52 = vpop.permute.xlu0 %1696  ;;  %v1927_v7 = vsel %vm1011_vm8, %v3957_v28, %v1447_v32  ;;  %v2122_v28 = vpop.f32.mrf.mxu2 }
 0x3c1   :  { %v1990_v60 = vsel %vm1977_vm15, %v1973_v29, %v1697_v52  ;;  %v1767_v47 = vpop.permute.xlu2 %1766  ;;  %v4127_v58 = vadd.f32 %v2824_v10, %v2122_v28 }
 0x3c2   :  { %v2006_v56 = vsel %vm730_vm3, %v1990_v60, %v1761_v12 }
 0x3c3   :  { %v2023_v33 = vsel %vm2010_vm1, %v2006_v56, %v1825_v51  ;;  %v2170_v43 = vsel %vm29_vm0, %v4127_v58, 0.0 }
 0x3c7   :  { %v1889_v62 = vpop.permute.xlu1 %1888 }
 0x3c8   :  { %v1893_v21 = vpop.permute.xlu0 %1892  ;;  %v2039_v25 = vsel %vm747_vm4, %v2023_v33, %v1889_v62  ;;  %v2125_v2 = vpop.f32.mrf.mxu2 }
 0x3c9   :  { %v2041_v45 = vsel %vm747_vm4, %v2025_v0, %v1893_v21  ;;  %2501 = vmatmul.msk.f32.gmra.mxu2 %vm2056_vm5, %v2039_v25  ;;  %v4125_v42 = vadd.f32 %v2824_v10, %v2125_v2 }
 0x3ca   :  { %2503 = vmatmul.msk.f32.gmra.mxu3 %vm2056_vm5, %v2041_v45 }
 0x3cb   :  { %v2171_v61 = vsel %vm29_vm0, %v4125_v42, 0.0 }
 0x3cc   :  { %v2172_v31 = vadd.f32 %v2171_v61, %v2170_v43 }
 0x3cf   :  { %v1703_v34 = vpop.permute.xlu1 %1702 }
 0x3d0   :  { %v1511_v16 = vpop.permute.xlu0 %1510  ;;  %v2128_v11 = vpop.f32.mrf.mxu2 }
 0x3d1   :  { %v1943_v24 = vsel %vm29_vm0, %v1927_v7, %v1511_v16  ;;  %v4129_v5 = vadd.f32 %v2824_v10, %v2128_v11 }
 0x3d2   :  { %v1960_v22 = vsel %vm1944_vm14, %v1943_v24, %v1575_v3 }
 0x3d3   :  { %v2173_v39 = vsel %vm29_vm0, %v4129_v5, 0.0 }
 0x3d4   :  { %v2174_v17 = vadd.f32 %v2173_v39, %v2172_v31 }
 0x3d7   :  { %v1895_v6 = vpop.permute.xlu1 %1894 }
 0x3d8   :  { %v1639_v35 = vpop.permute.xlu0 %1638  ;;  %v2131_v40 = vpop.f32.mrf.mxu2 }
 0x3d9   :  { %v1976_v48 = vsel %vm713_vm2, %v1960_v22, %v1639_v35  ;;  %v4133_v13 = vadd.f32 %v2824_v10, %v2131_v40 }
 0x3da   :  { %v1993_v14 = vsel %vm1977_vm15, %v1976_v48, %v1703_v34 }
 0x3db   :  { %v2009_v8 = vsel %vm730_vm3, %v1993_v14, %v1767_v47  ;;  %v2175_v37 = vsel %vm29_vm0, %v4133_v13, 0.0  ;;  %vm2238_vm3 = vcmask 31744  }
 0x3dc   :  { %v2176_v38 = vadd.f32 %v2175_v37, %v2174_v17 }
 0x3e0   :  { %v1831_v30 = vpop.permute.xlu0 %1830  ;;  %v2134_v20 = vpop.f32.mrf.mxu2 }
 0x3e1   :  { %v2026_v55 = vsel %vm2010_vm1, %v2009_v8, %v1831_v30  ;;  %v4139_v41 = vadd.f32 %v2824_v10, %v2134_v20 }
 0x3e2   :  { %v2042_v23 = vsel %vm747_vm4, %v2026_v55, %v1895_v6  ;;  %vm2241_vm4 = vcmask 97280  }
 0x3e3   :  { %2504 = vmatmul.msk.f32.gmra.mxu3 %vm2056_vm5, %v2042_v23  ;;  %v2177_v26 = vsel %vm29_vm0, %v4139_v41, 0.0 }
 0x3e4   :  { %v2178_v19 = vadd.f32 %v2177_v26, %v2176_v38 }
 0x3e8   :  { %v2137_v57 = vpop.f32.mrf.mxu2 }
 0x3e9   :  { %v4143_v50 = vadd.f32 %v2824_v10, %v2137_v57 }
 0x3eb   :  { %v2179_v59 = vsel %vm29_vm0, %v4143_v50, 0.0 }
 0x3ec   :  { %v2180_v18 = vadd.f32 %v2179_v59, %v2178_v19 }
 0x3f0   :  { %v2140_v54 = vpop.f32.mrf.mxu2 }
 0x3f1   :  { %v4147_v27 = vadd.f32 %v2824_v10, %v2140_v54  ;;  %v2849_v54 = vmov 512.0  }
 0x3f2   :  { %2829 = vrcp.f32 %v2849_v54 }
 0x3f3   :  { %v2181_v12 = vsel %vm29_vm0, %v4147_v27, 0.0 }
 0x3f4   :  { %v2182_v9 = vadd.f32 %v2181_v12, %v2180_v18 }
 0x3f8   :  { %v2143_v15 = vpop.f32.mrf.mxu2 }
 0x3f9   :  { %v4151_v46 = vadd.f32 %v2824_v10, %v2143_v15  ;;  %v2830_v15 = vpop.eup %2829 }
 0x3fa   :  { %vm2225_vm2 = vweird.f32 %v2830_v15 }
 0x3fb   :  { %v2183_v32 = vsel %vm29_vm0, %v4151_v46, 0.0 }
 0x3fc   :  { %v2184_v60 = vadd.f32 %v2183_v32, %v2182_v9 }
 0x400   :  { %v2146_v4 = vpop.f32.mrf.mxu2 }
 0x401   :  { %v4155_v44 = vadd.f32 %v2824_v10, %v2146_v4  ;;  %v2221_v4 = vmul.f32 512.0, %v2830_v15 }
 0x403   :  { %v2185_v29 = vsel %vm29_vm0, %v4155_v44, 0.0 }
 0x404   :  { %v2186_v21 = vadd.f32 %v2185_v29, %v2184_v60 }
 0x408   :  { %v2149_v63 = vpop.f32.mrf.mxu2 }
 0x409   :  { %v4159_v52 = vadd.f32 %v2824_v10, %v2149_v63  ;;  %v2222_v63 = vsub.f32 1.0, %v2221_v4 }
 0x40b   :  { %v2187_v51 = vsel %vm29_vm0, %v4159_v52, 0.0 }
 0x40c   :  { %v2188_v25 = vadd.f32 %v2187_v51, %v2186_v21 }
 0x410   :  { %v2152_v1 = vpop.f32.mrf.mxu2 }
 0x411   :  { %v4163_v53 = vadd.f32 %v2824_v10, %v2152_v1 }
 0x413   :  { %v2189_v33 = vsel %vm29_vm0, %v4163_v53, 0.0 }
 0x414   :  { %v2190_v16 = vadd.f32 %v2189_v33, %v2188_v25 }
 0x41e   :  { %v2161_v36 = vpop.f32.mrf.mxu3 }
 0x41f   :  { %v4177_v34 = vadd.f32 %v2824_v10, %v2161_v36 }
 0x421   :  { %v2195_v22 = vsel %vm29_vm0, %v4177_v34, 0.0 }
 0x42d   :  { %v2155_v49 = vpop.f32.mrf.mxu2 }
 0x42e   :  { %v4167_v62 = vadd.f32 %v2824_v10, %v2155_v49 }
 0x430   :  { %v2191_v45 = vsel %vm29_vm0, %v4167_v62, 0.0 }
 0x431   :  { %v2192_v7 = vadd.f32 %v2191_v45, %v2190_v16 }
 0x44c   :  { %v2158_v56 = vpop.f32.mrf.mxu2 }
 0x44d   :  { %v4171_v0 = vadd.f32 %v2824_v10, %v2158_v56  ;;  %v2164_v24 = vpop.f32.mrf.mxu3 }
 0x44e   :  { %v4181_v48 = vadd.f32 %v2824_v10, %v2164_v24 }
 0x44f   :  { %v2193_v3 = vsel %vm29_vm0, %v4171_v0, 0.0 }
 0x450   :  { %v2194_v35 = vadd.f32 %v2193_v3, %v2192_v7  ;;  %v2197_v6 = vsel %vm29_vm0, %v4181_v48, 0.0 }
 0x452   :  { %v2196_v14 = vadd.f32 %v2195_v22, %v2194_v35 }
 0x454   :  { %v2198_v30 = vadd.f32 %v2197_v6, %v2196_v14 }
 0x466   :  { %v2167_v47 = vpop.f32.mrf.mxu3 }
 0x467   :  { %v4185_v8 = vadd.f32 %v2824_v10, %v2167_v47  ;;  %v2223_v10 = vmul.f32 %v2830_v15, %v2222_v63 }
 0x469   :  { %v2199_v55 = vsel %vm29_vm0, %v4185_v8, 0.0  ;;  %v2224_v61 = vadd.f32 %v2830_v15, %v2223_v10 }
 0x46a   :  { %v2200_v23 = vadd.f32 %v2199_v55, %v2198_v30 }
 0x46b   :  { %v4192_v17 = vsel %vm2225_vm2, %v2830_v15, %v2224_v61 }
 0x46c   :  { %v2201_v28 = vrot.slane %v2200_v23, 4 }
 0x46e   :  { %v2202_v2 = vadd.f32 %v2201_v28, %v2200_v23 }
 0x470   :  { %v2203_v11 = vrot.slane %v2202_v2, 2 }
 0x472   :  { %v2204_v40 = vadd.f32 %v2203_v11, %v2202_v2 }
 0x474   :  { %v2205_v20 = vrot.slane %v2204_v40, 1 }
 0x476   :  { %v2206_v57 = vadd.f32 %v2205_v20, %v2204_v40 }
 0x478   :  { %2216 = vrot.lane.b32.xlu1 %v2206_v57, %s2846_s5  ;;  %2212 = vrot.lane.b32.xlu0 %v2206_v57, %s2847_s30 }
 0x479   :  { %2208 = vrot.lane.b32.xlu2 %v2206_v57, %s2848_s19 }
 0x4d3   :  { %v2209_v1 = vpop.permute.xlu2 %2208 }
 0x4d4   :  { %v2211_v43 = vadd.f32 %v2209_v1, %v2206_v57 }
 0x4ea   :  { %v2213_v39 = vpop.permute.xlu0 %2212  ;;  %v2217_v37 = vpop.permute.xlu1 %2216 }
 0x4eb   :  { %v2215_v31 = vadd.f32 %v2213_v39, %v2211_v43 }
 0x4ed   :  { %v2219_v26 = vadd.f32 %v2217_v37, %v2215_v31 }
 0x4ef   :  { %v4195_v38 = vmul.f32 %v4192_v17, %v2219_v26 }
 0x4f1   :  { %2235 = vrot.lane.b32.xlu1 %v4195_v38, %s2850_s24  ;;  %2232 = vrot.lane.b32.xlu0 %v4195_v38, %s2842_s1 }
 0x4f2   :  { %2229 = vrot.lane.b32.xlu2 %v4195_v38, %s2851_s20 }
 0x54c   :  { %v2230_v49 = vpop.permute.xlu2 %2229 }
 0x54d   :  { %v2239_v59 = vsel %vm2238_vm3, %v4195_v38, %v2230_v49 }
 0x563   :  { %v2236_v19 = vpop.permute.xlu1 %2235  ;;  %v2233_v12 = vpop.permute.xlu0 %2232 }
 0x564   :  { %v2240_v18 = vsel %vm1011_vm8, %v2239_v59, %v2233_v12 }
 0x565   :  { %v2242_v32 = vsel %vm2241_vm4, %v2240_v18, %v2236_v19 }
 0x566   :  { %v2243_v9 = vperm.slane %v2242_v32, 0 }
 0x568   :  { %v2244_v29 = vsub.f32 %v4127_v58, %v2243_v9  ;;  %v2245_v60 = vsub.f32 %v4125_v42, %v2243_v9  ;;  %v2246_v36 = vsub.f32 %v4129_v5, %v2243_v9  ;;  %v2247_v56 = vsub.f32 %v4133_v13, %v2243_v9 }
 0x569   :  { %v2248_v33 = vsub.f32 %v4139_v41, %v2243_v9  ;;  %v2249_v45 = vsub.f32 %v4143_v50, %v2243_v9  ;;  %v2250_v35 = vsub.f32 %v4147_v27, %v2243_v9  ;;  %v2251_v6 = vsub.f32 %v4151_v46, %v2243_v9 }
 0x56a   :  { %v2260_v51 = vmul.f32 %v2244_v29, %v2244_v29  ;;  %v2261_v21 = vmul.f32 %v2245_v60, %v2245_v60  ;;  %v2262_v25 = vmul.f32 %v2246_v36, %v2246_v36  ;;  %v2263_v16 = vmul.f32 %v2247_v56, %v2247_v56 }
 0x56b   :  { %v2264_v22 = vmul.f32 %v2248_v33, %v2248_v33  ;;  %v2265_v30 = vmul.f32 %v2249_v45, %v2249_v45  ;;  %v2252_v28 = vsub.f32 %v4155_v44, %v2243_v9  ;;  %v2266_v2 = vmul.f32 %v2250_v35, %v2250_v35 }
 0x56c   :  { %v2276_v3 = vsel %vm29_vm0, %v2260_v51, 0.0  ;;  %v2277_v7 = vsel %vm29_vm0, %v2261_v21, 0.0  ;;  %v2279_v14 = vsel %vm29_vm0, %v2262_v25, 0.0  ;;  %v2281_v55 = vsel %vm29_vm0, %v2263_v16, 0.0 }
 0x56d   :  { %v2278_v24 = vadd.f32 %v2277_v7, %v2276_v3  ;;  %v2283_v11 = vsel %vm29_vm0, %v2264_v22, 0.0  ;;  %v2253_v20 = vsub.f32 %v4159_v52, %v2243_v9  ;;  %v2267_v57 = vmul.f32 %v2251_v6, %v2251_v6 }
 0x56e   :  { %v2285_v54 = vsel %vm29_vm0, %v2265_v30, 0.0  ;;  %v2254_v4 = vsub.f32 %v4163_v53, %v2243_v9  ;;  %v2268_v63 = vmul.f32 %v2252_v28, %v2252_v28  ;;  %v2287_v10 = vsel %vm29_vm0, %v2266_v2, 0.0 }
 0x56f   :  { %v2280_v47 = vadd.f32 %v2279_v14, %v2278_v24  ;;  %v2255_v61 = vsub.f32 %v4167_v62, %v2243_v9  ;;  %v2269_v43 = vmul.f32 %v2253_v20, %v2253_v20  ;;  %v2289_v39 = vsel %vm29_vm0, %v2267_v57, 0.0 }
 0x570   :  { %v2256_v37 = vsub.f32 %v4171_v0, %v2243_v9  ;;  %v2270_v26 = vmul.f32 %v2254_v4, %v2254_v4  ;;  %v2291_v49 = vsel %vm29_vm0, %v2268_v63, 0.0  ;;  %v2257_v19 = vsub.f32 %v4177_v34, %v2243_v9 }
 0x571   :  { %v2282_v23 = vadd.f32 %v2281_v55, %v2280_v47  ;;  %v2271_v12 = vmul.f32 %v2255_v61, %v2255_v61  ;;  %v2293_v18 = vsel %vm29_vm0, %v2269_v43, 0.0  ;;  %v2258_v29 = vsub.f32 %v4181_v48, %v2243_v9 }
 0x572   :  { %v2272_v60 = vmul.f32 %v2256_v37, %v2256_v37  ;;  %v2295_v36 = vsel %vm29_vm0, %v2270_v26, 0.0  ;;  %v2259_v51 = vsub.f32 %v4185_v8, %v2243_v9  ;;  %v2273_v21 = vmul.f32 %v2257_v19, %v2257_v19  ;;  %v2327_v37 = vld [vmem:[%s4371_s6] sm:$0x1] }
 0x573   :  { %v2284_v40 = vadd.f32 %v2283_v11, %v2282_v23  ;;  %v2297_v33 = vsel %vm29_vm0, %v2271_v12, 0.0  ;;  %v2274_v45 = vmul.f32 %v2258_v29, %v2258_v29  ;;  %v2340_v19 = vld [vmem:[%s4372_s7] sm:$0x1] }
 0x574   :  { %v2299_v16 = vsel %vm29_vm0, %v2272_v60, 0.0  ;;  %v2275_v7 = vmul.f32 %v2259_v51, %v2259_v51  ;;  %v2301_v24 = vsel %vm29_vm0, %v2273_v21, 0.0 }
 0x575   :  { %v2286_v15 = vadd.f32 %v2285_v54, %v2284_v40  ;;  %v2303_v22 = vsel %vm29_vm0, %v2274_v45, 0.0 }
 0x576   :  { %v2305_v47 = vsel %vm29_vm0, %v2275_v7, 0.0 }
 0x577   :  { %v2288_v1 = vadd.f32 %v2287_v10, %v2286_v15 }
 0x579   :  { %v2290_v31 = vadd.f32 %v2289_v39, %v2288_v1 }
 0x57b   :  { %v2292_v59 = vadd.f32 %v2291_v49, %v2290_v31 }
 0x57d   :  { %v2294_v32 = vadd.f32 %v2293_v18, %v2292_v59 }
 0x57f   :  { %v2296_v56 = vadd.f32 %v2295_v36, %v2294_v32 }
 0x581   :  { %v2298_v25 = vadd.f32 %v2297_v33, %v2296_v56 }
 0x583   :  { %v2300_v3 = vadd.f32 %v2299_v16, %v2298_v25 }
 0x585   :  { %v2302_v35 = vadd.f32 %v2301_v24, %v2300_v3 }
 0x587   :  { %v2304_v14 = vadd.f32 %v2303_v22, %v2302_v35 }
 0x589   :  { %v2306_v6 = vadd.f32 %v2305_v47, %v2304_v14 }
 0x58b   :  { %v2307_v30 = vrot.slane %v2306_v6, 4 }
 0x58d   :  { %v2308_v9 = vadd.f32 %v2307_v30, %v2306_v6 }
 0x58f   :  { %v2309_v55 = vrot.slane %v2308_v9, 2 }
 0x591   :  { %v2310_v23 = vadd.f32 %v2309_v55, %v2308_v9 }
 0x593   :  { %v2311_v28 = vrot.slane %v2310_v23, 1 }
 0x595   :  { %v2312_v2 = vadd.f32 %v2311_v28, %v2310_v23 }
 0x597   :  { %2322 = vrot.lane.b32.xlu1 %v2312_v2, %s2846_s5  ;;  %2318 = vrot.lane.b32.xlu0 %v2312_v2, %s2847_s30 }
 0x598   :  { %2314 = vrot.lane.b32.xlu2 %v2312_v2, %s2848_s19 }
 0x5f2   :  { %v2315_v11 = vpop.permute.xlu2 %2314 }
 0x5f3   :  { %v2317_v40 = vadd.f32 %v2315_v11, %v2312_v2 }
 0x609   :  { %v2319_v20 = vpop.permute.xlu0 %2318  ;;  %v2323_v54 = vpop.permute.xlu1 %2322 }
 0x60a   :  { %v2321_v57 = vadd.f32 %v2319_v20, %v2317_v40 }
 0x60c   :  { %v2325_v15 = vadd.f32 %v2323_v54, %v2321_v57 }
 0x60e   :  { %v2326_v4 = vmul.f32 %v2325_v15, %v4192_v17 }
 0x610   :  { %v2328_v63 = vadd.f32 1e-05, %v2326_v4 }
 0x612   :  { %2831 = vrsqrt.f32 %v2328_v63  ;;  %vm2335_vm7 = vweird.f32 %v2328_v63 }
 0x618   :  { %v2832_v10 = vpop.eup %2831 }
 0x619   :  { %v2330_v1 = vmul.f32 %v2832_v10, %v2328_v63  ;;  %vm2336_vm6 = vweird.f32 %v2832_v10 }
 0x61a   :  { %vm2337_vm9 = vmor %vm2335_vm7, %vm2336_vm6 }
 0x61b   :  { %v2331_v61 = vmul.f32 %v2832_v10, %v2330_v1 }
 0x61d   :  { %v2332_v43 = vmul.f32 0.5, %v2331_v61 }
 0x61f   :  { %v2333_v39 = vsub.f32 1.5, %v2332_v43 }
 0x621   :  { %v2334_v31 = vmul.f32 %v2832_v10, %v2333_v39 }
 0x623   :  { %v2338_v26 = vsel %vm2337_vm9, %v2832_v10, %v2334_v31 }
 0x624   :  { %v2339_v49 = vmul.f32 %v2338_v26, %v2327_v37 }
 0x626   :  { %v2344_v59 = vperm.slane %v2339_v49, 0  ;;  %v2341_v17 = vmul.f32 %v2339_v49, %v4195_v38 }
 0x628   :  { %2351 = vrot.lane.b32.xlu1 %v2344_v59, %s2850_s24  ;;  %2348 = vrot.lane.b32.xlu0 %v2344_v59, %s2842_s1  ;;  %v2342_v12 = vsub.f32 %v2340_v19, %v2341_v17 }
 0x629   :  { %2345 = vrot.lane.b32.xlu2 %v2344_v59, %s2851_s20 }
 0x62a   :  { %v2375_v18 = vperm.slane %v2342_v12, 0 }
 0x630   :  { %2382 = vrot.lane.b32.xlu1 %v2375_v18, %s2850_s24  ;;  %2379 = vrot.lane.b32.xlu0 %v2375_v18, %s2842_s1 }
 0x631   :  { %2376 = vrot.lane.b32.xlu2 %v2375_v18, %s2851_s20 }
 0x683   :  { %v2346_v32 = vpop.permute.xlu2 %2345 }
 0x684   :  { %v2354_v60 = vsel %vm2238_vm3, %v2339_v49, %v2346_v32 }
 0x68b   :  { %v2377_v56 = vpop.permute.xlu2 %2376 }
 0x68c   :  { %v2385_v21 = vsel %vm2238_vm3, %v2342_v12, %v2377_v56 }
 0x69a   :  { %v2352_v38 = vpop.permute.xlu1 %2351  ;;  %v2349_v29 = vpop.permute.xlu0 %2348 }
 0x69b   :  { %v2355_v36 = vsel %vm1011_vm8, %v2354_v60, %v2349_v29 }
 0x69c   :  { %v2356_v51 = vsel %vm2241_vm4, %v2355_v36, %v2352_v38 }
 0x69d   :  { %v2357_v16 = vperm.slane %v2356_v51, 0 }
 0x69f   :  { %v2358_v24 = vmul.f32 %v2357_v16, %v4127_v58  ;;  %v2359_v35 = vmul.f32 %v2357_v16, %v4125_v42  ;;  %v2360_v22 = vmul.f32 %v2357_v16, %v4129_v5  ;;  %v2361_v14 = vmul.f32 %v2357_v16, %v4133_v13 }
 0x6a0   :  { %v2362_v47 = vmul.f32 %v2357_v16, %v4139_v41  ;;  %v2363_v9 = vmul.f32 %v2357_v16, %v4143_v50  ;;  %v2364_v55 = vmul.f32 %v2357_v16, %v4147_v27  ;;  %v2365_v23 = vmul.f32 %v2357_v16, %v4151_v46 }
 0x6a1   :  { %v2366_v42 = vmul.f32 %v2357_v16, %v4155_v44  ;;  %v2367_v5 = vmul.f32 %v2357_v16, %v4159_v52  ;;  %v2368_v13 = vmul.f32 %v2357_v16, %v4163_v53  ;;  %v2369_v28 = vmul.f32 %v2357_v16, %v4167_v62 }
 0x6a2   :  { %v2383_v33 = vpop.permute.xlu1 %2382  ;;  %v2380_v25 = vpop.permute.xlu0 %2379  ;;  %v2370_v2 = vmul.f32 %v2357_v16, %v4171_v0  ;;  %v2371_v50 = vmul.f32 %v2357_v16, %v4177_v34  ;;  %v2372_v46 = vmul.f32 %v2357_v16, %v4181_v48  ;;  %v2373_v20 = vmul.f32 %v2357_v16, %v4185_v8 }
 0x6a3   :  { %v2386_v45 = vsel %vm1011_vm8, %v2385_v21, %v2380_v25 }
 0x6a4   :  { %v2387_v3 = vsel %vm2241_vm4, %v2386_v45, %v2383_v33 }
 0x6a5   :  { %v4262_v7 = vperm.slane %v2387_v3, 0 }
 0x6a7   :  { %v2389_v6 = vadd.f32 %v4262_v7, %v2358_v24  ;;  %v2390_v30 = vadd.f32 %v4262_v7, %v2359_v35  ;;  %v2391_v58 = vadd.f32 %v4262_v7, %v2360_v22  ;;  %v2392_v41 = vadd.f32 %v4262_v7, %v2361_v14 }
 0x6a8   :  { %v2393_v27 = vadd.f32 %v4262_v7, %v2362_v47  ;;  %v2394_v11 = vadd.f32 %v4262_v7, %v2363_v9  ;;  %v2395_v44 = vadd.f32 %v4262_v7, %v2364_v55  ;;  %v2396_v62 = vadd.f32 %v4262_v7, %v2365_v23 }
 0x6a9   :  { %vm2405_vm8 = vcmp.gt.f32.partialorder %v2389_v6, 0.0  ;;  %vm2406_vm10 = vcmp.gt.f32.partialorder %v2390_v30, 0.0  ;;  %v2421_v52 = vmul.f32 0.2, %v2389_v6  ;;  %v2422_v53 = vmul.f32 0.2, %v2390_v30 }
 0x6aa   :  { %v2423_v40 = vmul.f32 0.2, %v2391_v58  ;;  %vm2407_vm11 = vcmp.gt.f32.partialorder %v2391_v58, 0.0  ;;  %v2424_v0 = vmul.f32 0.2, %v2392_v41  ;;  %v2397_v34 = vadd.f32 %v4262_v7, %v2366_v42 }
 0x6ab   :  { %vm2408_vm12 = vcmp.gt.f32.partialorder %v2392_v41, 0.0  ;;  %v2425_v57 = vmul.f32 0.2, %v2393_v27  ;;  %v2437_v48 = vsel %vm2405_vm8, %v2389_v6, %v2421_v52  ;;  %v2398_v54 = vadd.f32 %v4262_v7, %v2367_v5 }
 0x6ac   :  { %vm2409_vm13 = vcmp.gt.f32.partialorder %v2393_v27, 0.0  ;;  %v2426_v15 = vmul.f32 0.2, %v2394_v11  ;;  %v2438_v4 = vsel %vm2406_vm10, %v2390_v30, %v2422_v53  ;;  %v2399_v63 = vadd.f32 %v4262_v7, %v2368_v13  ;;  %2453 = vst.msk [vmem:[%s4373_s8] sm:$0xff] %vm29_vm0, %v2437_v48 }
 0x6ad   :  { %vm2410_vm14 = vcmp.gt.f32.partialorder %v2394_v11, 0.0  ;;  %v2427_v10 = vmul.f32 0.2, %v2395_v44  ;;  %v2439_v8 = vsel %vm2407_vm11, %v2391_v58, %v2423_v40  ;;  %v2400_v1 = vadd.f32 %v4262_v7, %v2369_v28  ;;  %2454 = vst.msk [vmem:[%s4373_s8 + $0x8] sm:$0xff] %vm29_vm0, %v2438_v4 }
 0x6ae   :  { %vm2411_vm15 = vcmp.gt.f32.partialorder %v2395_v44, 0.0  ;;  %v2428_v61 = vmul.f32 0.2, %v2396_v62  ;;  %v2440_v43 = vsel %vm2408_vm12, %v2392_v41, %v2424_v0  ;;  %v2401_v39 = vadd.f32 %v4262_v7, %v2370_v2  ;;  %2455 = vst.msk [vmem:[%s4373_s8 + $0x10] sm:$0xff] %vm29_vm0, %v2439_v8 }
 0x6af   :  { %vm2412_vm1 = vcmp.gt.f32.partialorder %v2396_v62, 0.0  ;;  %v2429_v31 = vmul.f32 0.2, %v2397_v34  ;;  %v2441_v37 = vsel %vm2409_vm13, %v2393_v27, %v2425_v57  ;;  %v2402_v26 = vadd.f32 %v4262_v7, %v2371_v50  ;;  %2456 = vst.msk [vmem:[%s4373_s8 + $0x18] sm:$0xff] %vm29_vm0, %v2440_v43 }
 0x6b0   :  { %vm2413_vm5 = vcmp.gt.f32.partialorder %v2397_v34, 0.0  ;;  %v2430_v49 = vmul.f32 0.2, %v2398_v54  ;;  %v2442_v59 = vsel %vm2410_vm14, %v2394_v11, %v2426_v15  ;;  %v2403_v17 = vadd.f32 %v4262_v7, %v2372_v46  ;;  %2457 = vst.msk [vmem:[%s4373_s8 + $0x20] sm:$0xff] %vm29_vm0, %v2441_v37 }
 0x6b1   :  { %vm2414_vm2 = vcmp.gt.f32.partialorder %v2398_v54, 0.0  ;;  %v2431_v19 = vmul.f32 0.2, %v2399_v63  ;;  %v2443_v12 = vsel %vm2411_vm15, %v2395_v44, %v2427_v10  ;;  %v2404_v18 = vadd.f32 %v4262_v7, %v2373_v20  ;;  %2458 = vst.msk [vmem:[%s4373_s8 + $0x28] sm:$0xff] %vm29_vm0, %v2442_v59 }
 0x6b2   :  { %vm2415_vm3 = vcmp.gt.f32.partialorder %v2399_v63, 0.0  ;;  %v2432_v32 = vmul.f32 0.2, %v2400_v1  ;;  %v2444_v38 = vsel %vm2412_vm1, %v2396_v62, %v2428_v61  ;;  %vm2416_vm4 = vcmp.gt.f32.partialorder %v2400_v1, 0.0  ;;  %2459 = vst.msk [vmem:[%s4373_s8 + $0x30] sm:$0xff] %vm29_vm0, %v2443_v12 }
 0x6b3   :  { %v2433_v29 = vmul.f32 0.2, %v2401_v39  ;;  %v2445_v60 = vsel %vm2413_vm5, %v2397_v34, %v2429_v31  ;;  %vm2417_vm6 = vcmp.gt.f32.partialorder %v2401_v39, 0.0  ;;  %v2434_v36 = vmul.f32 0.2, %v2402_v26  ;;  %2460 = vst.msk [vmem:[%s4373_s8 + $0x38] sm:$0xff] %vm29_vm0, %v2444_v38 }
 0x6b4   :  { %v2446_v56 = vsel %vm2414_vm2, %v2398_v54, %v2430_v49  ;;  %vm2418_vm7 = vcmp.gt.f32.partialorder %v2402_v26, 0.0  ;;  %v2435_v51 = vmul.f32 0.2, %v2403_v17  ;;  %v2447_v21 = vsel %vm2415_vm3, %v2399_v63, %v2431_v19  ;;  %2461 = vst.msk [vmem:[%s4373_s8 + $0x40] sm:$0xff] %vm29_vm0, %v2445_v60 }
 0x6b5   :  { %vm2419_vm9 = vcmp.gt.f32.partialorder %v2403_v17, 0.0  ;;  %v2436_v33 = vmul.f32 0.2, %v2404_v18  ;;  %v2448_v25 = vsel %vm2416_vm4, %v2400_v1, %v2432_v32  ;;  %vm2420_vm8 = vcmp.gt.f32.partialorder %v2404_v18, 0.0  ;;  %2462 = vst.msk [vmem:[%s4373_s8 + $0x48] sm:$0xff] %vm29_vm0, %v2446_v56 }
 0x6b6   :  { %v2449_v45 = vsel %vm2417_vm6, %v2401_v39, %v2433_v29  ;;  %v2450_v16 = vsel %vm2418_vm7, %v2402_v26, %v2434_v36  ;;  %2463 = vst.msk [vmem:[%s4373_s8 + $0x50] sm:$0xff] %vm29_vm0, %v2447_v21  ;;  %v2451_v3 = vsel %vm2419_vm9, %v2403_v17, %v2435_v51 }
 0x6b7   :  { %2464 = vst.msk [vmem:[%s4373_s8 + $0x58] sm:$0xff] %vm29_vm0, %v2448_v25  ;;  %v2452_v7 = vsel %vm2420_vm8, %v2404_v18, %v2436_v33 }
 0x6b8   :  { %2465 = vst.msk [vmem:[%s4373_s8 + $0x60] sm:$0xff] %vm29_vm0, %v2449_v45 }
 0x6b9   :  { %2466 = vst.msk [vmem:[%s4373_s8 + $0x68] sm:$0xff] %vm29_vm0, %v2450_v16 }
 0x6ba   :  { %2467 = vst.msk [vmem:[%s4373_s8 + $0x70] sm:$0xff] %vm29_vm0, %v2451_v3 }
 0x6bb   :  { %2468 = vst.msk [vmem:[%s4373_s8 + $0x78] sm:$0xff] %vm29_vm0, %v2452_v7 }

</bundles_post_ra>
